<compile_context>
chip_gen: v6e
topology: v6e:2x2x1
jax: 0.10.0
libtpu: 0.0.40
codegen_flags: <defaults>
</compile_context>

<pallas_src>
import functools

import jax
import jax.numpy as jnp
from jax.experimental import pallas as pl
from jax.experimental.pallas import tpu as pltpu


def _round_up(x, m):
    return (x + m - 1) // m * m


def _pad_to(a, shape):
    pads = [(0, t - s) for s, t in zip(a.shape, shape)]
    return jnp.pad(a, pads)


def _vmem_limit(nbytes):
    # Right-sized per-call scoped-VMEM limit: ~1.5x the static buffer footprint + 4 MiB
    # margin, clamped to [16 MiB, 48 MiB] (safe on v5e/v6e 128 MiB and v7x 64 MiB/TC).
    return int(min(max(3 * nbytes // 2 + (4 << 20), 16 << 20), 48 << 20))


# --------------------------------------------------------------------------------------
# Kernels
# --------------------------------------------------------------------------------------
def _encoder_kernel(x_ref, w_ref, b_ref, o_ref):
    # h = relu(x @ W_atom^T + b_atom); W pre-transposed/padded, bf16 operands, f32 accum.
    h = jnp.dot(x_ref[...], w_ref[...], preferred_element_type=jnp.float32) + b_ref[...]
    o_ref[...] = jnp.maximum(h, 0.0).astype(o_ref.dtype)


def _z_kernel(h_ref, w_ref, b_ref, dinv_ref, z_ref):
    # z = dinv * (h @ W_i^T + b_i), emitted bf16 for the MXU A-matmul.
    # dinv == 0 on padded rows keeps them exactly zero (relied upon downstream).
    z = jnp.dot(h_ref[...], w_ref[...], preferred_element_type=jnp.float32) + b_ref[...]
    z_ref[...] = (dinv_ref[...] * z).astype(z_ref.dtype)


def _aggregate_kernel(kcol_ref, cnt_ref, a_ref, z_ref, dinv_ref, o_ref, acc_ref,
                      *, z_resident, tile):
    # h_new = relu(dinv * (A @ z)); A streamed as int8 (tile, tile) with a data-dependent
    # column-tile index; all-zero A tiles are skipped (block-sparse batched adjacency).
    i = pl.program_id(0)
    k = pl.program_id(1)

    @pl.when(k == 0)
    def _():
        acc_ref[...] = jnp.zeros_like(acc_ref)

    # Padded kcol slots repeat the previous valid tile index, so a skipped step issues no
    # new A DMA; the matmul itself is gated off here.
    @pl.when(k < cnt_ref[i])
    def _():
        # int8 -> f32 -> bf16 (two-step cast keeps lowering simple); MXU runs bf16 x bf16.
        a_blk = a_ref[...].astype(jnp.float32).astype(jnp.bfloat16)
        if z_resident:
            kc = kcol_ref[i, k]
            start = pl.multiple_of(kc * tile, tile)
            z_blk = z_ref[pl.ds(start, tile), :]
        else:
            z_blk = z_ref[...]
        acc_ref[...] += jnp.dot(a_blk, z_blk, preferred_element_type=jnp.float32)

    @pl.when(k == pl.num_programs(1) - 1)
    def _():
        o_ref[...] = jnp.maximum(dinv_ref[...] * acc_ref[...], 0.0).astype(o_ref.dtype)


def _readout_kernel(pool_ref, h_ref, w1_ref, b1_ref, w2_ref, b2_ref, o_ref, g_ref):
    # g = pool @ h (tiled reduction over nodes), then out = Linear2(relu(Linear1(sigmoid(g)))).
    k = pl.program_id(0)

    @pl.when(k == 0)
    def _():
        g_ref[...] = jnp.zeros_like(g_ref)

    g_ref[...] += jnp.dot(pool_ref[...], h_ref[...], preferred_element_type=jnp.float32)

    @pl.when(k == pl.num_programs(0) - 1)
    def _():
        s = jax.nn.sigmoid(g_ref[...]).astype(w1_ref.dtype)
        h1 = jnp.dot(s, w1_ref[...], preferred_element_type=jnp.float32) + b1_ref[...]
        h1 = jnp.maximum(h1, 0.0).astype(w2_ref.dtype)
        o_ref[...] = jnp.dot(h1, w2_ref[...], preferred_element_type=jnp.float32) + b2_ref[...]


# --------------------------------------------------------------------------------------
# Wrapper
# --------------------------------------------------------------------------------------
def gcn_forward(x, adj, pool, params, *, depth):
    """x: (N, atom_dim) f32, adj: (N, N) f32 (no self loops, small-integer entries),
    pool: (G, N) f32 mean-pooling matrix."""
    N, atom_dim = x.shape
    G = pool.shape[0]
    hid = params["w_atom"].shape[0]
    num_tasks = params["w2"].shape[0]

    # ---- padded / lane-aligned sizes; Np padded to 512 so the A tile is always 512 ----
    TILE = 512
    Ap = _round_up(atom_dim, 128)
    Hp = _round_up(hid, 128)
    Tp = _round_up(num_tasks, 128)
    Gp = _round_up(G, 8)
    Np = _round_up(N, TILE)
    n_row = Np // TILE

    # ---- adjacency with self loops + normalization vector (computed once in XLA) ----
    a = adj + jnp.eye(N, dtype=adj.dtype)
    dinv = jax.lax.rsqrt(jnp.sum(a, axis=0))                      # (N,), deg >= 1 (self loops)
    # A entries are small non-negative integers (0/1, or 2 if the input already had a self
    # loop) -> exact in int8.  int8 halves the dominant HBM stream; upcast to bf16 in-kernel.
    # TODO(synk): weighted adjacencies would need a bf16/f32 A path instead of int8.
    a_i8 = _pad_to(a, (Np, Np)).astype(jnp.int8)
    # Padded nodes get dinv = 0; together with zero-padded A columns this keeps every
    # padded row/col of the intermediates exactly zero.  Do not remove.
    dinv_p = _pad_to(dinv[:, None], (Np, 1)).astype(jnp.float32)

    # ---- block-sparse metadata: batched graphs are block diagonal, so many (i, k) A tiles
    # are all-zero.  For each row tile list its nonzero column tiles first (SMEM prefetch);
    # padded slots repeat the last valid tile index (same block index -> no re-DMA).
    a_blk = a_i8.reshape(n_row, TILE, n_row, TILE)
    nz = (a_blk != 0).any(axis=(1, 3))                            # (n_row, n_row) bool
    counts = nz.sum(axis=1).astype(jnp.int32)                     # >= 1 (diag self loops)
    order = jnp.argsort(jnp.where(nz, 0, 1), axis=1).astype(jnp.int32)
    pos = jnp.arange(n_row, dtype=jnp.int32)[None, :]
    last_valid = jnp.take_along_axis(order, jnp.maximum(counts - 1, 0)[:, None], axis=1)
    kcol = jnp.where(pos < counts[:, None], order, last_valid).astype(jnp.int32)

    # ---- activations / weights in bf16 (single-pass MXU, half the HBM traffic);
    # biases / dinv / accumulators stay f32.
    x_p = _pad_to(x, (Np, Ap)).astype(jnp.bfloat16)
    pool_p = _pad_to(pool, (Gp, Np)).astype(jnp.bfloat16)
    wa_t = _pad_to(params["w_atom"].T, (Ap, Hp)).astype(jnp.bfloat16)
    ba = _pad_to(params["b_atom"], (1, Hp)).astype(jnp.float32)
    wl_t = _pad_to(jnp.transpose(params["w_layers"], (0, 2, 1)),
                   (depth, Hp, Hp)).astype(jnp.bfloat16)
    bl = _pad_to(params["b_layers"], (depth, 1, Hp)).astype(jnp.float32)
    w1_t = _pad_to(params["w1"].T, (Hp, Hp)).astype(jnp.bfloat16)
    b1 = _pad_to(params["b1"], (1, Hp)).astype(jnp.float32)
    w2_t = _pad_to(params["w2"].T, (Hp, Tp)).astype(jnp.bfloat16)
    b2 = _pad_to(params["b2"], (1, Tp)).astype(jnp.float32)

    # ---- node encoder: h0 = relu(x W_atom^T + b) ----
    enc_vmem = _vmem_limit(2 * TILE * Ap * 2 + Ap * Hp * 2 + Hp * 4 + 2 * TILE * Hp * 2)
    h = pl.pallas_call(
        _encoder_kernel,
        out_shape=jax.ShapeDtypeStruct((Np, Hp), jnp.bfloat16),
        grid=(n_row,),
        in_specs=[pl.BlockSpec((TILE, Ap), lambda i: (i, 0)),
                  pl.BlockSpec((Ap, Hp), lambda i: (0, 0)),
                  pl.BlockSpec((1, Hp), lambda i: (0, 0))],
        out_specs=pl.BlockSpec((TILE, Hp), lambda i: (i, 0)),
        compiler_params=pltpu.CompilerParams(
            dimension_semantics=("parallel",), vmem_limit_bytes=enc_vmem),
    )(x_p, wa_t, ba)

    # Z is fully VMEM-resident in the aggregation when it fits (16 MiB budget, safe on
    # v7x's 64 MiB/TC), else streamed as (TILE, Hp) blocks indexed by the column tile.
    z_resident = (Np * Hp * 2) <= (16 << 20)
    if z_resident:
        z_spec = pl.BlockSpec((Np, Hp), lambda i, k, kc_ref, cnt_ref: (0, 0))
        z_vmem_bytes = Np * Hp * 2
        z_hbm_reads = 1
    else:
        z_spec = pl.BlockSpec((TILE, Hp), lambda i, k, kc_ref, cnt_ref: (kc_ref[i, k], 0))
        z_vmem_bytes = 2 * TILE * Hp * 2
        z_hbm_reads = n_row

    agg_vmem = _vmem_limit(2 * TILE * TILE * 1 + z_vmem_bytes + TILE * Hp * 4
                           + 2 * TILE * Hp * 2 + 2 * TILE * 4)
    agg_cost = pl.CostEstimate(
        flops=2 * Np * Np * Hp,
        transcendentals=0,
        bytes_accessed=Np * Np * 1 + z_hbm_reads * Np * Hp * 2 + Np * Hp * 2 + Np * 4)
    z_vmem = _vmem_limit(2 * TILE * Hp * 2 + Hp * Hp * 2 + Hp * 4 + 2 * TILE * 4
                         + 2 * TILE * Hp * 2)

    agg_kernel = functools.partial(_aggregate_kernel, z_resident=z_resident, tile=TILE)

    # ---- GCN layers ----
    for d in range(depth):
        # Z pass (row-tiled, "parallel"): z = dinv * (h @ W_d^T + b_d), emitted bf16.
        z = pl.pallas_call(
            _z_kernel,
            out_shape=jax.ShapeDtypeStruct((Np, Hp), jnp.bfloat16),
            grid=(n_row,),
            in_specs=[pl.BlockSpec((TILE, Hp), lambda i: (i, 0)),
                      pl.BlockSpec((Hp, Hp), lambda i: (0, 0)),
                      pl.BlockSpec((1, Hp), lambda i: (0, 0)),
                      pl.BlockSpec((TILE, 1), lambda i: (i, 0))],
            out_specs=pl.BlockSpec((TILE, Hp), lambda i: (i, 0)),
            compiler_params=pltpu.CompilerParams(
                dimension_semantics=("parallel",), vmem_limit_bytes=z_vmem),
        )(h, wl_t[d], bl[d], dinv_p)

        # Aggregation: h = relu(dinv * (A @ z)).  Row axis "parallel" (megacore), reduction
        # (column-tile) axis last + "arbitrary"; data-dependent A column index via SMEM
        # scalar prefetch skips all-zero blocks; f32 accumulator in VMEM scratch.
        h = pl.pallas_call(
            agg_kernel,
            out_shape=jax.ShapeDtypeStruct((Np, Hp), jnp.bfloat16),
            grid_spec=pltpu.PrefetchScalarGridSpec(
                num_scalar_prefetch=2,
                grid=(n_row, n_row),
                in_specs=[pl.BlockSpec((TILE, TILE),
                                       lambda i, k, kc_ref, cnt_ref: (i, kc_ref[i, k])),
                          z_spec,
                          pl.BlockSpec((TILE, 1),
                                       lambda i, k, kc_ref, cnt_ref: (i, 0))],
                out_specs=pl.BlockSpec((TILE, Hp),
                                       lambda i, k, kc_ref, cnt_ref: (i, 0)),
                scratch_shapes=[pltpu.VMEM((TILE, Hp), jnp.float32)]),
            compiler_params=pltpu.CompilerParams(
                dimension_semantics=("parallel", "arbitrary"),
                vmem_limit_bytes=agg_vmem),
            cost_estimate=agg_cost,
        )(kcol, counts, a_i8, z, dinv_p)

    # ---- readout (mean pooling, tiled reduction over nodes) + output head ----
    ro_vmem = _vmem_limit(2 * Gp * TILE * 2 + 2 * TILE * Hp * 2 + Hp * Hp * 2
                          + Hp * Tp * 2 + Gp * Hp * 4 + 2 * Gp * Tp * 4)
    out_p = pl.pallas_call(
        _readout_kernel,
        out_shape=jax.ShapeDtypeStruct((Gp, Tp), jnp.float32),
        grid=(n_row,),
        in_specs=[pl.BlockSpec((Gp, TILE), lambda k: (0, k)),
                  pl.BlockSpec((TILE, Hp), lambda k: (k, 0)),
                  pl.BlockSpec((Hp, Hp), lambda k: (0, 0)),
                  pl.BlockSpec((1, Hp), lambda k: (0, 0)),
                  pl.BlockSpec((Hp, Tp), lambda k: (0, 0)),
                  pl.BlockSpec((1, Tp), lambda k: (0, 0))],
        out_specs=pl.BlockSpec((Gp, Tp), lambda k: (0, 0)),
        scratch_shapes=[pltpu.VMEM((Gp, Hp), jnp.float32)],
        compiler_params=pltpu.CompilerParams(
            dimension_semantics=("arbitrary",), vmem_limit_bytes=ro_vmem),
    )(pool_p, h, w1_t, b1, w2_t, b2)

    return out_p[:G, :num_tasks]


# --------------------------------------------------------------------------------------
# Parameter construction (xavier-normal weights / zero biases, as in
# BaseGNN.initialize_weights) and a pure-JAX reference.
# --------------------------------------------------------------------------------------
def _xavier_normal(key, out_dim, in_dim):
    std = (2.0 / (in_dim + out_dim)) ** 0.5
    return std * jax.random.normal(key, (out_dim, in_dim), dtype=jnp.float32)


def make_params(key, atom_dim, hid_dim, num_tasks, depth):
    ks = jax.random.split(key, depth + 3)
    w_atom = _xavier_normal(ks[0], hid_dim, atom_dim)
    w_layers = jnp.stack([_xavier_normal(ks[1 + i], hid_dim, hid_dim) for i in range(depth)])
    w1 = _xavier_normal(ks[depth + 1], hid_dim, hid_dim)       # SinglerLayer linear
    w2 = _xavier_normal(ks[depth + 2], num_tasks, hid_dim)     # final linear
    return {
        "w_atom": w_atom,
        "b_atom": jnp.zeros((1, hid_dim), jnp.float32),
        "w_layers": w_layers,
        "b_layers": jnp.zeros((depth, 1, hid_dim), jnp.float32),
        "w1": w1,
        "b1": jnp.zeros((1, hid_dim), jnp.float32),
        "w2": w2,
        "b2": jnp.zeros((1, num_tasks), jnp.float32),
    }


def gcn_reference(x, adj, pool, params, *, depth):
    n = x.shape[0]
    a = adj + jnp.eye(n, dtype=adj.dtype)
    h = jnp.maximum(x @ params["w_atom"].T + params["b_atom"], 0.0)
    d = jnp.diag(1.0 / jnp.sqrt(a.sum(axis=0)))
    for i in range(depth):
        h = jnp.maximum(d @ a @ d @ (h @ params["w_layers"][i].T + params["b_layers"][i]), 0.0)
    g = pool @ h
    s = jax.nn.sigmoid(g)
    h1 = jnp.maximum(s @ params["w1"].T + params["b1"], 0.0)
    return h1 @ params["w2"].T + params["b2"]


def _build_case(key, num_graphs, n_per, atom_dim):
    k_x, k_a = jax.random.split(key)
    n_total = num_graphs * n_per
    x = jax.random.normal(k_x, (n_total, atom_dim), dtype=jnp.float32)
    blocks = []
    a_keys = jax.random.split(k_a, num_graphs)
    for g in range(num_graphs):
        u = (jax.random.uniform(a_keys[g], (n_per, n_per)) < 0.3).astype(jnp.float32)
        sym = jnp.clip(u + u.T, 0.0, 1.0)
        sym = sym * (1.0 - jnp.eye(n_per, dtype=jnp.float32))   # no pre-existing self loops
        blocks.append(sym)
    adj = jax.scipy.linalg.block_diag(*blocks)
    pool = jnp.kron(jnp.eye(num_graphs, dtype=jnp.float32),
                    jnp.full((1, n_per), 1.0 / n_per, jnp.float32))
    return x, adj, pool


if __name__ == "__main__":
    ATOM_DIM, HID_DIM, NUM_TASKS, DEPTH = 16, 32, 4, 2

    key = jax.random.PRNGKey(0)
    k_data, k_p = jax.random.split(key)
    params = make_params(k_p, ATOM_DIM, HID_DIM, NUM_TASKS, DEPTH)

    gcn_fn = jax.jit(gcn_forward, static_argnames=("depth",))

    # case 1: tiny batched graph (single 512 row tile).
    # case 2: two 512-node graphs -> 2x2 tile grid whose off-diagonal A tiles are all-zero,
    #         exercising the block-sparse skip path.
    for (G, N_per) in [(2, 8), (2, 512)]:
        x, adj, pool = _build_case(jax.random.fold_in(k_data, N_per), G, N_per, ATOM_DIM)
        out = gcn_fn(x, adj, pool, params, depth=DEPTH)
        jax.block_until_ready(out)

        ref = gcn_reference(x, adj, pool, params, depth=DEPTH)
        assert out.shape == (G, NUM_TASKS)
        # bf16 activations/weights on all matmuls (f32 accumulation) -> loose-ish tolerance.
        assert jnp.allclose(out, ref, atol=3e-2, rtol=3e-2), (
            f"Pallas kernel mismatch vs JAX reference (G={G}, N_per={N_per})")

    print("KERNEL_OK")
</pallas_src>

<mosaic_0001>
module attributes {stable_mosaic.version = 11 : i64} {
  func.func @_encoder_kernel(%arg0: i32, %arg1: memref<512x128xbf16, #tpu.memory_space<vmem>>, %arg2: memref<128x128xbf16, #tpu.memory_space<vmem>>, %arg3: memref<1x128xf32, #tpu.memory_space<vmem>>, %arg4: memref<512x128xbf16, #tpu.memory_space<vmem>>) attributes {dimension_semantics = [#tpu.dimension_semantics<parallel>], iteration_bounds = array<i64: 1>, scalar_prefetch = 0 : i64, scratch_operands = 0 : i64, tpu.core_type = #tpu.core_type<tc>, window_params = [{transform_indices = @transform_0, window_bounds = array<i64: 512, 128>}, {pipeline_mode = #tpu.pipeline_mode<synchronous>, transform_indices = @transform_1, window_bounds = array<i64: 128, 128>}, {pipeline_mode = #tpu.pipeline_mode<synchronous>, transform_indices = @transform_2, window_bounds = array<i64: 1, 128>}, {transform_indices = @transform_3, window_bounds = array<i64: 512, 128>}]} {
    %c0 = arith.constant 0 : index
    %c0_0 = arith.constant 0 : index
    %0 = vector.load %arg1[%c0, %c0_0] : memref<512x128xbf16, #tpu.memory_space<vmem>>, vector<512x128xbf16>
    %c0_1 = arith.constant 0 : index
    %c0_2 = arith.constant 0 : index
    %1 = vector.load %arg2[%c0_1, %c0_2] : memref<128x128xbf16, #tpu.memory_space<vmem>>, vector<128x128xbf16>
    %cst = arith.constant dense<0.000000e+00> : vector<512x128xf32>
    %2 = tpu.matmul %0, %1, %cst {dimension_numbers = #tpu.dot_dimension_numbers<[1], [0], [0], [1], [0, 0, 1, 1], [], []>} : vector<512x128xbf16>, vector<128x128xbf16>, vector<512x128xf32> -> vector<512x128xf32>
    %c0_3 = arith.constant 0 : index
    %c0_4 = arith.constant 0 : index
    %3 = vector.load %arg3[%c0_3, %c0_4] : memref<1x128xf32, #tpu.memory_space<vmem>>, vector<1x128xf32>
    %4 = vector.broadcast %3 : vector<1x128xf32> to vector<512x128xf32>
    %5 = arith.addf %2, %4 : vector<512x128xf32>
    %cst_5 = arith.constant 0.000000e+00 : f32
    %6 = vector.broadcast %cst_5 : f32 to vector<512x128xf32>
    %7 = arith.maximumf %5, %6 : vector<512x128xf32>
    %8 = arith.truncf %7 : vector<512x128xf32> to vector<512x128xbf16>
    %c0_6 = arith.constant 0 : index
    %c0_7 = arith.constant 0 : index
    %9 = vector.load %arg4[%c0_6, %c0_7] : memref<512x128xbf16, #tpu.memory_space<vmem>>, vector<512x128xbf16>
    tpu.vector_store %arg4[%c0_6, %c0_7], %8 {strides = array<i32>} : memref<512x128xbf16, #tpu.memory_space<vmem>>, vector<512x128xbf16>,
    return
  }
  func.func @transform_0(%arg0: i32) -> (i32, i32) {
    %c0_i32 = arith.constant 0 : i32
    %c0_i32_0 = arith.constant 0 : i32
    return %arg0, %c0_i32 : i32, i32
  }
  func.func @transform_1(%arg0: i32) -> (i32, i32) {
    %c0_i32 = arith.constant 0 : i32
    %c0_i32_0 = arith.constant 0 : i32
    %c0_i32_1 = arith.constant 0 : i32
    return %c0_i32, %c0_i32_0 : i32, i32
  }
  func.func @transform_2(%arg0: i32) -> (i32, i32) {
    %c0_i32 = arith.constant 0 : i32
    %c0_i32_0 = arith.constant 0 : i32
    %c0_i32_1 = arith.constant 0 : i32
    return %c0_i32, %c0_i32_0 : i32, i32
  }
  func.func @transform_3(%arg0: i32) -> (i32, i32) {
    %c0_i32 = arith.constant 0 : i32
    %c0_i32_0 = arith.constant 0 : i32
    return %arg0, %c0_i32 : i32, i32
  }
}

module attributes {stable_mosaic.version = 11 : i64} {
  func.func @_z_kernel(%arg0: i32, %arg1: memref<512x128xbf16, #tpu.memory_space<vmem>>, %arg2: memref<128x128xbf16, #tpu.memory_space<vmem>>, %arg3: memref<1x128xf32, #tpu.memory_space<vmem>>, %arg4: memref<512x1xf32, #tpu.memory_space<vmem>>, %arg5: memref<512x128xbf16, #tpu.memory_space<vmem>>) attributes {dimension_semantics = [#tpu.dimension_semantics<parallel>], iteration_bounds = array<i64: 1>, scalar_prefetch = 0 : i64, scratch_operands = 0 : i64, tpu.core_type = #tpu.core_type<tc>, window_params = [{transform_indices = @transform_0, window_bounds = array<i64: 512, 128>}, {pipeline_mode = #tpu.pipeline_mode<synchronous>, transform_indices = @transform_1, window_bounds = array<i64: 128, 128>}, {pipeline_mode = #tpu.pipeline_mode<synchronous>, transform_indices = @transform_2, window_bounds = array<i64: 1, 128>}, {transform_indices = @transform_3, window_bounds = array<i64: 512, 1>}, {transform_indices = @transform_4, window_bounds = array<i64: 512, 128>}]} {
    %c0 = arith.constant 0 : index
    %c0_0 = arith.constant 0 : index
    %0 = vector.load %arg1[%c0, %c0_0] : memref<512x128xbf16, #tpu.memory_space<vmem>>, vector<512x128xbf16>
    %c0_1 = arith.constant 0 : index
    %c0_2 = arith.constant 0 : index
    %1 = vector.load %arg2[%c0_1, %c0_2] : memref<128x128xbf16, #tpu.memory_space<vmem>>, vector<128x128xbf16>
    %cst = arith.constant dense<0.000000e+00> : vector<512x128xf32>
    %2 = tpu.matmul %0, %1, %cst {dimension_numbers = #tpu.dot_dimension_numbers<[1], [0], [0], [1], [0, 0, 1, 1], [], []>} : vector<512x128xbf16>, vector<128x128xbf16>, vector<512x128xf32> -> vector<512x128xf32>
    %c0_3 = arith.constant 0 : index
    %c0_4 = arith.constant 0 : index
    %3 = vector.load %arg3[%c0_3, %c0_4] : memref<1x128xf32, #tpu.memory_space<vmem>>, vector<1x128xf32>
    %4 = vector.broadcast %3 : vector<1x128xf32> to vector<512x128xf32>
    %5 = arith.addf %2, %4 : vector<512x128xf32>
    %c0_5 = arith.constant 0 : index
    %c0_6 = arith.constant 0 : index
    %6 = vector.load %arg4[%c0_5, %c0_6] : memref<512x1xf32, #tpu.memory_space<vmem>>, vector<512x1xf32>
    %7 = vector.broadcast %6 : vector<512x1xf32> to vector<512x128xf32>
    %8 = arith.mulf %7, %5 : vector<512x128xf32>
    %9 = arith.truncf %8 : vector<512x128xf32> to vector<512x128xbf16>
    %c0_7 = arith.constant 0 : index
    %c0_8 = arith.constant 0 : index
    %10 = vector.load %arg5[%c0_7, %c0_8] : memref<512x128xbf16, #tpu.memory_space<vmem>>, vector<512x128xbf16>
    tpu.vector_store %arg5[%c0_7, %c0_8], %9 {strides = array<i32>} : memref<512x128xbf16, #tpu.memory_space<vmem>>, vector<512x128xbf16>,
    return
  }
  func.func @transform_0(%arg0: i32) -> (i32, i32) {
    %c0_i32 = arith.constant 0 : i32
    %c0_i32_0 = arith.constant 0 : i32
    return %arg0, %c0_i32 : i32, i32
  }
  func.func @transform_1(%arg0: i32) -> (i32, i32) {
    %c0_i32 = arith.constant 0 : i32
    %c0_i32_0 = arith.constant 0 : i32
    %c0_i32_1 = arith.constant 0 : i32
    return %c0_i32, %c0_i32_0 : i32, i32
  }
  func.func @transform_2(%arg0: i32) -> (i32, i32) {
    %c0_i32 = arith.constant 0 : i32
    %c0_i32_0 = arith.constant 0 : i32
    %c0_i32_1 = arith.constant 0 : i32
    return %c0_i32, %c0_i32_0 : i32, i32
  }
  func.func @transform_3(%arg0: i32) -> (i32, i32) {
    %c0_i32 = arith.constant 0 : i32
    %c0_i32_0 = arith.constant 0 : i32
    return %arg0, %c0_i32 : i32, i32
  }
  func.func @transform_4(%arg0: i32) -> (i32, i32) {
    %c0_i32 = arith.constant 0 : i32
    %c0_i32_0 = arith.constant 0 : i32
    return %arg0, %c0_i32 : i32, i32
  }
}

module attributes {stable_mosaic.version = 11 : i64} {
  func.func @_aggregate_kernel(%arg0: i32, %arg1: i32, %arg2: memref<1x1xi32, #tpu.memory_space<smem>>, %arg3: memref<1xi32, #tpu.memory_space<smem>>, %arg4: memref<512x512xi8, #tpu.memory_space<vmem>>, %arg5: memref<512x128xbf16, #tpu.memory_space<vmem>>, %arg6: memref<512x1xf32, #tpu.memory_space<vmem>>, %arg7: memref<512x128xbf16, #tpu.memory_space<vmem>>, %arg8: memref<512x128xf32, #tpu.memory_space<vmem>>) attributes {dimension_semantics = [#tpu.dimension_semantics<parallel>, #tpu.dimension_semantics<arbitrary>], iteration_bounds = array<i64: 1, 1>, scalar_prefetch = 2 : i64, scratch_operands = 1 : i64, tpu.core_type = #tpu.core_type<tc>, window_params = [{transform_indices = @transform_0, window_bounds = array<i64: 512, 512>}, {pipeline_mode = #tpu.pipeline_mode<synchronous>, transform_indices = @transform_1, window_bounds = array<i64: 512, 128>}, {transform_indices = @transform_2, window_bounds = array<i64: 512, 1>}, {transform_indices = @transform_3, window_bounds = array<i64: 512, 128>}]} {
    %c0_i32 = arith.constant 0 : i32
    %0 = arith.cmpi eq, %arg1, %c0_i32 : i32
    %1 = arith.extui %0 : i1 to i32
    %c0_i32_0 = arith.constant 0 : i32
    %2 = arith.cmpi ne, %1, %c0_i32_0 : i32
    scf.if %2 {
      %cst = arith.constant 0.000000e+00 : f32
      %11 = vector.broadcast %cst : f32 to vector<512x128xf32>
      %c0 = arith.constant 0 : index
      %c0_4 = arith.constant 0 : index
      %12 = vector.load %arg8[%c0, %c0_4] : memref<512x128xf32, #tpu.memory_space<vmem>>, vector<512x128xf32>
      tpu.vector_store %arg8[%c0, %c0_4], %11 {strides = array<i32>} : memref<512x128xf32, #tpu.memory_space<vmem>>, vector<512x128xf32>,
    } else {
    }
    %3 = arith.index_cast %arg0 : i32 to index
    %4 = memref.load %arg3[%3] : memref<1xi32, #tpu.memory_space<smem>>
    %5 = arith.cmpi slt, %arg1, %4 : i32
    %6 = arith.extui %5 : i1 to i32
    %c0_i32_1 = arith.constant 0 : i32
    %7 = arith.cmpi ne, %6, %c0_i32_1 : i32
    scf.if %7 {
      %c0 = arith.constant 0 : index
      %c0_4 = arith.constant 0 : index
      %11 = vector.load %arg4[%c0, %c0_4] : memref<512x512xi8, #tpu.memory_space<vmem>>, vector<512x512xi8>
      %12 = arith.sitofp %11 : vector<512x512xi8> to vector<512x512xf32>
      %13 = arith.truncf %12 : vector<512x512xf32> to vector<512x512xbf16>
      %14 = arith.index_cast %arg0 : i32 to index
      %15 = arith.index_cast %arg1 : i32 to index
      %16 = memref.load %arg2[%14, %15] : memref<1x1xi32, #tpu.memory_space<smem>>
      %c512_i32 = arith.constant 512 : i32
      %17 = arith.muli %16, %c512_i32 : i32
      %18 = tpu.assume_multiple %17, 512 : i32
      %19 = arith.index_cast %18 : i32 to index
      %c0_5 = arith.constant 0 : index
      %20 = vector.load %arg5[%19, %c0_5] : memref<512x128xbf16, #tpu.memory_space<vmem>>, vector<512x128xbf16>
      %c0_6 = arith.constant 0 : index
      %c0_7 = arith.constant 0 : index
      %21 = vector.load %arg8[%c0_6, %c0_7] : memref<512x128xf32, #tpu.memory_space<vmem>>, vector<512x128xf32>
      %cst = arith.constant dense<0.000000e+00> : vector<512x128xf32>
      %22 = tpu.matmul %13, %20, %cst {dimension_numbers = #tpu.dot_dimension_numbers<[1], [0], [0], [1], [0, 0, 1, 1], [], []>} : vector<512x512xbf16>, vector<512x128xbf16>, vector<512x128xf32> -> vector<512x128xf32>
      %23 = arith.addf %21, %22 : vector<512x128xf32>
      %c0_8 = arith.constant 0 : index
      %c0_9 = arith.constant 0 : index
      %24 = vector.load %arg8[%c0_8, %c0_9] : memref<512x128xf32, #tpu.memory_space<vmem>>, vector<512x128xf32>
      tpu.vector_store %arg8[%c0_8, %c0_9], %23 {strides = array<i32>} : memref<512x128xf32, #tpu.memory_space<vmem>>, vector<512x128xf32>,
    } else {
    }
    %c0_i32_2 = arith.constant 0 : i32
    %8 = arith.cmpi eq, %arg1, %c0_i32_2 : i32
    %9 = arith.extui %8 : i1 to i32
    %c0_i32_3 = arith.constant 0 : i32
    %10 = arith.cmpi ne, %9, %c0_i32_3 : i32
    scf.if %10 {
      %c0 = arith.constant 0 : index
      %c0_4 = arith.constant 0 : index
      %11 = vector.load %arg6[%c0, %c0_4] : memref<512x1xf32, #tpu.memory_space<vmem>>, vector<512x1xf32>
      %c0_5 = arith.constant 0 : index
      %c0_6 = arith.constant 0 : index
      %12 = vector.load %arg8[%c0_5, %c0_6] : memref<512x128xf32, #tpu.memory_space<vmem>>, vector<512x128xf32>
      %13 = vector.broadcast %11 : vector<512x1xf32> to vector<512x128xf32>
      %14 = arith.mulf %13, %12 : vector<512x128xf32>
      %cst = arith.constant 0.000000e+00 : f32
      %15 = vector.broadcast %cst : f32 to vector<512x128xf32>
      %16 = arith.maximumf %14, %15 : vector<512x128xf32>
      %17 = arith.truncf %16 : vector<512x128xf32> to vector<512x128xbf16>
      %c0_7 = arith.constant 0 : index
      %c0_8 = arith.constant 0 : index
      %18 = vector.load %arg7[%c0_7, %c0_8] : memref<512x128xbf16, #tpu.memory_space<vmem>>, vector<512x128xbf16>
      tpu.vector_store %arg7[%c0_7, %c0_8], %17 {strides = array<i32>} : memref<512x128xbf16, #tpu.memory_space<vmem>>, vector<512x128xbf16>,
    } else {
    }
    return
  }
  func.func @transform_0(%arg0: i32, %arg1: i32, %arg2: memref<1x1xi32, #tpu.memory_space<smem>>, %arg3: memref<1xi32, #tpu.memory_space<smem>>) -> (i32, i32) {
    %0 = arith.index_cast %arg0 : i32 to index
    %1 = arith.index_cast %arg1 : i32 to index
    %2 = memref.load %arg2[%0, %1] : memref<1x1xi32, #tpu.memory_space<smem>>
    %c0_i32 = arith.constant 0 : i32
    return %arg0, %2 : i32, i32
  }
  func.func @transform_1(%arg0: i32, %arg1: i32, %arg2: memref<1x1xi32, #tpu.memory_space<smem>>, %arg3: memref<1xi32, #tpu.memory_space<smem>>) -> (i32, i32) {
    %c0_i32 = arith.constant 0 : i32
    %c0_i32_0 = arith.constant 0 : i32
    %c0_i32_1 = arith.constant 0 : i32
    return %c0_i32, %c0_i32_0 : i32, i32
  }
  func.func @transform_2(%arg0: i32, %arg1: i32, %arg2: memref<1x1xi32, #tpu.memory_space<smem>>, %arg3: memref<1xi32, #tpu.memory_space<smem>>) -> (i32, i32) {
    %c0_i32 = arith.constant 0 : i32
    %c0_i32_0 = arith.constant 0 : i32
    return %arg0, %c0_i32 : i32, i32
  }
  func.func @transform_3(%arg0: i32, %arg1: i32, %arg2: memref<1x1xi32, #tpu.memory_space<smem>>, %arg3: memref<1xi32, #tpu.memory_space<smem>>) -> (i32, i32) {
    %c0_i32 = arith.constant 0 : i32
    %c0_i32_0 = arith.constant 0 : i32
    return %arg0, %c0_i32 : i32, i32
  }
}

module attributes {stable_mosaic.version = 11 : i64} {
  func.func @_readout_kernel(%arg0: i32, %arg1: memref<8x512xbf16, #tpu.memory_space<vmem>>, %arg2: memref<512x128xbf16, #tpu.memory_space<vmem>>, %arg3: memref<128x128xbf16, #tpu.memory_space<vmem>>, %arg4: memref<1x128xf32, #tpu.memory_space<vmem>>, %arg5: memref<128x128xbf16, #tpu.memory_space<vmem>>, %arg6: memref<1x128xf32, #tpu.memory_space<vmem>>, %arg7: memref<8x128xf32, #tpu.memory_space<vmem>>, %arg8: memref<8x128xf32, #tpu.memory_space<vmem>>) attributes {dimension_semantics = [#tpu.dimension_semantics<arbitrary>], iteration_bounds = array<i64: 1>, scalar_prefetch = 0 : i64, scratch_operands = 1 : i64, tpu.core_type = #tpu.core_type<tc>, window_params = [{transform_indices = @transform_0, window_bounds = array<i64: 8, 512>}, {transform_indices = @transform_1, window_bounds = array<i64: 512, 128>}, {pipeline_mode = #tpu.pipeline_mode<synchronous>, transform_indices = @transform_2, window_bounds = array<i64: 128, 128>}, {pipeline_mode = #tpu.pipeline_mode<synchronous>, transform_indices = @transform_3, window_bounds = array<i64: 1, 128>}, {pipeline_mode = #tpu.pipeline_mode<synchronous>, transform_indices = @transform_4, window_bounds = array<i64: 128, 128>}, {pipeline_mode = #tpu.pipeline_mode<synchronous>, transform_indices = @transform_5, window_bounds = array<i64: 1, 128>}, {pipeline_mode = #tpu.pipeline_mode<synchronous>, transform_indices = @transform_6, window_bounds = array<i64: 8, 128>}]} {
    %c0_i32 = arith.constant 0 : i32
    %0 = arith.cmpi eq, %arg0, %c0_i32 : i32
    %1 = arith.extui %0 : i1 to i32
    %c0_i32_0 = arith.constant 0 : i32
    %2 = arith.cmpi ne, %1, %c0_i32_0 : i32
    scf.if %2 {
      %cst_10 = arith.constant 0.000000e+00 : f32
      %12 = vector.broadcast %cst_10 : f32 to vector<8x128xf32>
      %c0_11 = arith.constant 0 : index
      %c0_12 = arith.constant 0 : index
      %13 = vector.load %arg8[%c0_11, %c0_12] : memref<8x128xf32, #tpu.memory_space<vmem>>, vector<8x128xf32>
      tpu.vector_store %arg8[%c0_11, %c0_12], %12 {strides = array<i32>} : memref<8x128xf32, #tpu.memory_space<vmem>>, vector<8x128xf32>,
    } else {
    }
    %c0 = arith.constant 0 : index
    %c0_1 = arith.constant 0 : index
    %3 = vector.load %arg8[%c0, %c0_1] : memref<8x128xf32, #tpu.memory_space<vmem>>, vector<8x128xf32>
    %c0_2 = arith.constant 0 : index
    %c0_3 = arith.constant 0 : index
    %4 = vector.load %arg1[%c0_2, %c0_3] : memref<8x512xbf16, #tpu.memory_space<vmem>>, vector<8x512xbf16>
    %c0_4 = arith.constant 0 : index
    %c0_5 = arith.constant 0 : index
    %5 = vector.load %arg2[%c0_4, %c0_5] : memref<512x128xbf16, #tpu.memory_space<vmem>>, vector<512x128xbf16>
    %cst = arith.constant dense<0.000000e+00> : vector<8x128xf32>
    %6 = tpu.matmul %4, %5, %cst {dimension_numbers = #tpu.dot_dimension_numbers<[1], [0], [0], [1], [0, 0, 1, 1], [], []>} : vector<8x512xbf16>, vector<512x128xbf16>, vector<8x128xf32> -> vector<8x128xf32>
    %7 = arith.addf %3, %6 : vector<8x128xf32>
    %c0_6 = arith.constant 0 : index
    %c0_7 = arith.constant 0 : index
    %8 = vector.load %arg8[%c0_6, %c0_7] : memref<8x128xf32, #tpu.memory_space<vmem>>, vector<8x128xf32>
    tpu.vector_store %arg8[%c0_6, %c0_7], %7 {strides = array<i32>} : memref<8x128xf32, #tpu.memory_space<vmem>>, vector<8x128xf32>,
    %c0_i32_8 = arith.constant 0 : i32
    %9 = arith.cmpi eq, %arg0, %c0_i32_8 : i32
    %10 = arith.extui %9 : i1 to i32
    %c0_i32_9 = arith.constant 0 : i32
    %11 = arith.cmpi ne, %10, %c0_i32_9 : i32
    scf.if %11 {
      %c0_10 = arith.constant 0 : index
      %c0_11 = arith.constant 0 : index
      %12 = vector.load %arg8[%c0_10, %c0_11] : memref<8x128xf32, #tpu.memory_space<vmem>>, vector<8x128xf32>
      %13 = arith.negf %12 : vector<8x128xf32>
      %14 = math.exp %13 : vector<8x128xf32>
      %cst_12 = arith.constant 1.000000e+00 : f32
      %15 = vector.broadcast %cst_12 : f32 to vector<8x128xf32>
      %16 = arith.addf %15, %14 : vector<8x128xf32>
      %17 = arith.divf %15, %16 : vector<8x128xf32>
      %18 = arith.truncf %17 : vector<8x128xf32> to vector<8x128xbf16>
      %c0_13 = arith.constant 0 : index
      %c0_14 = arith.constant 0 : index
      %19 = vector.load %arg3[%c0_13, %c0_14] : memref<128x128xbf16, #tpu.memory_space<vmem>>, vector<128x128xbf16>
      %cst_15 = arith.constant dense<0.000000e+00> : vector<8x128xf32>
      %20 = tpu.matmul %18, %19, %cst_15 {dimension_numbers = #tpu.dot_dimension_numbers<[1], [0], [0], [1], [0, 0, 1, 1], [], []>} : vector<8x128xbf16>, vector<128x128xbf16>, vector<8x128xf32> -> vector<8x128xf32>
      %c0_16 = arith.constant 0 : index
      %c0_17 = arith.constant 0 : index
      %21 = vector.load %arg4[%c0_16, %c0_17] : memref<1x128xf32, #tpu.memory_space<vmem>>, vector<1x128xf32>
      %22 = vector.broadcast %21 : vector<1x128xf32> to vector<8x128xf32>
      %23 = arith.addf %20, %22 : vector<8x128xf32>
      %cst_18 = arith.constant 0.000000e+00 : f32
      %24 = vector.broadcast %cst_18 : f32 to vector<8x128xf32>
      %25 = arith.maximumf %23, %24 : vector<8x128xf32>
      %26 = arith.truncf %25 : vector<8x128xf32> to vector<8x128xbf16>
      %c0_19 = arith.constant 0 : index
      %c0_20 = arith.constant 0 : index
      %27 = vector.load %arg5[%c0_19, %c0_20] : memref<128x128xbf16, #tpu.memory_space<vmem>>, vector<128x128xbf16>
      %cst_21 = arith.constant dense<0.000000e+00> : vector<8x128xf32>
      %28 = tpu.matmul %26, %27, %cst_21 {dimension_numbers = #tpu.dot_dimension_numbers<[1], [0], [0], [1], [0, 0, 1, 1], [], []>} : vector<8x128xbf16>, vector<128x128xbf16>, vector<8x128xf32> -> vector<8x128xf32>
      %c0_22 = arith.constant 0 : index
      %c0_23 = arith.constant 0 : index
      %29 = vector.load %arg6[%c0_22, %c0_23] : memref<1x128xf32, #tpu.memory_space<vmem>>, vector<1x128xf32>
      %30 = vector.broadcast %29 : vector<1x128xf32> to vector<8x128xf32>
      %31 = arith.addf %28, %30 : vector<8x128xf32>
      %c0_24 = arith.constant 0 : index
      %c0_25 = arith.constant 0 : index
      %32 = vector.load %arg7[%c0_24, %c0_25] : memref<8x128xf32, #tpu.memory_space<vmem>>, vector<8x128xf32>
      tpu.vector_store %arg7[%c0_24, %c0_25], %31 {strides = array<i32>} : memref<8x128xf32, #tpu.memory_space<vmem>>, vector<8x128xf32>,
    } else {
    }
    return
  }
  func.func @transform_0(%arg0: i32) -> (i32, i32) {
    %c0_i32 = arith.constant 0 : i32
    %c0_i32_0 = arith.constant 0 : i32
    return %c0_i32, %arg0 : i32, i32
  }
  func.func @transform_1(%arg0: i32) -> (i32, i32) {
    %c0_i32 = arith.constant 0 : i32
    %c0_i32_0 = arith.constant 0 : i32
    return %arg0, %c0_i32 : i32, i32
  }
  func.func @transform_2(%arg0: i32) -> (i32, i32) {
    %c0_i32 = arith.constant 0 : i32
    %c0_i32_0 = arith.constant 0 : i32
    %c0_i32_1 = arith.constant 0 : i32
    return %c0_i32, %c0_i32_0 : i32, i32
  }
  func.func @transform_3(%arg0: i32) -> (i32, i32) {
    %c0_i32 = arith.constant 0 : i32
    %c0_i32_0 = arith.constant 0 : i32
    %c0_i32_1 = arith.constant 0 : i32
    return %c0_i32, %c0_i32_0 : i32, i32
  }
  func.func @transform_4(%arg0: i32) -> (i32, i32) {
    %c0_i32 = arith.constant 0 : i32
    %c0_i32_0 = arith.constant 0 : i32
    %c0_i32_1 = arith.constant 0 : i32
    return %c0_i32, %c0_i32_0 : i32, i32
  }
  func.func @transform_5(%arg0: i32) -> (i32, i32) {
    %c0_i32 = arith.constant 0 : i32
    %c0_i32_0 = arith.constant 0 : i32
    %c0_i32_1 = arith.constant 0 : i32
    return %c0_i32, %c0_i32_0 : i32, i32
  }
  func.func @transform_6(%arg0: i32) -> (i32, i32) {
    %c0_i32 = arith.constant 0 : i32
    %c0_i32_0 = arith.constant 0 : i32
    %c0_i32_1 = arith.constant 0 : i32
    return %c0_i32, %c0_i32_0 : i32, i32
  }
}

</mosaic_0001>

<bundles_post_ra>
// kernel: gcn_forward.6
= control target key start
LH: loop header
LB: loop body
LE: loop exit
PB: predicated region body
PF: predicated region fallthrough
CT: control target
= control target key end

     0   :  { %s1860_s1 = inlined_call_operand.vmem [shape: bf16[128,128], index: 1, kind: input, shape index: {}]   ;;  %s1861_s0 = inlined_call_operand.vmem [shape: bf16[512,128], index: 0, kind: input, shape index: {}]   ;;  %s1862_s2 = inlined_call_operand.vmem [shape: f32[1,128], index: 2, kind: input, shape index: {}]   ;;  %s1863_s3 = inlined_call_operand.vmem [shape: bf16[512,128], index: 3, kind: output, shape index: {}]  }
   0x1   :  { %v1515_v0 = vld [vmem:[%s1860_s1 + $0x38] sm:$0xff]   ;;  %v1516_v1 = vld [vmem:[%s1860_s1 + $0x30] sm:$0xff]   ;;  %v1517_v2 = vld [vmem:[%s1860_s1 + $0x28] sm:$0xff]  }
   0x2   :  { %1419 = vmatprep.subr.bf16.mxu0 %v1515_v0  ;;  %1499 = vmatprep.subr.bf16.mxu1 %v1515_v0  ;;  %v1518_v3 = vld [vmem:[%s1860_s1 + $0x20] sm:$0xff]   ;;  %v1519_v6 = vld [vmem:[%s1860_s1 + $0x18] sm:$0xff]   ;;  %v1520_v7 = vld [vmem:[%s1860_s1 + $0x10] sm:$0xff]  }
   0x3   :  { %1420 = vmatpush3.bf16.msra.mxu0 %v1515_v0  ;;  %1507 = vmatpush3.bf16.msra.mxu1 %v1515_v0  ;;  %v1523_v4 = vld [vmem:[%s1861_s0] sm:$0xff]   ;;  %v1521_v8 = vld [vmem:[%s1860_s1 + $0x8] sm:$0xff]   ;;  %v1527_v12 = vld [vmem:[%s1861_s0 + $0x10] sm:$0xff]  }
   0x4   :  { %1421 = vmatprep.subr.bf16.mxu0 %v1516_v1  ;;  %1500 = vmatprep.subr.bf16.mxu1 %v1516_v1  ;;  %v1524_v5 = vld [vmem:[%s1861_s0 + $0x80] sm:$0xff]   ;;  %v1525_v10 = vld [vmem:[%s1861_s0 + $0x8] sm:$0xff]   ;;  %v1528_v13 = vld [vmem:[%s1861_s0 + $0x90] sm:$0xff]  }
   0x5   :  { %1435 = vmatprep.mubr.bf16.mxu0 %v1523_v4  ;;  %1467 = vmatprep.mubr.bf16.mxu1 %v1524_v5  ;;  %v1522_v9 = vld [vmem:[%s1860_s1] sm:$0xff]   ;;  %v1526_v11 = vld [vmem:[%s1861_s0 + $0x88] sm:$0xff]   ;;  %v1529_v14 = vld [vmem:[%s1861_s0 + $0x18] sm:$0xff]  }
   0x6   :  { %v1530_v15 = vld [vmem:[%s1861_s0 + $0x98] sm:$0xff]   ;;  %v1531_v16 = vld [vmem:[%s1861_s0 + $0x20] sm:$0xff]   ;;  %v1533_v18 = vld [vmem:[%s1861_s0 + $0x28] sm:$0xff]  }
   0x7   :  { %1422 = vmatpush3.bf16.msra.mxu0 %v1516_v1  ;;  %1508 = vmatpush3.bf16.msra.mxu1 %v1516_v1  ;;  %v1532_v17 = vld [vmem:[%s1861_s0 + $0xa0] sm:$0xff]   ;;  %v1534_v19 = vld [vmem:[%s1861_s0 + $0xa8] sm:$0xff]   ;;  %v1535_v20 = vld [vmem:[%s1861_s0 + $0x30] sm:$0xff]  }
   0x8   :  { %1423 = vmatprep.subr.bf16.mxu0 %v1517_v2  ;;  %1501 = vmatprep.subr.bf16.mxu1 %v1517_v2  ;;  %v1536_v21 = vld [vmem:[%s1861_s0 + $0xb0] sm:$0xff]   ;;  %v1537_v22 = vld [vmem:[%s1861_s0 + $0x38] sm:$0xff]   ;;  %v1539_v24 = vld [vmem:[%s1861_s0 + $0x40] sm:$0xff]  }
   0x9   :  { %v1538_v23 = vld [vmem:[%s1861_s0 + $0xb8] sm:$0xff]   ;;  %v1540_v25 = vld [vmem:[%s1861_s0 + $0xc0] sm:$0xff]   ;;  %v1541_v26 = vld [vmem:[%s1861_s0 + $0x48] sm:$0xff]  }
   0xa   :  { %v1542_v27 = vld [vmem:[%s1861_s0 + $0xc8] sm:$0xff]   ;;  %v1543_v28 = vld [vmem:[%s1861_s0 + $0x50] sm:$0xff]   ;;  %v1545_v30 = vld [vmem:[%s1861_s0 + $0x58] sm:$0xff]  }
   0xb   :  { %1424 = vmatpush3.bf16.msra.mxu0 %v1517_v2  ;;  %1509 = vmatpush3.bf16.msra.mxu1 %v1517_v2  ;;  %v1544_v29 = vld [vmem:[%s1861_s0 + $0xd0] sm:$0xff]   ;;  %v1546_v31 = vld [vmem:[%s1861_s0 + $0xd8] sm:$0xff]   ;;  %v1547_v32 = vld [vmem:[%s1861_s0 + $0x60] sm:$0xff]  }
   0xc   :  { %1425 = vmatprep.subr.bf16.mxu0 %v1518_v3  ;;  %1502 = vmatprep.subr.bf16.mxu1 %v1518_v3  ;;  %v1548_v33 = vld [vmem:[%s1861_s0 + $0xe0] sm:$0xff]   ;;  %v1549_v34 = vld [vmem:[%s1861_s0 + $0x68] sm:$0xff]   ;;  %v1551_v36 = vld [vmem:[%s1861_s0 + $0x70] sm:$0xff]  }
   0xd   :  { %v1550_v35 = vld [vmem:[%s1861_s0 + $0xe8] sm:$0xff]   ;;  %v1552_v37 = vld [vmem:[%s1861_s0 + $0xf0] sm:$0xff]   ;;  %v1553_v38 = vld [vmem:[%s1861_s0 + $0x78] sm:$0xff]  }
   0xe   :  { %v1554_v39 = vld [vmem:[%s1861_s0 + $0xf8] sm:$0xff]   ;;  %v1698_v40 = vld [vmem:[%s1862_s2] ss:$0 sm:$0xff] }
   0xf   :  { %1426 = vmatpush3.bf16.msra.mxu0 %v1518_v3  ;;  %1510 = vmatpush3.bf16.msra.mxu1 %v1518_v3 }
  0x10   :  { %1427 = vmatprep.subr.bf16.mxu0 %v1519_v6  ;;  %1503 = vmatprep.subr.bf16.mxu1 %v1519_v6 }
  0x13   :  { %1428 = vmatpush3.bf16.msra.mxu0 %v1519_v6  ;;  %1511 = vmatpush3.bf16.msra.mxu1 %v1519_v6 }
  0x14   :  { %1429 = vmatprep.subr.bf16.mxu0 %v1520_v7  ;;  %1504 = vmatprep.subr.bf16.mxu1 %v1520_v7 }
  0x17   :  { %1430 = vmatpush3.bf16.msra.mxu0 %v1520_v7  ;;  %1512 = vmatpush3.bf16.msra.mxu1 %v1520_v7 }
  0x18   :  { %1431 = vmatprep.subr.bf16.mxu0 %v1521_v8  ;;  %1505 = vmatprep.subr.bf16.mxu1 %v1521_v8 }
  0x1b   :  { %1432 = vmatpush3.bf16.msra.mxu0 %v1521_v8  ;;  %1513 = vmatpush3.bf16.msra.mxu1 %v1521_v8 }
  0x1c   :  { %1433 = vmatprep.subr.bf16.mxu0 %v1522_v9  ;;  %1506 = vmatprep.subr.bf16.mxu1 %v1522_v9 }
  0x1f   :  { %1434 = vmatpush3.bf16.msra.mxu0 %v1522_v9  ;;  %1514 = vmatpush3.bf16.msra.mxu1 %v1522_v9 }
  0x22   :  { %1436 = vmatmul.mubr.bf16.vlgmr.msra.gmra.mxu0 %v1525_v10  ;;  %1468 = vmatmul.mubr.bf16.vlgmr.msra.gmra.mxu1 %v1526_v11 }
  0x23   :  { %1439 = vmatprep.mubr.bf16.mxu0 %v1527_v12  ;;  %1471 = vmatprep.mubr.bf16.mxu1 %v1528_v13 }
  0x2a   :  { %1440 = vmatmul.mubr.bf16.gmra.mxu0 %v1529_v14  ;;  %1472 = vmatmul.mubr.bf16.gmra.mxu1 %v1530_v15 }
  0x2b   :  { %1443 = vmatprep.mubr.bf16.mxu0 %v1531_v16  ;;  %1475 = vmatprep.mubr.bf16.mxu1 %v1532_v17 }
  0x32   :  { %1444 = vmatmul.mubr.bf16.gmra.mxu0 %v1533_v18  ;;  %1476 = vmatmul.mubr.bf16.gmra.mxu1 %v1534_v19 }
  0x33   :  { %1447 = vmatprep.mubr.bf16.mxu0 %v1535_v20  ;;  %1479 = vmatprep.mubr.bf16.mxu1 %v1536_v21 }
  0x3a   :  { %1448 = vmatmul.mubr.bf16.gmra.mxu0 %v1537_v22  ;;  %1480 = vmatmul.mubr.bf16.gmra.mxu1 %v1538_v23 }
  0x3b   :  { %1451 = vmatprep.mubr.bf16.mxu0 %v1539_v24  ;;  %1483 = vmatprep.mubr.bf16.mxu1 %v1540_v25 }
  0x42   :  { %1452 = vmatmul.mubr.bf16.gmra.mxu0 %v1541_v26  ;;  %1484 = vmatmul.mubr.bf16.gmra.mxu1 %v1542_v27 }
  0x43   :  { %1455 = vmatprep.mubr.bf16.mxu0 %v1543_v28  ;;  %1487 = vmatprep.mubr.bf16.mxu1 %v1544_v29 }
  0x4a   :  { %1456 = vmatmul.mubr.bf16.gmra.mxu0 %v1545_v30  ;;  %1488 = vmatmul.mubr.bf16.gmra.mxu1 %v1546_v31 }
  0x4b   :  { %1459 = vmatprep.mubr.bf16.mxu0 %v1547_v32  ;;  %1491 = vmatprep.mubr.bf16.mxu1 %v1548_v33 }
  0x52   :  { %1460 = vmatmul.mubr.bf16.gmra.mxu0 %v1549_v34  ;;  %1492 = vmatmul.mubr.bf16.gmra.mxu1 %v1550_v35 }
  0x53   :  { %1463 = vmatprep.mubr.bf16.mxu0 %v1551_v36  ;;  %1495 = vmatprep.mubr.bf16.mxu1 %v1552_v37 }
  0x5a   :  { %1464 = vmatmul.mubr.bf16.gmra.mxu0 %v1553_v38  ;;  %1496 = vmatmul.mubr.bf16.gmra.mxu1 %v1554_v39 }
  0xe2   :  { %v1437_v41 = vpop.f32.mrf.mxu0  ;;  %v1469_v42 = vpop.f32.mrf.mxu1 }
  0xe3   :  { %v385_v43 = vadd.f32 %v1437_v41, %v1698_v40  ;;  %v513_v44 = vadd.f32 %v1469_v42, %v1698_v40 }
  0xe4   :  { %v376_v45 = vpop.f32.mrf.mxu0  ;;  %v504_v46 = vpop.f32.mrf.mxu1 }
  0xe5   :  { %v377_v47 = vadd.f32 %v1698_v40, %v376_v45  ;;  %v505_v48 = vadd.f32 %v1698_v40, %v504_v46  ;;  %v633_v53 = vmax.f32 %v385_v43, 0.0  ;;  %v665_v54 = vmax.f32 %v513_v44, 0.0 }
  0xe6   :  { %v1438_v49 = vpop.f32.mrf.mxu0  ;;  %v1470_v50 = vpop.f32.mrf.mxu1 }
  0xe7   :  { %v388_v51 = vadd.f32 %v1438_v49, %v1698_v40  ;;  %v516_v52 = vadd.f32 %v1470_v50, %v1698_v40  ;;  %v631_v61 = vmax.f32 %v377_v47, 0.0  ;;  %v663_v62 = vmax.f32 %v505_v48, 0.0 }
  0xe8   :  { %v379_v55 = vpop.f32.mrf.mxu0  ;;  %v507_v56 = vpop.f32.mrf.mxu1 }
  0xe9   :  { %v634_v57 = vmax.f32 %v388_v51, 0.0  ;;  %v666_v58 = vmax.f32 %v516_v52, 0.0  ;;  %v380_v59 = vadd.f32 %v1698_v40, %v379_v55  ;;  %v508_v60 = vadd.f32 %v1698_v40, %v507_v56 }
  0xea   :  { %v1441_v63 = vpop.f32.mrf.mxu0  ;;  %v1473_v0 = vpop.f32.mrf.mxu1 }
  0xeb   :  { %v1196_v1 = vpack.c.bf16 %v634_v57, %v633_v53  ;;  %v1276_v2 = vpack.c.bf16 %v666_v58, %v665_v54  ;;  %v632_v3 = vmax.f32 %v380_v59, 0.0  ;;  %v664_v4 = vmax.f32 %v508_v60, 0.0 }
  0xec   :  { %v401_v5 = vadd.f32 %v1441_v63, %v1698_v40  ;;  %v529_v6 = vadd.f32 %v1473_v0, %v1698_v40  ;;  %v392_v7 = vpop.f32.mrf.mxu0  ;;  %v520_v8 = vpop.f32.mrf.mxu1 }
  0xed   :  { %1348 = vst [vmem:[%s1863_s3 + $0x8] sm:$0xff] %v1196_v1   ;;  %1364 = vst [vmem:[%s1863_s3 + $0x88] sm:$0xff] %v1276_v2   ;;  %v1191_v9 = vpack.c.bf16 %v632_v3, %v631_v61  ;;  %v1271_v10 = vpack.c.bf16 %v664_v4, %v663_v62  ;;  %v393_v11 = vadd.f32 %v1698_v40, %v392_v7 }
  0xee   :  { %v521_v12 = vadd.f32 %v1698_v40, %v520_v8  ;;  %v1442_v13 = vpop.f32.mrf.mxu0  ;;  %v1474_v14 = vpop.f32.mrf.mxu1  ;;  %v637_v17 = vmax.f32 %v401_v5, 0.0  ;;  %v669_v18 = vmax.f32 %v529_v6, 0.0 }
  0xef   :  { %1192 = vst [vmem:[%s1863_s3] sm:$0xff] %v1191_v9   ;;  %1363 = vst [vmem:[%s1863_s3 + $0x80] sm:$0xff] %v1271_v10   ;;  %v404_v15 = vadd.f32 %v1442_v13, %v1698_v40  ;;  %v532_v16 = vadd.f32 %v1474_v14, %v1698_v40  ;;  %v635_v25 = vmax.f32 %v393_v11, 0.0 }
  0xf0   :  { %v395_v19 = vpop.f32.mrf.mxu0  ;;  %v523_v20 = vpop.f32.mrf.mxu1  ;;  %v667_v26 = vmax.f32 %v521_v12, 0.0 }
  0xf1   :  { %v638_v21 = vmax.f32 %v404_v15, 0.0  ;;  %v670_v22 = vmax.f32 %v532_v16, 0.0  ;;  %v396_v23 = vadd.f32 %v1698_v40, %v395_v19  ;;  %v524_v24 = vadd.f32 %v1698_v40, %v523_v20 }
  0xf2   :  { %v1445_v27 = vpop.f32.mrf.mxu0  ;;  %v1477_v28 = vpop.f32.mrf.mxu1 }
  0xf3   :  { %v1206_v29 = vpack.c.bf16 %v638_v21, %v637_v17  ;;  %v1286_v30 = vpack.c.bf16 %v670_v22, %v669_v18  ;;  %v636_v31 = vmax.f32 %v396_v23, 0.0  ;;  %v668_v32 = vmax.f32 %v524_v24, 0.0 }
  0xf4   :  { %v417_v33 = vadd.f32 %v1445_v27, %v1698_v40  ;;  %v545_v34 = vadd.f32 %v1477_v28, %v1698_v40  ;;  %v408_v35 = vpop.f32.mrf.mxu0  ;;  %v536_v36 = vpop.f32.mrf.mxu1 }
  0xf5   :  { %1350 = vst [vmem:[%s1863_s3 + $0x18] sm:$0xff] %v1206_v29   ;;  %1366 = vst [vmem:[%s1863_s3 + $0x98] sm:$0xff] %v1286_v30   ;;  %v1201_v37 = vpack.c.bf16 %v636_v31, %v635_v25  ;;  %v1281_v38 = vpack.c.bf16 %v668_v32, %v667_v26  ;;  %v409_v39 = vadd.f32 %v1698_v40, %v408_v35 }
  0xf6   :  { %v537_v41 = vadd.f32 %v1698_v40, %v536_v36  ;;  %v1446_v42 = vpop.f32.mrf.mxu0  ;;  %v1478_v43 = vpop.f32.mrf.mxu1  ;;  %v641_v46 = vmax.f32 %v417_v33, 0.0  ;;  %v673_v47 = vmax.f32 %v545_v34, 0.0 }
  0xf7   :  { %1349 = vst [vmem:[%s1863_s3 + $0x10] sm:$0xff] %v1201_v37   ;;  %1365 = vst [vmem:[%s1863_s3 + $0x90] sm:$0xff] %v1281_v38   ;;  %v420_v44 = vadd.f32 %v1446_v42, %v1698_v40  ;;  %v548_v45 = vadd.f32 %v1478_v43, %v1698_v40  ;;  %v639_v54 = vmax.f32 %v409_v39, 0.0 }
  0xf8   :  { %v411_v48 = vpop.f32.mrf.mxu0  ;;  %v539_v49 = vpop.f32.mrf.mxu1  ;;  %v671_v55 = vmax.f32 %v537_v41, 0.0 }
  0xf9   :  { %v642_v50 = vmax.f32 %v420_v44, 0.0  ;;  %v674_v51 = vmax.f32 %v548_v45, 0.0  ;;  %v412_v52 = vadd.f32 %v1698_v40, %v411_v48  ;;  %v540_v53 = vadd.f32 %v1698_v40, %v539_v49 }
  0xfa   :  { %v1449_v56 = vpop.f32.mrf.mxu0  ;;  %v1481_v57 = vpop.f32.mrf.mxu1 }
  0xfb   :  { %v1216_v58 = vpack.c.bf16 %v642_v50, %v641_v46  ;;  %v1296_v59 = vpack.c.bf16 %v674_v51, %v673_v47  ;;  %v640_v60 = vmax.f32 %v412_v52, 0.0  ;;  %v672_v61 = vmax.f32 %v540_v53, 0.0 }
  0xfc   :  { %v433_v62 = vadd.f32 %v1449_v56, %v1698_v40  ;;  %v561_v63 = vadd.f32 %v1481_v57, %v1698_v40  ;;  %v424_v0 = vpop.f32.mrf.mxu0  ;;  %v552_v1 = vpop.f32.mrf.mxu1 }
  0xfd   :  { %1352 = vst [vmem:[%s1863_s3 + $0x28] sm:$0xff] %v1216_v58   ;;  %1368 = vst [vmem:[%s1863_s3 + $0xa8] sm:$0xff] %v1296_v59   ;;  %v1211_v2 = vpack.c.bf16 %v640_v60, %v639_v54  ;;  %v1291_v3 = vpack.c.bf16 %v672_v61, %v671_v55  ;;  %v425_v4 = vadd.f32 %v1698_v40, %v424_v0 }
  0xfe   :  { %v553_v5 = vadd.f32 %v1698_v40, %v552_v1  ;;  %v1450_v6 = vpop.f32.mrf.mxu0  ;;  %v1482_v7 = vpop.f32.mrf.mxu1  ;;  %v645_v10 = vmax.f32 %v433_v62, 0.0  ;;  %v677_v11 = vmax.f32 %v561_v63, 0.0 }
  0xff   :  { %1351 = vst [vmem:[%s1863_s3 + $0x20] sm:$0xff] %v1211_v2   ;;  %1367 = vst [vmem:[%s1863_s3 + $0xa0] sm:$0xff] %v1291_v3   ;;  %v436_v8 = vadd.f32 %v1450_v6, %v1698_v40  ;;  %v564_v9 = vadd.f32 %v1482_v7, %v1698_v40  ;;  %v643_v18 = vmax.f32 %v425_v4, 0.0 }
 0x100   :  { %v427_v12 = vpop.f32.mrf.mxu0  ;;  %v555_v13 = vpop.f32.mrf.mxu1  ;;  %v675_v19 = vmax.f32 %v553_v5, 0.0 }
 0x101   :  { %v646_v14 = vmax.f32 %v436_v8, 0.0  ;;  %v678_v15 = vmax.f32 %v564_v9, 0.0  ;;  %v428_v16 = vadd.f32 %v1698_v40, %v427_v12  ;;  %v556_v17 = vadd.f32 %v1698_v40, %v555_v13 }
 0x102   :  { %v1453_v20 = vpop.f32.mrf.mxu0  ;;  %v1485_v21 = vpop.f32.mrf.mxu1 }
 0x103   :  { %v1226_v22 = vpack.c.bf16 %v646_v14, %v645_v10  ;;  %v1306_v23 = vpack.c.bf16 %v678_v15, %v677_v11  ;;  %v644_v24 = vmax.f32 %v428_v16, 0.0  ;;  %v676_v25 = vmax.f32 %v556_v17, 0.0 }
 0x104   :  { %v449_v26 = vadd.f32 %v1453_v20, %v1698_v40  ;;  %v577_v27 = vadd.f32 %v1485_v21, %v1698_v40  ;;  %v440_v28 = vpop.f32.mrf.mxu0  ;;  %v568_v29 = vpop.f32.mrf.mxu1 }
 0x105   :  { %1354 = vst [vmem:[%s1863_s3 + $0x38] sm:$0xff] %v1226_v22   ;;  %1370 = vst [vmem:[%s1863_s3 + $0xb8] sm:$0xff] %v1306_v23   ;;  %v1221_v30 = vpack.c.bf16 %v644_v24, %v643_v18  ;;  %v1301_v31 = vpack.c.bf16 %v676_v25, %v675_v19  ;;  %v441_v32 = vadd.f32 %v1698_v40, %v440_v28 }
 0x106   :  { %v569_v33 = vadd.f32 %v1698_v40, %v568_v29  ;;  %v1454_v34 = vpop.f32.mrf.mxu0  ;;  %v1486_v35 = vpop.f32.mrf.mxu1  ;;  %v649_v38 = vmax.f32 %v449_v26, 0.0  ;;  %v681_v39 = vmax.f32 %v577_v27, 0.0 }
 0x107   :  { %1353 = vst [vmem:[%s1863_s3 + $0x30] sm:$0xff] %v1221_v30   ;;  %1369 = vst [vmem:[%s1863_s3 + $0xb0] sm:$0xff] %v1301_v31   ;;  %v452_v36 = vadd.f32 %v1454_v34, %v1698_v40  ;;  %v580_v37 = vadd.f32 %v1486_v35, %v1698_v40  ;;  %v647_v47 = vmax.f32 %v441_v32, 0.0 }
 0x108   :  { %v443_v41 = vpop.f32.mrf.mxu0  ;;  %v571_v42 = vpop.f32.mrf.mxu1  ;;  %v679_v48 = vmax.f32 %v569_v33, 0.0 }
 0x109   :  { %v650_v43 = vmax.f32 %v452_v36, 0.0  ;;  %v682_v44 = vmax.f32 %v580_v37, 0.0  ;;  %v444_v45 = vadd.f32 %v1698_v40, %v443_v41  ;;  %v572_v46 = vadd.f32 %v1698_v40, %v571_v42 }
 0x10a   :  { %v1457_v49 = vpop.f32.mrf.mxu0  ;;  %v1489_v50 = vpop.f32.mrf.mxu1 }
 0x10b   :  { %v1236_v51 = vpack.c.bf16 %v650_v43, %v649_v38  ;;  %v1316_v52 = vpack.c.bf16 %v682_v44, %v681_v39  ;;  %v648_v53 = vmax.f32 %v444_v45, 0.0  ;;  %v680_v54 = vmax.f32 %v572_v46, 0.0 }
 0x10c   :  { %v465_v55 = vadd.f32 %v1457_v49, %v1698_v40  ;;  %v593_v56 = vadd.f32 %v1489_v50, %v1698_v40  ;;  %v456_v57 = vpop.f32.mrf.mxu0  ;;  %v584_v58 = vpop.f32.mrf.mxu1 }
 0x10d   :  { %1356 = vst [vmem:[%s1863_s3 + $0x48] sm:$0xff] %v1236_v51   ;;  %1372 = vst [vmem:[%s1863_s3 + $0xc8] sm:$0xff] %v1316_v52   ;;  %v1231_v59 = vpack.c.bf16 %v648_v53, %v647_v47  ;;  %v1311_v60 = vpack.c.bf16 %v680_v54, %v679_v48  ;;  %v457_v61 = vadd.f32 %v1698_v40, %v456_v57 }
 0x10e   :  { %v585_v62 = vadd.f32 %v1698_v40, %v584_v58  ;;  %v1458_v63 = vpop.f32.mrf.mxu0  ;;  %v1490_v0 = vpop.f32.mrf.mxu1  ;;  %v653_v3 = vmax.f32 %v465_v55, 0.0  ;;  %v685_v4 = vmax.f32 %v593_v56, 0.0 }
 0x10f   :  { %1355 = vst [vmem:[%s1863_s3 + $0x40] sm:$0xff] %v1231_v59   ;;  %1371 = vst [vmem:[%s1863_s3 + $0xc0] sm:$0xff] %v1311_v60   ;;  %v468_v1 = vadd.f32 %v1458_v63, %v1698_v40  ;;  %v596_v2 = vadd.f32 %v1490_v0, %v1698_v40  ;;  %v651_v11 = vmax.f32 %v457_v61, 0.0 }
 0x110   :  { %v459_v5 = vpop.f32.mrf.mxu0  ;;  %v587_v6 = vpop.f32.mrf.mxu1  ;;  %v683_v12 = vmax.f32 %v585_v62, 0.0 }
 0x111   :  { %v654_v7 = vmax.f32 %v468_v1, 0.0  ;;  %v686_v8 = vmax.f32 %v596_v2, 0.0  ;;  %v460_v9 = vadd.f32 %v1698_v40, %v459_v5  ;;  %v588_v10 = vadd.f32 %v1698_v40, %v587_v6 }
 0x112   :  { %v1461_v13 = vpop.f32.mrf.mxu0  ;;  %v1493_v14 = vpop.f32.mrf.mxu1 }
 0x113   :  { %v1246_v15 = vpack.c.bf16 %v654_v7, %v653_v3  ;;  %v1326_v16 = vpack.c.bf16 %v686_v8, %v685_v4  ;;  %v652_v17 = vmax.f32 %v460_v9, 0.0  ;;  %v684_v18 = vmax.f32 %v588_v10, 0.0 }
 0x114   :  { %v481_v19 = vadd.f32 %v1461_v13, %v1698_v40  ;;  %v609_v20 = vadd.f32 %v1493_v14, %v1698_v40  ;;  %v472_v21 = vpop.f32.mrf.mxu0  ;;  %v600_v22 = vpop.f32.mrf.mxu1 }
 0x115   :  { %1358 = vst [vmem:[%s1863_s3 + $0x58] sm:$0xff] %v1246_v15   ;;  %1374 = vst [vmem:[%s1863_s3 + $0xd8] sm:$0xff] %v1326_v16   ;;  %v1241_v23 = vpack.c.bf16 %v652_v17, %v651_v11  ;;  %v1321_v24 = vpack.c.bf16 %v684_v18, %v683_v12  ;;  %v473_v25 = vadd.f32 %v1698_v40, %v472_v21 }
 0x116   :  { %v601_v26 = vadd.f32 %v1698_v40, %v600_v22  ;;  %v1462_v27 = vpop.f32.mrf.mxu0  ;;  %v1494_v28 = vpop.f32.mrf.mxu1  ;;  %v657_v31 = vmax.f32 %v481_v19, 0.0  ;;  %v689_v32 = vmax.f32 %v609_v20, 0.0 }
 0x117   :  { %1357 = vst [vmem:[%s1863_s3 + $0x50] sm:$0xff] %v1241_v23   ;;  %1373 = vst [vmem:[%s1863_s3 + $0xd0] sm:$0xff] %v1321_v24   ;;  %v484_v29 = vadd.f32 %v1462_v27, %v1698_v40  ;;  %v612_v30 = vadd.f32 %v1494_v28, %v1698_v40  ;;  %v655_v39 = vmax.f32 %v473_v25, 0.0 }
 0x118   :  { %v475_v33 = vpop.f32.mrf.mxu0  ;;  %v603_v34 = vpop.f32.mrf.mxu1  ;;  %v687_v41 = vmax.f32 %v601_v26, 0.0 }
 0x119   :  { %v658_v35 = vmax.f32 %v484_v29, 0.0  ;;  %v690_v36 = vmax.f32 %v612_v30, 0.0  ;;  %v476_v37 = vadd.f32 %v1698_v40, %v475_v33  ;;  %v604_v38 = vadd.f32 %v1698_v40, %v603_v34 }
 0x11a   :  { %v1465_v42 = vpop.f32.mrf.mxu0  ;;  %v1497_v43 = vpop.f32.mrf.mxu1 }
 0x11b   :  { %v1256_v44 = vpack.c.bf16 %v658_v35, %v657_v31  ;;  %v1336_v45 = vpack.c.bf16 %v690_v36, %v689_v32  ;;  %v656_v46 = vmax.f32 %v476_v37, 0.0  ;;  %v688_v47 = vmax.f32 %v604_v38, 0.0 }
 0x11c   :  { %v497_v48 = vadd.f32 %v1465_v42, %v1698_v40  ;;  %v625_v49 = vadd.f32 %v1497_v43, %v1698_v40  ;;  %v488_v50 = vpop.f32.mrf.mxu0  ;;  %v616_v51 = vpop.f32.mrf.mxu1 }
 0x11d   :  { %1360 = vst [vmem:[%s1863_s3 + $0x68] sm:$0xff] %v1256_v44   ;;  %1376 = vst [vmem:[%s1863_s3 + $0xe8] sm:$0xff] %v1336_v45   ;;  %v1251_v52 = vpack.c.bf16 %v656_v46, %v655_v39  ;;  %v1331_v53 = vpack.c.bf16 %v688_v47, %v687_v41  ;;  %v489_v54 = vadd.f32 %v1698_v40, %v488_v50 }
 0x11e   :  { %v617_v55 = vadd.f32 %v1698_v40, %v616_v51  ;;  %v1466_v56 = vpop.f32.mrf.mxu0  ;;  %v1498_v57 = vpop.f32.mrf.mxu1  ;;  %v661_v60 = vmax.f32 %v497_v48, 0.0  ;;  %v693_v61 = vmax.f32 %v625_v49, 0.0 }
 0x11f   :  { %1359 = vst [vmem:[%s1863_s3 + $0x60] sm:$0xff] %v1251_v52   ;;  %1375 = vst [vmem:[%s1863_s3 + $0xe0] sm:$0xff] %v1331_v53   ;;  %v500_v58 = vadd.f32 %v1466_v56, %v1698_v40  ;;  %v628_v59 = vadd.f32 %v1498_v57, %v1698_v40  ;;  %v659_v4 = vmax.f32 %v489_v54, 0.0 }
 0x120   :  { %v491_v62 = vpop.f32.mrf.mxu0  ;;  %v619_v63 = vpop.f32.mrf.mxu1  ;;  %v691_v5 = vmax.f32 %v617_v55, 0.0 }
 0x121   :  { %v662_v0 = vmax.f32 %v500_v58, 0.0  ;;  %v694_v1 = vmax.f32 %v628_v59, 0.0  ;;  %v492_v2 = vadd.f32 %v1698_v40, %v491_v62  ;;  %v620_v3 = vadd.f32 %v1698_v40, %v619_v63 }
 0x123   :  { %v1266_v6 = vpack.c.bf16 %v662_v0, %v661_v60  ;;  %v1346_v7 = vpack.c.bf16 %v694_v1, %v693_v61  ;;  %v660_v8 = vmax.f32 %v492_v2, 0.0  ;;  %v692_v9 = vmax.f32 %v620_v3, 0.0 }
 0x125   :  { %1362 = vst [vmem:[%s1863_s3 + $0x78] sm:$0xff] %v1266_v6   ;;  %1378 = vst [vmem:[%s1863_s3 + $0xf8] sm:$0xff] %v1346_v7   ;;  %v1261_v10 = vpack.c.bf16 %v660_v8, %v659_v4  ;;  %v1341_v11 = vpack.c.bf16 %v692_v9, %v691_v5 }
 0x127   :  { %1361 = vst [vmem:[%s1863_s3 + $0x70] sm:$0xff] %v1261_v10   ;;  %1377 = vst [vmem:[%s1863_s3 + $0xf0] sm:$0xff] %v1341_v11  }

// kernel: gcn_forward.11
= control target key start
LH: loop header
LB: loop body
LE: loop exit
PB: predicated region body
PF: predicated region fallthrough
CT: control target
= control target key end

     0   :  { %v839_v39 = vmov 0.0   ;;  %vm840_vm0 = vmmov 0   ;;  %s1053_s1 = inlined_call_operand.vmem [shape: bf16[512,128], index: 1, kind: input, shape index: {}]   ;;  %s1054_s0 = inlined_call_operand.vmem [shape: bf16[8,512], index: 0, kind: input, shape index: {}]   ;;  %s1055_s2 = inlined_call_operand.vmem [shape: bf16[128,128], index: 2, kind: input, shape index: {}]   ;;  %s1056_s4 = inlined_call_operand.vmem [shape: bf16[128,128], index: 4, kind: input, shape index: {}]   ;;  %s1057_s3 = inlined_call_operand.vmem [shape: f32[1,128], index: 3, kind: input, shape index: {}]   ;;  %s1058_s5 = inlined_call_operand.vmem [shape: f32[1,128], index: 5, kind: input, shape index: {}]   ;;  %s1059_s6 = inlined_call_operand.vmem [shape: f32[8,128], index: 6, kind: output, shape index: {}]  }
   0x1   :  { %v783_v0 = vld [vmem:[%s1053_s1 + $0x78] sm:$0xff]   ;;  %v787_v4 = vld [vmem:[%s1053_s1 + $0x70] sm:$0xff]   ;;  %v791_v8 = vld [vmem:[%s1053_s1 + $0x68] sm:$0xff]  }
   0x2   :  { %v784_v1 = vld [vmem:[%s1053_s1 + $0xf8] sm:$0xff]   ;;  %679 = vmatprep.subr.bf16.mxu0 %v783_v0  ;;  %v788_v5 = vld [vmem:[%s1053_s1 + $0xf0] sm:$0xff]   ;;  %v792_v9 = vld [vmem:[%s1053_s1 + $0xe8] sm:$0xff]  }
   0x3   :  { %v785_v2 = vld [vmem:[%s1053_s1 + $0x38] sm:$0xff]   ;;  %701 = vmatprep.subr.bf16.mxu1 %v784_v1  ;;  %v789_v6 = vld [vmem:[%s1053_s1 + $0x30] sm:$0xff]   ;;  %v793_v10 = vld [vmem:[%s1053_s1 + $0x28] sm:$0xff]  }
   0x4   :  { %v786_v3 = vld [vmem:[%s1053_s1 + $0xb8] sm:$0xff]   ;;  %680 = vmatpush3.bf16.msra.mxu0 %v785_v2  ;;  %v790_v7 = vld [vmem:[%s1053_s1 + $0xb0] sm:$0xff]   ;;  %v794_v11 = vld [vmem:[%s1053_s1 + $0xa8] sm:$0xff]  }
   0x5   :  { %702 = vmatpush3.bf16.msra.mxu1 %v786_v3  ;;  %681 = vmatprep.subr.bf16.mxu0 %v787_v4  ;;  %v795_v12 = vld [vmem:[%s1053_s1 + $0x60] sm:$0xff]   ;;  %v799_v16 = vld [vmem:[%s1053_s1 + $0x58] sm:$0xff]   ;;  %v803_v20 = vld [vmem:[%s1053_s1 + $0x50] sm:$0xff]  }
   0x6   :  { %703 = vmatprep.subr.bf16.mxu1 %v788_v5  ;;  %v796_v13 = vld [vmem:[%s1053_s1 + $0xe0] sm:$0xff]   ;;  %v800_v17 = vld [vmem:[%s1053_s1 + $0xd8] sm:$0xff]   ;;  %v804_v21 = vld [vmem:[%s1053_s1 + $0xd0] sm:$0xff]  }
   0x7   :  { %v797_v14 = vld [vmem:[%s1053_s1 + $0x20] sm:$0xff]   ;;  %v801_v18 = vld [vmem:[%s1053_s1 + $0x18] sm:$0xff]   ;;  %v805_v22 = vld [vmem:[%s1053_s1 + $0x10] sm:$0xff]  }
   0x8   :  { %682 = vmatpush3.bf16.msra.mxu0 %v789_v6  ;;  %v798_v15 = vld [vmem:[%s1053_s1 + $0xa0] sm:$0xff]   ;;  %v802_v19 = vld [vmem:[%s1053_s1 + $0x98] sm:$0xff]   ;;  %v806_v23 = vld [vmem:[%s1053_s1 + $0x90] sm:$0xff]  }
   0x9   :  { %704 = vmatpush3.bf16.msra.mxu1 %v790_v7  ;;  %683 = vmatprep.subr.bf16.mxu0 %v791_v8  ;;  %v807_v24 = vld [vmem:[%s1053_s1 + $0x48] sm:$0xff]   ;;  %v811_v28 = vld [vmem:[%s1053_s1 + $0x40] sm:$0xff]   ;;  %v819_v38 = vld [vmem:[%s1055_s2 + $0x38] sm:$0xff]  }
   0xa   :  { %705 = vmatprep.subr.bf16.mxu1 %v792_v9  ;;  %v808_v25 = vld [vmem:[%s1053_s1 + $0xc8] sm:$0xff]   ;;  %v812_v29 = vld [vmem:[%s1053_s1 + $0xc0] sm:$0xff]   ;;  %v820_v40 = vld [vmem:[%s1055_s2 + $0x30] sm:$0xff]  }
   0xb   :  { %v809_v26 = vld [vmem:[%s1053_s1 + $0x8] sm:$0xff]   ;;  %v813_v30 = vld [vmem:[%s1053_s1] sm:$0xff]   ;;  %v823_v43 = vld [vmem:[%s1055_s2 + $0x18] sm:$0xff]  }
   0xc   :  { %684 = vmatpush3.bf16.msra.mxu0 %v793_v10  ;;  %v810_v27 = vld [vmem:[%s1053_s1 + $0x88] sm:$0xff]   ;;  %v814_v31 = vld [vmem:[%s1053_s1 + $0x80] sm:$0xff]   ;;  %v824_v44 = vld [vmem:[%s1055_s2 + $0x10] sm:$0xff]  }
   0xd   :  { %706 = vmatpush3.bf16.msra.mxu1 %v794_v11  ;;  %685 = vmatprep.subr.bf16.mxu0 %v795_v12  ;;  %v30_v32 = vld [vmem:[%s1054_s0] sm:$0xff]  ;;  %v31_v33 = vld [vmem:[%s1054_s0 + $0x8] sm:$0xff]  ;;  %v827_v47 = vld [vmem:[%s1056_s4 + $0x38] sm:$0xff]  }
   0xe   :  { %707 = vmatprep.subr.bf16.mxu1 %v796_v13  ;;  %v624_v34 = vcombine.low %v30_v32, %v30_v32  ;;  %v625_v35 = vcombine.high %v30_v32, %v30_v32  ;;  %v626_v36 = vcombine.low %v31_v33, %v31_v33  ;;  %v627_v37 = vcombine.high %v31_v33, %v31_v33  ;;  %v821_v41 = vld [vmem:[%s1055_s2 + $0x28] sm:$0xff]   ;;  %v822_v42 = vld [vmem:[%s1055_s2 + $0x20] sm:$0xff]   ;;  %v828_v48 = vld [vmem:[%s1056_s4 + $0x30] sm:$0xff]  }
   0xf   :  { %v825_v45 = vld [vmem:[%s1055_s2 + $0x8] sm:$0xff]   ;;  %v826_v46 = vld [vmem:[%s1055_s2] sm:$0xff]   ;;  %v831_v51 = vld [vmem:[%s1056_s4 + $0x18] sm:$0xff]  }
  0x10   :  { %686 = vmatpush3.bf16.msra.mxu0 %v797_v14  ;;  %334 = vmatprep.mubr.bf16.mxu0 %v625_v35  ;;  %v829_v49 = vld [vmem:[%s1056_s4 + $0x28] sm:$0xff]   ;;  %v830_v50 = vld [vmem:[%s1056_s4 + $0x20] sm:$0xff]   ;;  %v832_v52 = vld [vmem:[%s1056_s4 + $0x10] sm:$0xff]  }
  0x11   :  { %708 = vmatpush3.bf16.msra.mxu1 %v798_v15  ;;  %687 = vmatprep.subr.bf16.mxu0 %v799_v16  ;;  %v833_v5 = vld [vmem:[%s1056_s4 + $0x8] sm:$0xff]   ;;  %v834_v6 = vld [vmem:[%s1056_s4] sm:$0xff]  }
  0x12   :  { %709 = vmatprep.subr.bf16.mxu1 %v800_v17  ;;  %374 = vmatprep.mubr.bf16.mxu1 %v627_v37  ;;  %v661_v7 = vld [vmem:[%s1057_s3] ss:$0 sm:$0xff] }
  0x13   :  { %v670_v15 = vld [vmem:[%s1058_s5] ss:$0 sm:$0xff] }
  0x14   :  { %688 = vmatpush3.bf16.msra.mxu0 %v801_v18 }
  0x15   :  { %710 = vmatpush3.bf16.msra.mxu1 %v802_v19  ;;  %689 = vmatprep.subr.bf16.mxu0 %v803_v20 }
  0x16   :  { %711 = vmatprep.subr.bf16.mxu1 %v804_v21 }
  0x18   :  { %690 = vmatpush3.bf16.msra.mxu0 %v805_v22 }
  0x19   :  { %712 = vmatpush3.bf16.msra.mxu1 %v806_v23  ;;  %691 = vmatprep.subr.bf16.mxu0 %v807_v24 }
  0x1a   :  { %713 = vmatprep.subr.bf16.mxu1 %v808_v25 }
  0x1c   :  { %692 = vmatpush3.bf16.msra.mxu0 %v809_v26 }
  0x1d   :  { %714 = vmatpush3.bf16.msra.mxu1 %v810_v27  ;;  %693 = vmatprep.subr.bf16.mxu0 %v811_v28 }
  0x1e   :  { %715 = vmatprep.subr.bf16.mxu1 %v812_v29 }
  0x20   :  { %694 = vmatpush3.bf16.msra.mxu0 %v813_v30 }
  0x21   :  { %716 = vmatpush3.bf16.msra.mxu1 %v814_v31  ;;  %741 = vmatprep.subr.bf16.mxu0 %v839_v39 }
  0x22   :  { %761 = vmatprep.subr.bf16.mxu1 %v839_v39 }
  0x23   :  { %335 = vmatmul.mubr.bf16.vlgmr.msra.gmra.mxu0 %v624_v34 }
  0x24   :  { %375 = vmatmul.mubr.bf16.vlgmr.msra.gmra.mxu1 %v626_v36  ;;  %742 = vmatpush3.bf16.msra.mxu0 %v819_v38 }
  0x25   :  { %743 = vmatprep.subr.bf16.mxu0 %v839_v39  ;;  %757 = vmatprep.mubr.msk.bf16.mxu0 %vm840_vm0, %v839_v39 }
  0x26   :  { %777 = vmatprep.mubr.msk.bf16.mxu1 %vm840_vm0, %v839_v39  ;;  %762 = vmatpush3.bf16.msra.mxu1 %v827_v47 }
  0x27   :  { %763 = vmatprep.subr.bf16.mxu1 %v839_v39 }
  0x28   :  { %744 = vmatpush3.bf16.msra.mxu0 %v820_v40 }
  0x29   :  { %745 = vmatprep.subr.bf16.mxu0 %v839_v39 }
  0x2a   :  { %764 = vmatpush3.bf16.msra.mxu1 %v828_v48 }
  0x2b   :  { %765 = vmatprep.subr.bf16.mxu1 %v839_v39 }
  0x2c   :  { %746 = vmatpush3.bf16.msra.mxu0 %v821_v41 }
  0x2d   :  { %747 = vmatprep.subr.bf16.mxu0 %v839_v39 }
  0x2e   :  { %766 = vmatpush3.bf16.msra.mxu1 %v829_v49 }
  0x2f   :  { %767 = vmatprep.subr.bf16.mxu1 %v839_v39 }
  0x30   :  { %748 = vmatpush3.bf16.msra.mxu0 %v822_v42 }
  0x31   :  { %749 = vmatprep.subr.bf16.mxu0 %v839_v39 }
  0x32   :  { %768 = vmatpush3.bf16.msra.mxu1 %v830_v50 }
  0x33   :  { %769 = vmatprep.subr.bf16.mxu1 %v839_v39 }
  0x34   :  { %750 = vmatpush3.bf16.msra.mxu0 %v823_v43 }
  0x35   :  { %751 = vmatprep.subr.bf16.mxu0 %v839_v39 }
  0x36   :  { %770 = vmatpush3.bf16.msra.mxu1 %v831_v51 }
  0x37   :  { %771 = vmatprep.subr.bf16.mxu1 %v839_v39 }
  0x38   :  { %752 = vmatpush3.bf16.msra.mxu0 %v824_v44 }
  0x39   :  { %753 = vmatprep.subr.bf16.mxu0 %v839_v39 }
  0x3a   :  { %772 = vmatpush3.bf16.msra.mxu1 %v832_v52 }
  0x3b   :  { %773 = vmatprep.subr.bf16.mxu1 %v839_v39 }
  0x3c   :  { %754 = vmatpush3.bf16.msra.mxu0 %v825_v45 }
  0x3d   :  { %755 = vmatprep.subr.bf16.mxu0 %v839_v39 }
  0x3e   :  { %774 = vmatpush3.bf16.msra.mxu1 %v833_v5 }
  0x3f   :  { %775 = vmatprep.subr.bf16.mxu1 %v839_v39 }
  0x40   :  { %756 = vmatpush3.bf16.msra.mxu0 %v826_v46 }
  0x42   :  { %776 = vmatpush3.bf16.msra.mxu1 %v834_v6 }
  0xe3   :  { %v695_v53 = vpop.f32.mrf.mxu0 }
  0xe4   :  { %v717_v54 = vpop.f32.mrf.mxu1 }
  0xe5   :  { %v696_v55 = vpop.f32.mrf.mxu0 }
  0xe6   :  { %v718_v56 = vpop.f32.mrf.mxu1  ;;  %v697_v57 = vadd.f32 %v696_v55, %v695_v53 }
  0xe7   :  { %v719_v58 = vadd.f32 %v718_v56, %v717_v54  ;;  %v698_v59 = vpop.f32.mrf.mxu0 }
  0xe8   :  { %v720_v60 = vpop.f32.mrf.mxu1 }
  0xe9   :  { %v377_v61 = vadd.f32 %v719_v58, %v697_v57  ;;  %v699_v62 = vpop.f32.mrf.mxu0 }
  0xea   :  { %v721_v63 = vpop.f32.mrf.mxu1 }
  0xeb   :  { %v660_v0 = vmul.f32 -1.442695, %v377_v61 }
  0xed   :  { %835 = vpow2.f32 %v660_v0 }
  0xfa   :  { %v836_v1 = vpop.eup %835 }
  0xfb   :  { %v391_v2 = vadd.f32 1.0, %v836_v1 }
  0xfd   :  { %837 = vrcp.f32 %v391_v2 }
 0x10a   :  { %v838_v3 = vpop.eup %837 }
 0x10b   :  { %v394_v4 = vpack.c.bf16 %v838_v3, %v838_v3 }
 0x10d   :  { %758 = vmatmul.mubr.bf16.vlgmr.msra.gmra.mxu0 %v394_v4 }
 0x1cd   :  { %v500_v8 = vpop.f32.mrf.mxu0 }
 0x1ce   :  { %v501_v9 = vadd.f32 %v661_v7, %v500_v8 }
 0x1cf   :  { %v759_v10 = vpop.f32.mrf.mxu0 }
 0x1d0   :  { %v506_v11 = vmax.f32 %v501_v9, 0.0 }
 0x1d1   :  { %v503_v12 = vpop.f32.mrf.mxu0 }
 0x1d2   :  { %v507_v13 = vpack.c.bf16 %v506_v11, %v506_v11 }
 0x1d3   :  { %v760_v14 = vpop.f32.mrf.mxu0 }
 0x1d4   :  { %778 = vmatmul.mubr.bf16.vlgmr.msra.gmra.mxu1 %v507_v13 }
 0x294   :  { %v613_v16 = vpop.f32.mrf.mxu1 }
 0x295   :  { %v614_v17 = vadd.f32 %v670_v15, %v613_v16 }
 0x296   :  { %v779_v18 = vpop.f32.mrf.mxu1 }
 0x297   :  { %619 = vst [vmem:[%s1059_s6] sm:$0xff] %v614_v17 }
 0x298   :  { %v616_v19 = vpop.f32.mrf.mxu1 }
 0x29a   :  { %v780_v20 = vpop.f32.mrf.mxu1 }

// kernel: gcn_forward.7
= control target key start
LH: loop header
LB: loop body
LE: loop exit
PB: predicated region body
PF: predicated region fallthrough
CT: control target
= control target key end

     0   :  { %v1945_v0 = vmov 0   ;;  %s2586_s3 = inlined_call_operand.vmem [shape: f32[512,1], index: 3, kind: input, shape index: {}]   ;;  %s2587_s1 = inlined_call_operand.vmem [shape: bf16[128,128], index: 1, kind: input, shape index: {}]   ;;  %s2588_s0 = inlined_call_operand.vmem [shape: bf16[512,128], index: 0, kind: input, shape index: {}]   ;;  %s2589_s2 = inlined_call_operand.vmem [shape: f32[1,128], index: 2, kind: input, shape index: {}]   ;;  %s2590_s4 = inlined_call_operand.vmem [shape: bf16[512,128], index: 4, kind: output, shape index: {}]  }
   0x1   :  { %1904 = vset.pattern.permute.xlu1 %v1945_v0  ;;  %1903 = vset.pattern.permute.xlu0 %v1945_v0  ;;  %v636_v1 = vld [vmem:[%s2586_s3 + $0x10] sm:$0xff]  ;;  %v634_v2 = vld [vmem:[%s2586_s3] sm:$0xff]  ;;  %v1905_v3 = vld [vmem:[%s2587_s1 + $0x38] sm:$0xff]  }
   0x2   :  { %710 = vperm.xlu1 %1904, %v636_v1   ;;  %700 = vperm.xlu0 %1903, %v634_v2   ;;  %v637_v4 = vld [vmem:[%s2586_s3 + $0x18] sm:$0xff]  ;;  %v635_v5 = vld [vmem:[%s2586_s3 + $0x8] sm:$0xff]  ;;  %v1906_v6 = vld [vmem:[%s2587_s1 + $0x30] sm:$0xff]  }
   0x3   :  { %1806 = vmatprep.subr.bf16.mxu0 %v1905_v3  ;;  %1886 = vmatprep.subr.bf16.mxu1 %v1905_v3  ;;  %v639_v7 = vld [vmem:[%s2586_s3 + $0x28] sm:$0xff]  ;;  %v638_v8 = vld [vmem:[%s2586_s3 + $0x20] sm:$0xff]  ;;  %v641_v10 = vld [vmem:[%s2586_s3 + $0x38] sm:$0xff] }
   0x4   :  { %1807 = vmatpush3.bf16.msra.mxu0 %v1905_v3  ;;  %1894 = vmatpush3.bf16.msra.mxu1 %v1905_v3  ;;  %v1907_v9 = vld [vmem:[%s2587_s1 + $0x28] sm:$0xff]   ;;  %v640_v11 = vld [vmem:[%s2586_s3 + $0x30] sm:$0xff]  ;;  %v1908_v12 = vld [vmem:[%s2587_s1 + $0x20] sm:$0xff]  }
   0x5   :  { %1808 = vmatprep.subr.bf16.mxu0 %v1906_v6  ;;  %1887 = vmatprep.subr.bf16.mxu1 %v1906_v6  ;;  %v643_v13 = vld [vmem:[%s2586_s3 + $0x48] sm:$0xff]  ;;  %v642_v14 = vld [vmem:[%s2586_s3 + $0x40] sm:$0xff]  ;;  %v1909_v15 = vld [vmem:[%s2587_s1 + $0x18] sm:$0xff]  }
   0x6   :  { %715 = vperm.xlu1 %1904, %v637_v4   ;;  %705 = vperm.xlu0 %1903, %v635_v5   ;;  %v1913_v16 = vld [vmem:[%s2588_s0] sm:$0xff]   ;;  %v645_v18 = vld [vmem:[%s2586_s3 + $0x58] sm:$0xff]  ;;  %v644_v19 = vld [vmem:[%s2586_s3 + $0x50] sm:$0xff] }
   0x7   :  { %v1914_v17 = vld [vmem:[%s2588_s0 + $0x80] sm:$0xff]   ;;  %v1910_v20 = vld [vmem:[%s2587_s1 + $0x10] sm:$0xff]   ;;  %1822 = vmatprep.mubr.bf16.mxu0 %v1913_v16  ;;  %v647_v21 = vld [vmem:[%s2586_s3 + $0x68] sm:$0xff] }
   0x8   :  { %1809 = vmatpush3.bf16.msra.mxu0 %v1906_v6  ;;  %1895 = vmatpush3.bf16.msra.mxu1 %v1906_v6  ;;  %v646_v22 = vld [vmem:[%s2586_s3 + $0x60] sm:$0xff]  ;;  %v1911_v23 = vld [vmem:[%s2587_s1 + $0x8] sm:$0xff]   ;;  %v649_v24 = vld [vmem:[%s2586_s3 + $0x78] sm:$0xff] }
   0x9   :  { %1810 = vmatprep.subr.bf16.mxu0 %v1907_v9  ;;  %1888 = vmatprep.subr.bf16.mxu1 %v1907_v9  ;;  %v648_v25 = vld [vmem:[%s2586_s3 + $0x70] sm:$0xff]  ;;  %v1912_v26 = vld [vmem:[%s2587_s1] sm:$0xff]   ;;  %v651_v27 = vld [vmem:[%s2586_s3 + $0x88] sm:$0xff] }
   0xa   :  { %725 = vperm.xlu1 %1904, %v639_v7   ;;  %720 = vperm.xlu0 %1903, %v638_v8   ;;  %v650_v28 = vld [vmem:[%s2586_s3 + $0x80] sm:$0xff]  ;;  %v1915_v29 = vld [vmem:[%s2588_s0 + $0x8] sm:$0xff]   ;;  %v1917_v31 = vld [vmem:[%s2588_s0 + $0x10] sm:$0xff]  }
   0xb   :  { %1854 = vmatprep.mubr.bf16.mxu1 %v1914_v17  ;;  %v1916_v30 = vld [vmem:[%s2588_s0 + $0x88] sm:$0xff]   ;;  %v1918_v32 = vld [vmem:[%s2588_s0 + $0x90] sm:$0xff]   ;;  %v653_v33 = vld [vmem:[%s2586_s3 + $0x98] sm:$0xff] }
   0xc   :  { %1811 = vmatpush3.bf16.msra.mxu0 %v1907_v9  ;;  %1896 = vmatpush3.bf16.msra.mxu1 %v1907_v9  ;;  %v652_v34 = vld [vmem:[%s2586_s3 + $0x90] sm:$0xff]  ;;  %v655_v35 = vld [vmem:[%s2586_s3 + $0xa8] sm:$0xff]  ;;  %v654_v36 = vld [vmem:[%s2586_s3 + $0xa0] sm:$0xff] }
   0xd   :  { %1812 = vmatprep.subr.bf16.mxu0 %v1908_v12  ;;  %1889 = vmatprep.subr.bf16.mxu1 %v1908_v12  ;;  %v1919_v37 = vld [vmem:[%s2588_s0 + $0x18] sm:$0xff]   ;;  %v1921_v39 = vld [vmem:[%s2588_s0 + $0x20] sm:$0xff]   ;;  %v656_v42 = vld [vmem:[%s2586_s3 + $0xb0] sm:$0xff] }
   0xe   :  { %735 = vperm.xlu1 %1904, %v641_v10   ;;  %730 = vperm.xlu0 %1903, %v640_v11   ;;  %v1920_v38 = vld [vmem:[%s2588_s0 + $0x98] sm:$0xff]   ;;  %v1922_v40 = vld [vmem:[%s2588_s0 + $0xa0] sm:$0xff]   ;;  %v659_v43 = vld [vmem:[%s2586_s3 + $0xc8] sm:$0xff] }
   0xf   :  { %v657_v41 = vld [vmem:[%s2586_s3 + $0xb8] sm:$0xff]  ;;  %v658_v44 = vld [vmem:[%s2586_s3 + $0xc0] sm:$0xff]  ;;  %v1923_v45 = vld [vmem:[%s2588_s0 + $0x28] sm:$0xff]  }
  0x10   :  { %1813 = vmatpush3.bf16.msra.mxu0 %v1908_v12  ;;  %1897 = vmatpush3.bf16.msra.mxu1 %v1908_v12  ;;  %v1924_v46 = vld [vmem:[%s2588_s0 + $0xa8] sm:$0xff]   ;;  %v1925_v47 = vld [vmem:[%s2588_s0 + $0x30] sm:$0xff]   ;;  %v661_v49 = vld [vmem:[%s2586_s3 + $0xd8] sm:$0xff] }
  0x11   :  { %1814 = vmatprep.subr.bf16.mxu0 %v1909_v15  ;;  %1890 = vmatprep.subr.bf16.mxu1 %v1909_v15  ;;  %v1926_v48 = vld [vmem:[%s2588_s0 + $0xb0] sm:$0xff]   ;;  %v663_v51 = vld [vmem:[%s2586_s3 + $0xe8] sm:$0xff]  ;;  %v662_v52 = vld [vmem:[%s2586_s3 + $0xe0] sm:$0xff] }
  0x12   :  { %745 = vperm.xlu1 %1904, %v643_v13   ;;  %740 = vperm.xlu0 %1903, %v642_v14   ;;  %v660_v50 = vld [vmem:[%s2586_s3 + $0xd0] sm:$0xff]  ;;  %v1927_v53 = vld [vmem:[%s2588_s0 + $0x38] sm:$0xff]   ;;  %v1929_v55 = vld [vmem:[%s2588_s0 + $0x40] sm:$0xff]  }
  0x13   :  { %v1928_v54 = vld [vmem:[%s2588_s0 + $0xb8] sm:$0xff]   ;;  %v1930_v56 = vld [vmem:[%s2588_s0 + $0xc0] sm:$0xff]   ;;  %v664_v58 = vld [vmem:[%s2586_s3 + $0xf0] sm:$0xff] }
  0x14   :  { %1815 = vmatpush3.bf16.msra.mxu0 %v1909_v15  ;;  %1898 = vmatpush3.bf16.msra.mxu1 %v1909_v15  ;;  %v665_v57 = vld [vmem:[%s2586_s3 + $0xf8] sm:$0xff]  ;;  %v667_v59 = vld [vmem:[%s2586_s3 + $0x108] sm:$0xff]  ;;  %v666_v60 = vld [vmem:[%s2586_s3 + $0x100] sm:$0xff] }
  0x15   :  { %1816 = vmatprep.subr.bf16.mxu0 %v1910_v20  ;;  %1891 = vmatprep.subr.bf16.mxu1 %v1910_v20  ;;  %v1931_v61 = vld [vmem:[%s2588_s0 + $0x48] sm:$0xff]   ;;  %v1933_v63 = vld [vmem:[%s2588_s0 + $0x50] sm:$0xff]   ;;  %v669_v1 = vld [vmem:[%s2586_s3 + $0x118] sm:$0xff] }
  0x16   :  { %755 = vperm.xlu1 %1904, %v645_v18   ;;  %750 = vperm.xlu0 %1903, %v644_v19   ;;  %v1932_v62 = vld [vmem:[%s2588_s0 + $0xc8] sm:$0xff]   ;;  %v1934_v0 = vld [vmem:[%s2588_s0 + $0xd0] sm:$0xff]   ;;  %v670_v4 = vld [vmem:[%s2586_s3 + $0x120] sm:$0xff] }
  0x17   :  { %v668_v2 = vld [vmem:[%s2586_s3 + $0x110] sm:$0xff]  ;;  %v671_v3 = vld [vmem:[%s2586_s3 + $0x128] sm:$0xff]  ;;  %v1935_v5 = vld [vmem:[%s2588_s0 + $0x58] sm:$0xff]  }
  0x18   :  { %1817 = vmatpush3.bf16.msra.mxu0 %v1910_v20  ;;  %1899 = vmatpush3.bf16.msra.mxu1 %v1910_v20  ;;  %v1936_v6 = vld [vmem:[%s2588_s0 + $0xd8] sm:$0xff]   ;;  %v1937_v7 = vld [vmem:[%s2588_s0 + $0x60] sm:$0xff]   ;;  %v672_v10 = vld [vmem:[%s2586_s3 + $0x130] sm:$0xff] }
  0x19   :  { %1818 = vmatprep.subr.bf16.mxu0 %v1911_v23  ;;  %1892 = vmatprep.subr.bf16.mxu1 %v1911_v23  ;;  %v1938_v8 = vld [vmem:[%s2588_s0 + $0xe0] sm:$0xff]   ;;  %v673_v9 = vld [vmem:[%s2586_s3 + $0x138] sm:$0xff]  ;;  %v675_v11 = vld [vmem:[%s2586_s3 + $0x148] sm:$0xff] }
  0x1a   :  { %765 = vperm.xlu1 %1904, %v647_v21   ;;  %760 = vperm.xlu0 %1903, %v646_v22   ;;  %v674_v12 = vld [vmem:[%s2586_s3 + $0x140] sm:$0xff]  ;;  %v1939_v13 = vld [vmem:[%s2588_s0 + $0x68] sm:$0xff]   ;;  %v1941_v15 = vld [vmem:[%s2588_s0 + $0x70] sm:$0xff]  }
  0x1b   :  { %v1940_v14 = vld [vmem:[%s2588_s0 + $0xe8] sm:$0xff]   ;;  %v1942_v16 = vld [vmem:[%s2588_s0 + $0xf0] sm:$0xff]   ;;  %v677_v17 = vld [vmem:[%s2586_s3 + $0x158] sm:$0xff] }
  0x1c   :  { %1819 = vmatpush3.bf16.msra.mxu0 %v1911_v23  ;;  %1900 = vmatpush3.bf16.msra.mxu1 %v1911_v23  ;;  %v676_v18 = vld [vmem:[%s2586_s3 + $0x150] sm:$0xff]  ;;  %v679_v19 = vld [vmem:[%s2586_s3 + $0x168] sm:$0xff]  ;;  %v678_v20 = vld [vmem:[%s2586_s3 + $0x160] sm:$0xff] }
  0x1d   :  { %1820 = vmatprep.subr.bf16.mxu0 %v1912_v26  ;;  %1893 = vmatprep.subr.bf16.mxu1 %v1912_v26  ;;  %v1943_v21 = vld [vmem:[%s2588_s0 + $0x78] sm:$0xff]  }
  0x1e   :  { %775 = vperm.xlu1 %1904, %v649_v24   ;;  %770 = vperm.xlu0 %1903, %v648_v25   ;;  %v1944_v22 = vld [vmem:[%s2588_s0 + $0xf8] sm:$0xff]   ;;  %v680_v24 = vld [vmem:[%s2586_s3 + $0x170] sm:$0xff]  ;;  %v683_v25 = vld [vmem:[%s2586_s3 + $0x188] sm:$0xff] }
  0x1f   :  { %v681_v23 = vld [vmem:[%s2586_s3 + $0x178] sm:$0xff] }
  0x20   :  { %1821 = vmatpush3.bf16.msra.mxu0 %v1912_v26  ;;  %1901 = vmatpush3.bf16.msra.mxu1 %v1912_v26  ;;  %v682_v26 = vld [vmem:[%s2586_s3 + $0x180] sm:$0xff] }
  0x22   :  { %785 = vperm.xlu1 %1904, %v651_v27   ;;  %780 = vperm.xlu0 %1903, %v650_v28   ;;  %v685_v27 = vld [vmem:[%s2586_s3 + $0x198] sm:$0xff]  ;;  %v684_v28 = vld [vmem:[%s2586_s3 + $0x190] sm:$0xff] }
  0x23   :  { %1823 = vmatmul.mubr.bf16.vlgmr.msra.gmra.mxu0 %v1915_v29  ;;  %1855 = vmatmul.mubr.bf16.vlgmr.msra.gmra.mxu1 %v1916_v30  ;;  %v687_v29 = vld [vmem:[%s2586_s3 + $0x1a8] sm:$0xff]  ;;  %v686_v30 = vld [vmem:[%s2586_s3 + $0x1a0] sm:$0xff] }
  0x24   :  { %1826 = vmatprep.mubr.bf16.mxu0 %v1917_v31  ;;  %1858 = vmatprep.mubr.bf16.mxu1 %v1918_v32  ;;  %v689_v31 = vld [vmem:[%s2586_s3 + $0x1b8] sm:$0xff]  ;;  %v688_v32 = vld [vmem:[%s2586_s3 + $0x1b0] sm:$0xff] }
  0x26   :  { %795 = vperm.xlu1 %1904, %v653_v33   ;;  %790 = vperm.xlu0 %1903, %v652_v34   ;;  %v691_v33 = vld [vmem:[%s2586_s3 + $0x1c8] sm:$0xff]  ;;  %v690_v34 = vld [vmem:[%s2586_s3 + $0x1c0] sm:$0xff] }
  0x2a   :  { %805 = vperm.xlu1 %1904, %v655_v35   ;;  %800 = vperm.xlu0 %1903, %v654_v36   ;;  %v693_v35 = vld [vmem:[%s2586_s3 + $0x1d8] sm:$0xff]  ;;  %v692_v36 = vld [vmem:[%s2586_s3 + $0x1d0] sm:$0xff] }
  0x2b   :  { %1827 = vmatmul.mubr.bf16.gmra.mxu0 %v1919_v37  ;;  %1859 = vmatmul.mubr.bf16.gmra.mxu1 %v1920_v38  ;;  %v695_v37 = vld [vmem:[%s2586_s3 + $0x1e8] sm:$0xff]  ;;  %v694_v38 = vld [vmem:[%s2586_s3 + $0x1e0] sm:$0xff] }
  0x2c   :  { %1830 = vmatprep.mubr.bf16.mxu0 %v1921_v39  ;;  %1862 = vmatprep.mubr.bf16.mxu1 %v1922_v40  ;;  %v697_v39 = vld [vmem:[%s2586_s3 + $0x1f8] sm:$0xff]  ;;  %v696_v40 = vld [vmem:[%s2586_s3 + $0x1f0] sm:$0xff] }
  0x2e   :  { %815 = vperm.xlu1 %1904, %v657_v41   ;;  %810 = vperm.xlu0 %1903, %v656_v42  }
  0x32   :  { %825 = vperm.xlu1 %1904, %v659_v43   ;;  %820 = vperm.xlu0 %1903, %v658_v44  }
  0x33   :  { %1831 = vmatmul.mubr.bf16.gmra.mxu0 %v1923_v45  ;;  %1863 = vmatmul.mubr.bf16.gmra.mxu1 %v1924_v46 }
  0x34   :  { %1834 = vmatprep.mubr.bf16.mxu0 %v1925_v47  ;;  %1866 = vmatprep.mubr.bf16.mxu1 %v1926_v48 }
  0x36   :  { %835 = vperm.xlu1 %1904, %v661_v49   ;;  %830 = vperm.xlu0 %1903, %v660_v50  }
  0x3a   :  { %845 = vperm.xlu1 %1904, %v663_v51   ;;  %840 = vperm.xlu0 %1903, %v662_v52  }
  0x3b   :  { %1835 = vmatmul.mubr.bf16.gmra.mxu0 %v1927_v53  ;;  %1867 = vmatmul.mubr.bf16.gmra.mxu1 %v1928_v54 }
  0x3c   :  { %1838 = vmatprep.mubr.bf16.mxu0 %v1929_v55  ;;  %1870 = vmatprep.mubr.bf16.mxu1 %v1930_v56 }
  0x3e   :  { %855 = vperm.xlu1 %1904, %v665_v57   ;;  %850 = vperm.xlu0 %1903, %v664_v58  }
  0x42   :  { %865 = vperm.xlu1 %1904, %v667_v59   ;;  %860 = vperm.xlu0 %1903, %v666_v60  }
  0x43   :  { %1839 = vmatmul.mubr.bf16.gmra.mxu0 %v1931_v61  ;;  %1871 = vmatmul.mubr.bf16.gmra.mxu1 %v1932_v62 }
  0x44   :  { %1842 = vmatprep.mubr.bf16.mxu0 %v1933_v63  ;;  %1874 = vmatprep.mubr.bf16.mxu1 %v1934_v0 }
  0x46   :  { %875 = vperm.xlu1 %1904, %v669_v1   ;;  %870 = vperm.xlu0 %1903, %v668_v2  }
  0x4a   :  { %885 = vperm.xlu1 %1904, %v671_v3   ;;  %880 = vperm.xlu0 %1903, %v670_v4  }
  0x4b   :  { %1843 = vmatmul.mubr.bf16.gmra.mxu0 %v1935_v5  ;;  %1875 = vmatmul.mubr.bf16.gmra.mxu1 %v1936_v6 }
  0x4c   :  { %1846 = vmatprep.mubr.bf16.mxu0 %v1937_v7  ;;  %1878 = vmatprep.mubr.bf16.mxu1 %v1938_v8 }
  0x4e   :  { %895 = vperm.xlu1 %1904, %v673_v9   ;;  %890 = vperm.xlu0 %1903, %v672_v10  }
  0x52   :  { %905 = vperm.xlu1 %1904, %v675_v11   ;;  %900 = vperm.xlu0 %1903, %v674_v12  }
  0x53   :  { %1847 = vmatmul.mubr.bf16.gmra.mxu0 %v1939_v13  ;;  %1879 = vmatmul.mubr.bf16.gmra.mxu1 %v1940_v14 }
  0x54   :  { %1850 = vmatprep.mubr.bf16.mxu0 %v1941_v15  ;;  %1882 = vmatprep.mubr.bf16.mxu1 %v1942_v16 }
  0x56   :  { %915 = vperm.xlu1 %1904, %v677_v17   ;;  %910 = vperm.xlu0 %1903, %v676_v18  }
  0x5a   :  { %925 = vperm.xlu1 %1904, %v679_v19   ;;  %920 = vperm.xlu0 %1903, %v678_v20   ;;  %v2354_v19 = vld [vmem:[%s2589_s2] ss:$0 sm:$0xff] }
  0x5b   :  { %1851 = vmatmul.mubr.bf16.gmra.mxu0 %v1943_v21  ;;  %1883 = vmatmul.mubr.bf16.gmra.mxu1 %v1944_v22 }
  0x5e   :  { %935 = vperm.xlu1 %1904, %v681_v23   ;;  %930 = vperm.xlu0 %1903, %v680_v24  }
  0x62   :  { %945 = vperm.xlu1 %1904, %v683_v25   ;;  %940 = vperm.xlu0 %1903, %v682_v26  }
  0x66   :  { %955 = vperm.xlu1 %1904, %v685_v27   ;;  %950 = vperm.xlu0 %1903, %v684_v28  }
  0x6a   :  { %965 = vperm.xlu1 %1904, %v687_v29   ;;  %960 = vperm.xlu0 %1903, %v686_v30  }
  0x6e   :  { %975 = vperm.xlu1 %1904, %v689_v31   ;;  %970 = vperm.xlu0 %1903, %v688_v32  }
  0x72   :  { %985 = vperm.xlu1 %1904, %v691_v33   ;;  %980 = vperm.xlu0 %1903, %v690_v34  }
  0x76   :  { %995 = vperm.xlu1 %1904, %v693_v35   ;;  %990 = vperm.xlu0 %1903, %v692_v36  }
  0x7a   :  { %1005 = vperm.xlu1 %1904, %v695_v37   ;;  %1000 = vperm.xlu0 %1903, %v694_v38  }
  0x7d   :  { %v711_v41 = vpop.permute.xlu1 %710  ;;  %v2283_v42 = vpop.permute.xlu0 %700 }
  0x7e   :  { %1015 = vperm.xlu1 %1904, %v697_v39   ;;  %1010 = vperm.xlu0 %1903, %v696_v40  }
  0x81   :  { %v716_v43 = vpop.permute.xlu1 %715  ;;  %v2285_v44 = vpop.permute.xlu0 %705 }
  0x85   :  { %v2287_v45 = vpop.permute.xlu1 %725  ;;  %v2289_v46 = vpop.permute.xlu0 %720 }
  0x89   :  { %v2291_v47 = vpop.permute.xlu1 %735  ;;  %v2293_v48 = vpop.permute.xlu0 %730 }
  0x8d   :  { %v2295_v49 = vpop.permute.xlu1 %745  ;;  %v2297_v50 = vpop.permute.xlu0 %740 }
  0x91   :  { %v2299_v51 = vpop.permute.xlu1 %755  ;;  %v2301_v52 = vpop.permute.xlu0 %750 }
  0x95   :  { %v2303_v53 = vpop.permute.xlu1 %765  ;;  %v2305_v54 = vpop.permute.xlu0 %760 }
  0x99   :  { %v2307_v55 = vpop.permute.xlu1 %775  ;;  %v2309_v56 = vpop.permute.xlu0 %770 }
  0x9d   :  { %v2311_v57 = vpop.permute.xlu1 %785  ;;  %v2313_v58 = vpop.permute.xlu0 %780 }
  0xa1   :  { %v2315_v59 = vpop.permute.xlu1 %795  ;;  %v2317_v60 = vpop.permute.xlu0 %790 }
  0xa5   :  { %v2319_v61 = vpop.permute.xlu1 %805  ;;  %v2321_v62 = vpop.permute.xlu0 %800 }
  0xa9   :  { %v2323_v63 = vpop.permute.xlu1 %815  ;;  %v2325_v0 = vpop.permute.xlu0 %810 }
  0xad   :  { %v2327_v1 = vpop.permute.xlu1 %825  ;;  %v2329_v2 = vpop.permute.xlu0 %820 }
  0xb1   :  { %v2331_v3 = vpop.permute.xlu1 %835  ;;  %v2333_v4 = vpop.permute.xlu0 %830 }
  0xb5   :  { %v2335_v5 = vpop.permute.xlu1 %845  ;;  %v2337_v6 = vpop.permute.xlu0 %840 }
  0xb6   :  { %2591 = vst [vmem:[#allocation2_spill] sm:$0xff] %v2335_v5  ;;  %2592 = vst [vmem:[#allocation3_spill] sm:$0xff] %v2337_v6 }
  0xb9   :  { %v2339_v7 = vpop.permute.xlu1 %855  ;;  %v2341_v8 = vpop.permute.xlu0 %850 }
  0xba   :  { %2593 = vst [vmem:[#allocation4_spill] sm:$0xff] %v2339_v7 }
  0xbd   :  { %v866_v9 = vpop.permute.xlu1 %865  ;;  %v861_v10 = vpop.permute.xlu0 %860 }
  0xc1   :  { %v876_v11 = vpop.permute.xlu1 %875  ;;  %v871_v12 = vpop.permute.xlu0 %870 }
  0xc5   :  { %v2343_v13 = vpop.permute.xlu1 %885  ;;  %v2345_v14 = vpop.permute.xlu0 %880 }
  0xc9   :  { %v896_v15 = vpop.permute.xlu1 %895  ;;  %v891_v16 = vpop.permute.xlu0 %890 }
  0xcd   :  { %v2347_v17 = vpop.permute.xlu1 %905  ;;  %v2349_v18 = vpop.permute.xlu0 %900 }
  0xd1   :  { %v2356_v22 = vpop.permute.xlu1 %915  ;;  %v2358_v23 = vpop.permute.xlu0 %910 }
  0xd5   :  { %v2366_v38 = vpop.permute.xlu1 %925  ;;  %v2368_v39 = vpop.permute.xlu0 %920 }
  0xe3   :  { %v1824_v20 = vpop.f32.mrf.mxu0  ;;  %v1856_v21 = vpop.f32.mrf.mxu1 }
  0xe4   :  { %v388_v24 = vadd.f32 %v1824_v20, %v2354_v19  ;;  %v516_v25 = vadd.f32 %v1856_v21, %v2354_v19 }
  0xe5   :  { %v379_v26 = vpop.f32.mrf.mxu0  ;;  %v507_v27 = vpop.f32.mrf.mxu1 }
  0xe6   :  { %v380_v28 = vadd.f32 %v2354_v19, %v379_v26  ;;  %v508_v29 = vadd.f32 %v2354_v19, %v507_v27  ;;  %v1020_v34 = vmul.f32 %v711_v41, %v388_v24  ;;  %v1052_v35 = vmul.f32 %v871_v12, %v516_v25 }
  0xe7   :  { %v1825_v30 = vpop.f32.mrf.mxu0  ;;  %v1857_v31 = vpop.f32.mrf.mxu1 }
  0xe8   :  { %v391_v32 = vadd.f32 %v1825_v30, %v2354_v19  ;;  %v519_v33 = vadd.f32 %v1857_v31, %v2354_v19  ;;  %v1018_v27 = vmul.f32 %v2283_v42, %v380_v28  ;;  %v1050_v5 = vmul.f32 %v861_v10, %v508_v29 }
  0xe9   :  { %v382_v36 = vpop.f32.mrf.mxu0  ;;  %v510_v37 = vpop.f32.mrf.mxu1 }
  0xea   :  { %v1021_v40 = vmul.f32 %v716_v43, %v391_v32  ;;  %v1053_v20 = vmul.f32 %v876_v11, %v519_v33  ;;  %v383_v21 = vadd.f32 %v2354_v19, %v382_v36  ;;  %v511_v26 = vadd.f32 %v2354_v19, %v510_v37  ;;  %v2384_v32 = vpop.permute.xlu1 %935 }
  0xeb   :  { %v1828_v30 = vpop.f32.mrf.mxu0  ;;  %v1860_v6 = vpop.f32.mrf.mxu1 }
  0xec   :  { %v1583_v31 = vpack.c.bf16 %v1021_v40, %v1020_v34  ;;  %v1663_v41 = vpack.c.bf16 %v1053_v20, %v1052_v35  ;;  %v1019_v12 = vmul.f32 %v2285_v44, %v383_v21  ;;  %v1051_v24 = vmul.f32 %v866_v9, %v511_v26 }
  0xed   :  { %v404_v25 = vadd.f32 %v1828_v30, %v2354_v19  ;;  %v532_v7 = vadd.f32 %v1860_v6, %v2354_v19  ;;  %v395_v43 = vpop.f32.mrf.mxu0  ;;  %v523_v11 = vpop.f32.mrf.mxu1 }
  0xee   :  { %1735 = vst [vmem:[%s2590_s4 + $0x8] sm:$0xff] %v1583_v31   ;;  %1751 = vst [vmem:[%s2590_s4 + $0x88] sm:$0xff] %v1663_v41   ;;  %v1578_v42 = vpack.c.bf16 %v1019_v12, %v1018_v27  ;;  %v1658_v10 = vpack.c.bf16 %v1051_v24, %v1050_v5  ;;  %v396_v28 = vadd.f32 %v2354_v19, %v395_v43  ;;  %v2386_v6 = vpop.permute.xlu0 %930  ;;  %v2406_v43 = vpop.permute.xlu1 %945 }
  0xef   :  { %v524_v44 = vadd.f32 %v2354_v19, %v523_v11  ;;  %v1829_v9 = vpop.f32.mrf.mxu0  ;;  %v1861_v29 = vpop.f32.mrf.mxu1  ;;  %v1024_v34 = vmul.f32 %v2293_v48, %v404_v25  ;;  %v1056_v35 = vmul.f32 %v891_v16, %v532_v7 }
  0xf0   :  { %1579 = vst [vmem:[%s2590_s4] sm:$0xff] %v1578_v42   ;;  %1750 = vst [vmem:[%s2590_s4 + $0x80] sm:$0xff] %v1658_v10   ;;  %v407_v5 = vadd.f32 %v1829_v9, %v2354_v19  ;;  %v535_v33 = vadd.f32 %v1861_v29, %v2354_v19  ;;  %v1022_v27 = vmul.f32 %v2289_v46, %v396_v28 }
  0xf1   :  { %v398_v36 = vpop.f32.mrf.mxu0  ;;  %v526_v37 = vpop.f32.mrf.mxu1  ;;  %v1054_v30 = vmul.f32 %v2345_v14, %v524_v44 }
  0xf2   :  { %v1025_v40 = vmul.f32 %v2291_v47, %v407_v5  ;;  %v1057_v20 = vmul.f32 %v896_v15, %v535_v33  ;;  %v399_v21 = vadd.f32 %v2354_v19, %v398_v36  ;;  %v527_v26 = vadd.f32 %v2354_v19, %v526_v37  ;;  %v2408_v11 = vpop.permute.xlu0 %940 }
  0xf3   :  { %v1832_v31 = vpop.f32.mrf.mxu0  ;;  %v1864_v41 = vpop.f32.mrf.mxu1 }
  0xf4   :  { %v1593_v12 = vpack.c.bf16 %v1025_v40, %v1024_v34  ;;  %v1673_v24 = vpack.c.bf16 %v1057_v20, %v1056_v35  ;;  %v1023_v48 = vmul.f32 %v2287_v45, %v399_v21  ;;  %v1055_v7 = vmul.f32 %v2343_v13, %v527_v26 }
  0xf5   :  { %v420_v16 = vadd.f32 %v1832_v31, %v2354_v19  ;;  %v548_v47 = vadd.f32 %v1864_v41, %v2354_v19  ;;  %v411_v15 = vpop.f32.mrf.mxu0  ;;  %v539_v25 = vpop.f32.mrf.mxu1 }
  0xf6   :  { %1737 = vst [vmem:[%s2590_s4 + $0x18] sm:$0xff] %v1593_v12   ;;  %1753 = vst [vmem:[%s2590_s4 + $0x98] sm:$0xff] %v1673_v24   ;;  %v1588_v45 = vpack.c.bf16 %v1023_v48, %v1022_v27  ;;  %v1668_v46 = vpack.c.bf16 %v1055_v7, %v1054_v30  ;;  %v412_v13 = vadd.f32 %v2354_v19, %v411_v15  ;;  %v2434_v27 = vpop.permute.xlu1 %955 }
  0xf7   :  { %v540_v14 = vadd.f32 %v2354_v19, %v539_v25  ;;  %v1833_v42 = vpop.f32.mrf.mxu0  ;;  %v1865_v10 = vpop.f32.mrf.mxu1  ;;  %v1028_v9 = vmul.f32 %v2301_v52, %v420_v16  ;;  %v1060_v29 = vmul.f32 %v2358_v23, %v548_v47 }
  0xf8   :  { %1736 = vst [vmem:[%s2590_s4 + $0x10] sm:$0xff] %v1588_v45   ;;  %1752 = vst [vmem:[%s2590_s4 + $0x90] sm:$0xff] %v1668_v46   ;;  %v423_v28 = vadd.f32 %v1833_v42, %v2354_v19  ;;  %v551_v44 = vadd.f32 %v1865_v10, %v2354_v19  ;;  %v1026_v40 = vmul.f32 %v2297_v50, %v412_v13  ;;  %v951_v52 = vpop.permute.xlu0 %950 }
  0xf9   :  { %v414_v5 = vpop.f32.mrf.mxu0  ;;  %v542_v33 = vpop.f32.mrf.mxu1  ;;  %v1058_v20 = vmul.f32 %v2349_v18, %v540_v14 }
  0xfa   :  { %v1029_v34 = vmul.f32 %v2299_v51, %v423_v28  ;;  %v1061_v35 = vmul.f32 %v2356_v22, %v551_v44  ;;  %v415_v36 = vadd.f32 %v2354_v19, %v414_v5  ;;  %v543_v37 = vadd.f32 %v2354_v19, %v542_v33  ;;  %v2458_v13 = vpop.permute.xlu1 %965 }
  0xfb   :  { %v1836_v21 = vpop.f32.mrf.mxu0  ;;  %v1868_v26 = vpop.f32.mrf.mxu1 }
  0xfc   :  { %v1603_v23 = vpack.c.bf16 %v1029_v34, %v1028_v9  ;;  %v1683_v30 = vpack.c.bf16 %v1061_v35, %v1060_v29  ;;  %v1027_v31 = vmul.f32 %v2295_v49, %v415_v36  ;;  %v1059_v51 = vmul.f32 %v2347_v17, %v543_v37  ;;  %v2460_v14 = vpop.permute.xlu0 %960 }
  0xfd   :  { %v436_v22 = vadd.f32 %v1836_v21, %v2354_v19  ;;  %v564_v41 = vadd.f32 %v1868_v26, %v2354_v19  ;;  %v427_v12 = vpop.f32.mrf.mxu0  ;;  %v555_v24 = vpop.f32.mrf.mxu1 }
  0xfe   :  { %1739 = vst [vmem:[%s2590_s4 + $0x28] sm:$0xff] %v1603_v23   ;;  %1755 = vst [vmem:[%s2590_s4 + $0xa8] sm:$0xff] %v1683_v30   ;;  %v1598_v50 = vpack.c.bf16 %v1027_v31, %v1026_v40  ;;  %v1678_v18 = vpack.c.bf16 %v1059_v51, %v1058_v20  ;;  %v428_v49 = vadd.f32 %v2354_v19, %v427_v12  ;;  %v976_v21 = vpop.permute.xlu1 %975 }
  0xff   :  { %v556_v17 = vadd.f32 %v2354_v19, %v555_v24  ;;  %v1837_v48 = vpop.f32.mrf.mxu0  ;;  %v1869_v7 = vpop.f32.mrf.mxu1  ;;  %v1032_v15 = vmul.f32 %v2309_v56, %v436_v22  ;;  %v1064_v25 = vmul.f32 %v2386_v6, %v564_v41 }
 0x100   :  { %1738 = vst [vmem:[%s2590_s4 + $0x20] sm:$0xff] %v1598_v50   ;;  %1754 = vst [vmem:[%s2590_s4 + $0xa0] sm:$0xff] %v1678_v18   ;;  %v439_v16 = vadd.f32 %v1837_v48, %v2354_v19  ;;  %v567_v47 = vadd.f32 %v1869_v7, %v2354_v19  ;;  %v1030_v9 = vmul.f32 %v2305_v54, %v428_v49  ;;  %v971_v26 = vpop.permute.xlu0 %970 }
 0x101   :  { %v430_v45 = vpop.f32.mrf.mxu0  ;;  %v558_v46 = vpop.f32.mrf.mxu1  ;;  %v1062_v56 = vmul.f32 %v2368_v39, %v556_v17 }
 0x102   :  { %v1033_v42 = vmul.f32 %v2307_v55, %v439_v16  ;;  %v1065_v10 = vmul.f32 %v2384_v32, %v567_v47  ;;  %v431_v28 = vadd.f32 %v2354_v19, %v430_v45  ;;  %v559_v44 = vadd.f32 %v2354_v19, %v558_v46  ;;  %v2499_v45 = vpop.permute.xlu1 %985 }
 0x103   :  { %v1840_v29 = vpop.f32.mrf.mxu0  ;;  %v1872_v6 = vpop.f32.mrf.mxu1 }
 0x104   :  { %v1613_v5 = vpack.c.bf16 %v1033_v42, %v1032_v15  ;;  %v1693_v33 = vpack.c.bf16 %v1065_v10, %v1064_v25  ;;  %v1031_v34 = vmul.f32 %v2303_v53, %v431_v28  ;;  %v1063_v35 = vmul.f32 %v2366_v38, %v559_v44  ;;  %v981_v46 = vpop.permute.xlu0 %980 }
 0x105   :  { %v452_v55 = vadd.f32 %v1840_v29, %v2354_v19  ;;  %v580_v32 = vadd.f32 %v1872_v6, %v2354_v19  ;;  %v443_v36 = vpop.f32.mrf.mxu0  ;;  %v571_v37 = vpop.f32.mrf.mxu1 }
 0x106   :  { %1741 = vst [vmem:[%s2590_s4 + $0x38] sm:$0xff] %v1613_v5   ;;  %1757 = vst [vmem:[%s2590_s4 + $0xb8] sm:$0xff] %v1693_v33   ;;  %v1608_v54 = vpack.c.bf16 %v1031_v34, %v1030_v9  ;;  %v1688_v39 = vpack.c.bf16 %v1063_v35, %v1062_v56  ;;  %v444_v53 = vadd.f32 %v2354_v19, %v443_v36 }
 0x107   :  { %v572_v38 = vadd.f32 %v2354_v19, %v571_v37  ;;  %v1841_v40 = vpop.f32.mrf.mxu0  ;;  %v1873_v20 = vpop.f32.mrf.mxu1  ;;  %v1036_v31 = vmul.f32 %v2317_v60, %v452_v55  ;;  %v1068_v51 = vmul.f32 %v951_v52, %v580_v32 }
 0x108   :  { %1740 = vst [vmem:[%s2590_s4 + $0x30] sm:$0xff] %v1608_v54   ;;  %1756 = vst [vmem:[%s2590_s4 + $0xb0] sm:$0xff] %v1688_v39   ;;  %v455_v23 = vadd.f32 %v1841_v40, %v2354_v19  ;;  %v583_v30 = vadd.f32 %v1873_v20, %v2354_v19  ;;  %v1034_v49 = vmul.f32 %v2313_v58, %v444_v53  ;;  %v996_v54 = vpop.permute.xlu1 %995  ;;  %v991_v39 = vpop.permute.xlu0 %990 }
 0x109   :  { %v446_v22 = vpop.f32.mrf.mxu0  ;;  %v574_v41 = vpop.f32.mrf.mxu1  ;;  %v1066_v17 = vmul.f32 %v2408_v11, %v572_v38 }
 0x10a   :  { %v1037_v12 = vmul.f32 %v2315_v59, %v455_v23  ;;  %v1069_v24 = vmul.f32 %v2434_v27, %v583_v30  ;;  %v447_v50 = vadd.f32 %v2354_v19, %v446_v22  ;;  %v575_v18 = vadd.f32 %v2354_v19, %v574_v41 }
 0x10b   :  { %v1844_v48 = vpop.f32.mrf.mxu0  ;;  %v1876_v7 = vpop.f32.mrf.mxu1 }
 0x10c   :  { %v1623_v16 = vpack.c.bf16 %v1037_v12, %v1036_v31  ;;  %v1703_v47 = vpack.c.bf16 %v1069_v24, %v1068_v51  ;;  %v1035_v60 = vmul.f32 %v2311_v57, %v447_v50  ;;  %v1067_v52 = vmul.f32 %v2406_v43, %v575_v18  ;;  %v1006_v50 = vpop.permute.xlu1 %1005  ;;  %v1001_v18 = vpop.permute.xlu0 %1000 }
 0x10d   :  { %v468_v59 = vadd.f32 %v1844_v48, %v2354_v19  ;;  %v596_v27 = vadd.f32 %v1876_v7, %v2354_v19  ;;  %v459_v15 = vpop.f32.mrf.mxu0  ;;  %v587_v25 = vpop.f32.mrf.mxu1 }
 0x10e   :  { %1743 = vst [vmem:[%s2590_s4 + $0x48] sm:$0xff] %v1623_v16   ;;  %1759 = vst [vmem:[%s2590_s4 + $0xc8] sm:$0xff] %v1703_v47   ;;  %v1618_v57 = vpack.c.bf16 %v1035_v60, %v1034_v49  ;;  %v1698_v58 = vpack.c.bf16 %v1067_v52, %v1066_v17  ;;  %v460_v43 = vadd.f32 %v2354_v19, %v459_v15 }
 0x10f   :  { %v588_v11 = vadd.f32 %v2354_v19, %v587_v25  ;;  %v1845_v42 = vpop.f32.mrf.mxu0  ;;  %v1877_v10 = vpop.f32.mrf.mxu1  ;;  %v1040_v9 = vmul.f32 %v2325_v0, %v468_v59  ;;  %v1072_v56 = vmul.f32 %v971_v26, %v596_v27 }
 0x110   :  { %1742 = vst [vmem:[%s2590_s4 + $0x40] sm:$0xff] %v1618_v57   ;;  %1758 = vst [vmem:[%s2590_s4 + $0xc0] sm:$0xff] %v1698_v58   ;;  %v471_v28 = vadd.f32 %v1845_v42, %v2354_v19  ;;  %v599_v44 = vadd.f32 %v1877_v10, %v2354_v19  ;;  %v1038_v55 = vmul.f32 %v2321_v62, %v460_v43  ;;  %v1016_v42 = vpop.permute.xlu1 %1015  ;;  %v1011_v10 = vpop.permute.xlu0 %1010 }
 0x111   :  { %v462_v29 = vpop.f32.mrf.mxu0  ;;  %v590_v6 = vpop.f32.mrf.mxu1  ;;  %v1070_v32 = vmul.f32 %v2460_v14, %v588_v11 }
 0x112   :  { %v1041_v5 = vmul.f32 %v2323_v63, %v471_v28  ;;  %v1073_v33 = vmul.f32 %v976_v21, %v599_v44  ;;  %v463_v34 = vadd.f32 %v2354_v19, %v462_v29  ;;  %v591_v35 = vadd.f32 %v2354_v19, %v590_v6 }
 0x113   :  { %v1848_v36 = vpop.f32.mrf.mxu0  ;;  %v1880_v37 = vpop.f32.mrf.mxu1 }
 0x114   :  { %v1633_v53 = vpack.c.bf16 %v1041_v5, %v1040_v9  ;;  %v1713_v0 = vpack.c.bf16 %v1073_v33, %v1072_v56  ;;  %v1039_v38 = vmul.f32 %v2319_v61, %v463_v34  ;;  %v1071_v40 = vmul.f32 %v2458_v13, %v591_v35  ;;  %v2594_v5 = vld [vmem:[#allocation4_spill] sm:$0xff] }
 0x115   :  { %v484_v63 = vadd.f32 %v1848_v36, %v2354_v19  ;;  %v612_v20 = vadd.f32 %v1880_v37, %v2354_v19  ;;  %v475_v21 = vpop.f32.mrf.mxu0  ;;  %v603_v26 = vpop.f32.mrf.mxu1 }
 0x116   :  { %1745 = vst [vmem:[%s2590_s4 + $0x58] sm:$0xff] %v1633_v53   ;;  %1761 = vst [vmem:[%s2590_s4 + $0xd8] sm:$0xff] %v1713_v0   ;;  %v1628_v62 = vpack.c.bf16 %v1039_v38, %v1038_v55  ;;  %v1708_v14 = vpack.c.bf16 %v1071_v40, %v1070_v32  ;;  %v476_v61 = vadd.f32 %v2354_v19, %v475_v21  ;;  %v2595_v32 = vld [vmem:[#allocation3_spill] sm:$0xff]  ;;  %v2596_v53 = vld [vmem:[#allocation2_spill] sm:$0xff] }
 0x117   :  { %v604_v13 = vadd.f32 %v2354_v19, %v603_v26  ;;  %v1849_v23 = vpop.f32.mrf.mxu0  ;;  %v1881_v30 = vpop.f32.mrf.mxu1  ;;  %v1044_v22 = vmul.f32 %v2333_v4, %v484_v63  ;;  %v1076_v41 = vmul.f32 %v991_v39, %v612_v20 }
 0x118   :  { %1744 = vst [vmem:[%s2590_s4 + $0x50] sm:$0xff] %v1628_v62   ;;  %1760 = vst [vmem:[%s2590_s4 + $0xd0] sm:$0xff] %v1708_v14   ;;  %v487_v31 = vadd.f32 %v1849_v23, %v2354_v19  ;;  %v615_v51 = vadd.f32 %v1881_v30, %v2354_v19  ;;  %v1042_v16 = vmul.f32 %v2329_v2, %v476_v61 }
 0x119   :  { %v478_v12 = vpop.f32.mrf.mxu0  ;;  %v606_v24 = vpop.f32.mrf.mxu1  ;;  %v1074_v47 = vmul.f32 %v981_v46, %v604_v13 }
 0x11a   :  { %v1045_v49 = vmul.f32 %v2331_v3, %v487_v31  ;;  %v1077_v17 = vmul.f32 %v996_v54, %v615_v51  ;;  %v479_v48 = vadd.f32 %v2354_v19, %v478_v12  ;;  %v607_v7 = vadd.f32 %v2354_v19, %v606_v24 }
 0x11b   :  { %v1852_v60 = vpop.f32.mrf.mxu0  ;;  %v1884_v52 = vpop.f32.mrf.mxu1 }
 0x11c   :  { %v1643_v59 = vpack.c.bf16 %v1045_v49, %v1044_v22  ;;  %v1723_v27 = vpack.c.bf16 %v1077_v17, %v1076_v41  ;;  %v1043_v4 = vmul.f32 %v2327_v1, %v479_v48  ;;  %v1075_v15 = vmul.f32 %v2499_v45, %v607_v7 }
 0x11d   :  { %v500_v25 = vadd.f32 %v1852_v60, %v2354_v19  ;;  %v628_v3 = vadd.f32 %v1884_v52, %v2354_v19  ;;  %v491_v57 = vpop.f32.mrf.mxu0  ;;  %v619_v58 = vpop.f32.mrf.mxu1 }
 0x11e   :  { %1747 = vst [vmem:[%s2590_s4 + $0x68] sm:$0xff] %v1643_v59   ;;  %1763 = vst [vmem:[%s2590_s4 + $0xe8] sm:$0xff] %v1723_v27   ;;  %v1638_v2 = vpack.c.bf16 %v1043_v4, %v1042_v16  ;;  %v1718_v46 = vpack.c.bf16 %v1075_v15, %v1074_v47  ;;  %v492_v1 = vadd.f32 %v2354_v19, %v491_v57 }
 0x11f   :  { %v620_v45 = vadd.f32 %v2354_v19, %v619_v58  ;;  %v1853_v43 = vpop.f32.mrf.mxu0  ;;  %v1885_v11 = vpop.f32.mrf.mxu1  ;;  %v1048_v9 = vmul.f32 %v2341_v8, %v500_v25  ;;  %v1080_v56 = vmul.f32 %v1011_v10, %v628_v3 }
 0x120   :  { %1746 = vst [vmem:[%s2590_s4 + $0x60] sm:$0xff] %v1638_v2   ;;  %1762 = vst [vmem:[%s2590_s4 + $0xe0] sm:$0xff] %v1718_v46   ;;  %v503_v28 = vadd.f32 %v1853_v43, %v2354_v19  ;;  %v631_v44 = vadd.f32 %v1885_v11, %v2354_v19  ;;  %v1046_v36 = vmul.f32 %v2595_v32, %v492_v1 }
 0x121   :  { %v494_v29 = vpop.f32.mrf.mxu0  ;;  %v622_v6 = vpop.f32.mrf.mxu1  ;;  %v1078_v37 = vmul.f32 %v1001_v18, %v620_v45 }
 0x122   :  { %v1049_v33 = vmul.f32 %v2594_v5, %v503_v28  ;;  %v1081_v34 = vmul.f32 %v1016_v42, %v631_v44  ;;  %v495_v35 = vadd.f32 %v2354_v19, %v494_v29  ;;  %v623_v55 = vadd.f32 %v2354_v19, %v622_v6 }
 0x124   :  { %v1653_v54 = vpack.c.bf16 %v1049_v33, %v1048_v9  ;;  %v1733_v39 = vpack.c.bf16 %v1081_v34, %v1080_v56  ;;  %v1047_v0 = vmul.f32 %v2596_v53, %v495_v35  ;;  %v1079_v38 = vmul.f32 %v1006_v50, %v623_v55 }
 0x126   :  { %1749 = vst [vmem:[%s2590_s4 + $0x78] sm:$0xff] %v1653_v54   ;;  %1765 = vst [vmem:[%s2590_s4 + $0xf8] sm:$0xff] %v1733_v39   ;;  %v1648_v8 = vpack.c.bf16 %v1047_v0, %v1046_v36  ;;  %v1728_v40 = vpack.c.bf16 %v1079_v38, %v1078_v37 }
 0x128   :  { %1748 = vst [vmem:[%s2590_s4 + $0x70] sm:$0xff] %v1648_v8   ;;  %1764 = vst [vmem:[%s2590_s4 + $0xf0] sm:$0xff] %v1728_v40  }

// kernel: gcn_forward.8
= control target key start
LH: loop header
LB: loop body
LE: loop exit
PB: predicated region body
PF: predicated region fallthrough
CT: control target
= control target key end

     0   :  { %v2661_v0 = vmov 0.0   ;;  %s3209_s0 = inlined_call_operand.<no memory space> [shape: s32[1,1], index: 0, kind: input, shape index: {}]   ;;  %s3210_s1 = inlined_call_operand.<no memory space> [shape: s32[1], index: 1, kind: input, shape index: {}]   ;;  %s3211_s3 = inlined_call_operand.vmem [shape: bf16[512,128], index: 3, kind: input, shape index: {}]   ;;  %s3212_s4 = inlined_call_operand.vmem [shape: f32[512,1], index: 4, kind: input, shape index: {}]   ;;  %s3213_s5 = inlined_call_operand.vmem [shape: bf16[512,128], index: 5, kind: output, shape index: {}]   ;;  %s3214_s2 = inlined_call_operand.vmem [shape: s8[512,512], index: 2, kind: input, shape index: {}]  }
   0x1   :  { %10 = sst [smem:[#allocation4]] %s3209_s0  ;;  %s2267_s22 = sshll.u32 %s3209_s0, 2  ;;  %60 = vst [vmem:[#allocation2 + $0xb0] sm:$0xff] %v2661_v0  ;;  %61 = vst [vmem:[#allocation2 + $0x1b0] sm:$0xff] %v2661_v0 }
   0x2   :  { %62 = vst [vmem:[#allocation2 + $0xd8] sm:$0xff] %v2661_v0  ;;  %63 = vst [vmem:[#allocation2 + $0x18] sm:$0xff] %v2661_v0  ;;  %p46_p0 = scmp.lt.s32.totalorder %s2267_s22, 3  ;;  %p2270_p1 = scmp.le.s32.totalorder %s3210_s1, 0 }
   0x3   :  { %64 = vst [vmem:[#allocation2 + $0x50] sm:$0xff] %v2661_v0  ;;  %65 = vst [vmem:[#allocation2 + $0x168] sm:$0xff] %v2661_v0  ;;  %s324_s8 = sld [smem:[#allocation4]] (!%p2270_p1) }
   0x4   :  { %66 = vst [vmem:[#allocation2 + $0x130] sm:$0xff] %v2661_v0  ;;  %67 = vst [vmem:[#allocation2 + $0x48] sm:$0xff] %v2661_v0  ;;  %s3216_s22 = smov (!%p46_p0, %s2267_s22), 3 }
   0x5   :  { %68 = vst [vmem:[#allocation2 + $0x180] sm:$0xff] %v2661_v0  ;;  %69 = vst [vmem:[#allocation2 + $0x110] sm:$0xff] %v2661_v0  ;;  %s2268_s27 = sshll.u32 %s3216_s22, 3 }
   0x6   :  { %70 = vst [vmem:[#allocation2 + $0x118] sm:$0xff] %v2661_v0  ;;  %71 = vst [vmem:[#allocation2 + $0x98] sm:$0xff] %v2661_v0  ;;  %s2775_s30 = scalar_lea.vmem %s3214_s2, %s2268_s27 }
   0x7   :  { %72 = vst [vmem:[#allocation2 + $0x120] sm:$0xff] %v2661_v0  ;;  %73 = vst [vmem:[#allocation2 + $0x150] sm:$0xff] %v2661_v0 }
   0x8   :  { %74 = vst [vmem:[#allocation2 + $0x108] sm:$0xff] %v2661_v0  ;;  %75 = vst [vmem:[#allocation2 + $0x60] sm:$0xff] %v2661_v0 }
   0x9   :  { %76 = vst [vmem:[#allocation2 + $0xe0] sm:$0xff] %v2661_v0  ;;  %77 = vst [vmem:[#allocation2 + $0x188] sm:$0xff] %v2661_v0  ;;  %s2271_s0 = sshll.u32 (!%p2270_p1), %s324_s8, 9 }
   0xa   :  { %78 = vst [vmem:[#allocation2 + $0x138] sm:$0xff] %v2661_v0  ;;  %79 = vst [vmem:[#allocation2 + $0x140] sm:$0xff] %v2661_v0  ;;  %s326_s1 = sshra.s32 (!%p2270_p1), %s2271_s0, 3 }
   0xb   :  { %80 = vst [vmem:[#allocation2 + $0x80] sm:$0xff] %v2661_v0  ;;  %81 = vst [vmem:[#allocation2 + $0x1a8] sm:$0xff] %v2661_v0  ;;  %s2272_s2 = sshll.u32 (!%p2270_p1), %s326_s1, 2 }
   0xc   :  { %82 = vst [vmem:[#allocation2 + $0x1b8] sm:$0xff] %v2661_v0  ;;  %83 = vst [vmem:[#allocation2 + $0x28] sm:$0xff] %v2661_v0  ;;  %s2793_s11 = scalar_lea.vmem (!%p2270_p1), %s3211_s3, %s2272_s2 }
   0xd   :  { %84 = vst [vmem:[#allocation2 + $0x1e8] sm:$0xff] %v2661_v0  ;;  %85 = vst [vmem:[#allocation2 + $0xf8] sm:$0xff] %v2661_v0 }
   0xe   :  { %86 = vst [vmem:[#allocation2 + $0x160] sm:$0xff] %v2661_v0  ;;  %87 = vst [vmem:[#allocation2 + $0x30] sm:$0xff] %v2661_v0 }
   0xf   :  { %88 = vst [vmem:[#allocation2 + $0x1e0] sm:$0xff] %v2661_v0  ;;  %89 = vst [vmem:[#allocation2] sm:$0xff] %v2661_v0 }
  0x10   :  { %90 = vst [vmem:[#allocation2 + $0xf0] sm:$0xff] %v2661_v0  ;;  %91 = vst [vmem:[#allocation2 + $0x8] sm:$0xff] %v2661_v0 }
  0x11   :  { %92 = vst [vmem:[#allocation2 + $0x148] sm:$0xff] %v2661_v0  ;;  %93 = vst [vmem:[#allocation2 + $0x1d0] sm:$0xff] %v2661_v0 }
  0x12   :  { %94 = vst [vmem:[#allocation2 + $0x100] sm:$0xff] %v2661_v0  ;;  %95 = vst [vmem:[#allocation2 + $0xc8] sm:$0xff] %v2661_v0 }
  0x13   :  { %96 = vst [vmem:[#allocation2 + $0x40] sm:$0xff] %v2661_v0  ;;  %97 = vst [vmem:[#allocation2 + $0x1f8] sm:$0xff] %v2661_v0 }
  0x14   :  { %98 = vst [vmem:[#allocation2 + $0x20] sm:$0xff] %v2661_v0  ;;  %99 = vst [vmem:[#allocation2 + $0x128] sm:$0xff] %v2661_v0 }
  0x15   :  { %100 = vst [vmem:[#allocation2 + $0x1a0] sm:$0xff] %v2661_v0  ;;  %101 = vst [vmem:[#allocation2 + $0x1f0] sm:$0xff] %v2661_v0 }
  0x16   :  { %102 = vst [vmem:[#allocation2 + $0xe8] sm:$0xff] %v2661_v0  ;;  %103 = vst [vmem:[#allocation2 + $0x78] sm:$0xff] %v2661_v0 }
  0x17   :  { %104 = vst [vmem:[#allocation2 + $0x70] sm:$0xff] %v2661_v0  ;;  %105 = vst [vmem:[#allocation2 + $0x90] sm:$0xff] %v2661_v0 }
  0x18   :  { %106 = vst [vmem:[#allocation2 + $0x1d8] sm:$0xff] %v2661_v0  ;;  %107 = vst [vmem:[#allocation2 + $0xd0] sm:$0xff] %v2661_v0 }
  0x19   :  { %108 = vst [vmem:[#allocation2 + $0xb8] sm:$0xff] %v2661_v0  ;;  %109 = vst [vmem:[#allocation2 + $0x88] sm:$0xff] %v2661_v0 }
  0x1a   :  { %110 = vst [vmem:[#allocation2 + $0xa8] sm:$0xff] %v2661_v0  ;;  %111 = vst [vmem:[#allocation2 + $0x1c8] sm:$0xff] %v2661_v0 }
  0x1b   :  { %112 = vst [vmem:[#allocation2 + $0x170] sm:$0xff] %v2661_v0  ;;  %113 = vst [vmem:[#allocation2 + $0x178] sm:$0xff] %v2661_v0 }
  0x1c   :  { %114 = vst [vmem:[#allocation2 + $0x68] sm:$0xff] %v2661_v0  ;;  %115 = vst [vmem:[#allocation2 + $0x190] sm:$0xff] %v2661_v0  ;;  %128 = sbr.rel (%p2270_p1) target bundleno = 550 (0x226), region = 21 }
  0x1d   :  { %116 = vst [vmem:[#allocation2 + $0x198] sm:$0xff] %v2661_v0  ;;  %117 = vst [vmem:[#allocation2 + $0x38] sm:$0xff] %v2661_v0 }
  0x1e   :  { %118 = vst [vmem:[#allocation2 + $0xc0] sm:$0xff] %v2661_v0  ;;  %119 = vst [vmem:[#allocation2 + $0x1c0] sm:$0xff] %v2661_v0 }
  0x1f   :  { %120 = vst [vmem:[#allocation2 + $0x158] sm:$0xff] %v2661_v0  ;;  %121 = vst [vmem:[#allocation2 + $0x10] sm:$0xff] %v2661_v0 }
  0x20   :  { %122 = vst [vmem:[#allocation2 + $0x58] sm:$0xff] %v2661_v0  ;;  %123 = vst [vmem:[#allocation2 + $0xa0] sm:$0xff] %v2661_v0 }
  0x21   :  { %v2781_v1 = vld [vmem:[%s2775_s30 + $0x8] sm:$0xff]  ;;  %v2784_v2 = vld [vmem:[%s2775_s30 + $0x18] sm:$0xff]  ;;  %v2662_v3 = vmov 0   ;;  %v2629_v8 = vld [vmem:[%s2793_s11 + $0x30] sm:$0xff]  }
  0x22   :  { %650 = vmatprep.subr.bf16.mxu0 %v2662_v3  ;;  %939 = vmatprep.subr.bf16.mxu1 %v2662_v3  ;;  %v194_v4 = vunpack.c.l.s8.bf16 %v2781_v1  ;;  %v196_v5 = vunpack.c.l.s8.bf16 %v2784_v2  ;;  %v2627_v6 = vld [vmem:[%s2793_s11 + $0x38] sm:$0xff]   ;;  %v2630_v9 = vld [vmem:[%s2793_s11 + $0xb0] sm:$0xff]   ;;  %v2631_v10 = vld [vmem:[%s2793_s11 + $0x28] sm:$0xff]   ;;  %v198_v41 = vunpack.c.h.s8.bf16 %v2781_v1  ;;  %v200_v43 = vunpack.c.h.s8.bf16 %v2784_v2 }
  0x23   :  { %v2628_v7 = vld [vmem:[%s2793_s11 + $0xb8] sm:$0xff]   ;;  %651 = vmatpush1.bf16.msra.mxu0 %v2627_v6  ;;  %v2632_v11 = vld [vmem:[%s2793_s11 + $0xa8] sm:$0xff]   ;;  %v2633_v12 = vld [vmem:[%s2793_s11 + $0x20] sm:$0xff]  }
  0x24   :  { %682 = vmatprep.mubr.bf16.mxu0 %v194_v4  ;;  %971 = vmatprep.mubr.bf16.mxu1 %v196_v5  ;;  %v2634_v13 = vld [vmem:[%s2793_s11 + $0xa0] sm:$0xff]   ;;  %v2635_v14 = vld [vmem:[%s2793_s11 + $0x18] sm:$0xff]   ;;  %v2637_v16 = vld [vmem:[%s2793_s11 + $0x10] sm:$0xff]  }
  0x25   :  { %940 = vmatpush1.bf16.msra.mxu1 %v2628_v7  ;;  %652 = vmatprep.subr.bf16.mxu0 %v2662_v3  ;;  %v2636_v15 = vld [vmem:[%s2793_s11 + $0x98] sm:$0xff]   ;;  %v2638_v17 = vld [vmem:[%s2793_s11 + $0x90] sm:$0xff]   ;;  %v2639_v18 = vld [vmem:[%s2793_s11 + $0x8] sm:$0xff]  }
  0x26   :  { %941 = vmatprep.subr.bf16.mxu1 %v2662_v3  ;;  %v2640_v19 = vld [vmem:[%s2793_s11 + $0x88] sm:$0xff]   ;;  %v2641_v20 = vld [vmem:[%s2793_s11] sm:$0xff]   ;;  %v2643_v22 = vld [vmem:[%s2793_s11 + $0x78] sm:$0xff]  }
  0x27   :  { %653 = vmatpush1.bf16.msra.mxu0 %v2629_v8  ;;  %v2642_v21 = vld [vmem:[%s2793_s11 + $0x80] sm:$0xff]   ;;  %v2644_v23 = vld [vmem:[%s2793_s11 + $0xf8] sm:$0xff]   ;;  %v2645_v24 = vld [vmem:[%s2793_s11 + $0x70] sm:$0xff]  }
  0x28   :  { %654 = vmatprep.subr.bf16.mxu0 %v2662_v3  ;;  %v2646_v25 = vld [vmem:[%s2793_s11 + $0xf0] sm:$0xff]   ;;  %v2647_v26 = vld [vmem:[%s2793_s11 + $0x68] sm:$0xff]   ;;  %v2649_v28 = vld [vmem:[%s2793_s11 + $0x60] sm:$0xff]  }
  0x29   :  { %942 = vmatpush1.bf16.msra.mxu1 %v2630_v9  ;;  %v2648_v27 = vld [vmem:[%s2793_s11 + $0xe8] sm:$0xff]   ;;  %v2650_v29 = vld [vmem:[%s2793_s11 + $0xe0] sm:$0xff]   ;;  %v2651_v30 = vld [vmem:[%s2793_s11 + $0x58] sm:$0xff]  }
  0x2a   :  { %943 = vmatprep.subr.bf16.mxu1 %v2662_v3  ;;  %v2652_v31 = vld [vmem:[%s2793_s11 + $0xd8] sm:$0xff]   ;;  %v2653_v32 = vld [vmem:[%s2793_s11 + $0x50] sm:$0xff]   ;;  %v2655_v34 = vld [vmem:[%s2793_s11 + $0x48] sm:$0xff]  }
  0x2b   :  { %655 = vmatpush1.bf16.msra.mxu0 %v2631_v10  ;;  %v2654_v33 = vld [vmem:[%s2793_s11 + $0xd0] sm:$0xff]   ;;  %v2656_v35 = vld [vmem:[%s2793_s11 + $0xc8] sm:$0xff]   ;;  %v2657_v36 = vld [vmem:[%s2793_s11 + $0x40] sm:$0xff]  }
  0x2c   :  { %656 = vmatprep.subr.bf16.mxu0 %v2662_v3  ;;  %v129_v37 = vld [vmem:[%s2775_s30] sm:$0xff]  ;;  %v131_v39 = vld [vmem:[%s2775_s30 + $0x10] sm:$0xff]  ;;  %v134_v44 = vld [vmem:[%s2775_s30 + $0x28] sm:$0xff] }
  0x2d   :  { %944 = vmatpush1.bf16.msra.mxu1 %v2632_v11  ;;  %v2658_v38 = vld [vmem:[%s2793_s11 + $0xc0] sm:$0xff]   ;;  %v193_v40 = vunpack.c.l.s8.bf16 %v129_v37  ;;  %v195_v42 = vunpack.c.l.s8.bf16 %v131_v39  ;;  %v136_v45 = vld [vmem:[%s2775_s30 + $0x38] sm:$0xff]  ;;  %v197_v46 = vunpack.c.h.s8.bf16 %v129_v37  ;;  %v199_v47 = vunpack.c.h.s8.bf16 %v131_v39  ;;  %v135_v51 = vld [vmem:[%s2775_s30 + $0x30] sm:$0xff] }
  0x2e   :  { %945 = vmatprep.subr.bf16.mxu1 %v2662_v3  ;;  %v202_v48 = vunpack.c.l.s8.bf16 %v134_v44  ;;  %v204_v49 = vunpack.c.l.s8.bf16 %v136_v45  ;;  %v133_v50 = vld [vmem:[%s2775_s30 + $0x20] sm:$0xff]  ;;  %v203_v53 = vunpack.c.l.s8.bf16 %v135_v51  ;;  %v206_v54 = vunpack.c.h.s8.bf16 %v134_v44  ;;  %v138_v56 = vld [vmem:[%s2775_s30 + $0x48] sm:$0xff]  ;;  %v140_v57 = vld [vmem:[%s2775_s30 + $0x58] sm:$0xff] }
  0x2f   :  { %657 = vmatpush1.bf16.msra.mxu0 %v2633_v12  ;;  %v201_v52 = vunpack.c.l.s8.bf16 %v133_v50  ;;  %v208_v55 = vunpack.c.h.s8.bf16 %v136_v45  ;;  %v205_v58 = vunpack.c.h.s8.bf16 %v133_v50  ;;  %v207_v59 = vunpack.c.h.s8.bf16 %v135_v51  ;;  %v137_v62 = vld [vmem:[%s2775_s30 + $0x40] sm:$0xff]  ;;  %v139_v63 = vld [vmem:[%s2775_s30 + $0x50] sm:$0xff]  ;;  %v142_v4 = vld [vmem:[%s2775_s30 + $0x68] sm:$0xff] }
  0x30   :  { %658 = vmatprep.subr.bf16.mxu0 %v2662_v3  ;;  %v210_v60 = vunpack.c.l.s8.bf16 %v138_v56  ;;  %v212_v61 = vunpack.c.l.s8.bf16 %v140_v57  ;;  %v209_v0 = vunpack.c.l.s8.bf16 %v137_v62  ;;  %v211_v1 = vunpack.c.l.s8.bf16 %v139_v63  ;;  %v144_v5 = vld [vmem:[%s2775_s30 + $0x78] sm:$0xff]  ;;  %v141_v10 = vld [vmem:[%s2775_s30 + $0x60] sm:$0xff]  ;;  %v143_v11 = vld [vmem:[%s2775_s30 + $0x70] sm:$0xff] }
  0x31   :  { %946 = vmatpush1.bf16.msra.mxu1 %v2634_v13  ;;  %v214_v2 = vunpack.c.h.s8.bf16 %v138_v56  ;;  %v213_v6 = vunpack.c.h.s8.bf16 %v137_v62  ;;  %v215_v7 = vunpack.c.h.s8.bf16 %v139_v63  ;;  %v218_v8 = vunpack.c.l.s8.bf16 %v142_v4 }
  0x32   :  { %947 = vmatprep.subr.bf16.mxu1 %v2662_v3  ;;  %v220_v9 = vunpack.c.l.s8.bf16 %v144_v5  ;;  %v217_v12 = vunpack.c.l.s8.bf16 %v141_v10  ;;  %v219_v13 = vunpack.c.l.s8.bf16 %v143_v11 }
  0x33   :  { %659 = vmatpush1.bf16.msra.mxu0 %v2635_v14  ;;  %v222_v14 = vunpack.c.h.s8.bf16 %v142_v4 }
  0x34   :  { %660 = vmatprep.subr.bf16.mxu0 %v2662_v3 }
  0x35   :  { %948 = vmatpush1.bf16.msra.mxu1 %v2636_v15  ;;  %v224_v15 = vunpack.c.h.s8.bf16 %v144_v5 }
  0x36   :  { %949 = vmatprep.subr.bf16.mxu1 %v2662_v3 }
  0x37   :  { %661 = vmatpush1.bf16.msra.mxu0 %v2637_v16  ;;  %v146_v16 = vld [vmem:[%s2775_s30 + $0x88] sm:$0xff] }
  0x38   :  { %662 = vmatprep.subr.bf16.mxu0 %v2662_v3 }
  0x39   :  { %950 = vmatpush1.bf16.msra.mxu1 %v2638_v17  ;;  %v148_v17 = vld [vmem:[%s2775_s30 + $0x98] sm:$0xff] }
  0x3a   :  { %951 = vmatprep.subr.bf16.mxu1 %v2662_v3 }
  0x3b   :  { %663 = vmatpush1.bf16.msra.mxu0 %v2639_v18  ;;  %v221_v18 = vunpack.c.h.s8.bf16 %v141_v10 }
  0x3c   :  { %664 = vmatprep.subr.bf16.mxu0 %v2662_v3 }
  0x3d   :  { %952 = vmatpush1.bf16.msra.mxu1 %v2640_v19  ;;  %v223_v19 = vunpack.c.h.s8.bf16 %v143_v11 }
  0x3e   :  { %953 = vmatprep.subr.bf16.mxu1 %v2662_v3 }
  0x3f   :  { %665 = vmatpush1.bf16.msra.mxu0 %v2641_v20  ;;  %v226_v20 = vunpack.c.l.s8.bf16 %v146_v16 }
  0x40   :  { %666 = vmatprep.subr.bf16.mxu0 %v2662_v3 }
  0x41   :  { %954 = vmatpush1.bf16.msra.mxu1 %v2642_v21  ;;  %v228_v21 = vunpack.c.l.s8.bf16 %v148_v17 }
  0x42   :  { %955 = vmatprep.subr.bf16.mxu1 %v2662_v3 }
  0x43   :  { %667 = vmatpush2.bf16.msra.mxu0 %v2643_v22  ;;  %v145_v22 = vld [vmem:[%s2775_s30 + $0x80] sm:$0xff] }
  0x44   :  { %668 = vmatprep.subr.bf16.mxu0 %v2662_v3 }
  0x45   :  { %956 = vmatpush2.bf16.msra.mxu1 %v2644_v23  ;;  %v147_v23 = vld [vmem:[%s2775_s30 + $0x90] sm:$0xff] }
  0x46   :  { %957 = vmatprep.subr.bf16.mxu1 %v2662_v3 }
  0x47   :  { %669 = vmatpush2.bf16.msra.mxu0 %v2645_v24  ;;  %v225_v24 = vunpack.c.l.s8.bf16 %v145_v22 }
  0x48   :  { %670 = vmatprep.subr.bf16.mxu0 %v2662_v3 }
  0x49   :  { %958 = vmatpush2.bf16.msra.mxu1 %v2646_v25  ;;  %v227_v25 = vunpack.c.l.s8.bf16 %v147_v23 }
  0x4a   :  { %959 = vmatprep.subr.bf16.mxu1 %v2662_v3 }
  0x4b   :  { %671 = vmatpush2.bf16.msra.mxu0 %v2647_v26  ;;  %v230_v26 = vunpack.c.h.s8.bf16 %v146_v16 }
  0x4c   :  { %672 = vmatprep.subr.bf16.mxu0 %v2662_v3 }
  0x4d   :  { %960 = vmatpush2.bf16.msra.mxu1 %v2648_v27  ;;  %v232_v27 = vunpack.c.h.s8.bf16 %v148_v17 }
  0x4e   :  { %961 = vmatprep.subr.bf16.mxu1 %v2662_v3 }
  0x4f   :  { %673 = vmatpush2.bf16.msra.mxu0 %v2649_v28  ;;  %v150_v28 = vld [vmem:[%s2775_s30 + $0xa8] sm:$0xff] }
  0x50   :  { %674 = vmatprep.subr.bf16.mxu0 %v2662_v3 }
  0x51   :  { %962 = vmatpush2.bf16.msra.mxu1 %v2650_v29  ;;  %v152_v29 = vld [vmem:[%s2775_s30 + $0xb8] sm:$0xff] }
  0x52   :  { %963 = vmatprep.subr.bf16.mxu1 %v2662_v3  ;;  %v240_v39 = vunpack.c.h.s8.bf16 %v152_v29 }
  0x53   :  { %675 = vmatpush2.bf16.msra.mxu0 %v2651_v30  ;;  %v229_v30 = vunpack.c.h.s8.bf16 %v145_v22 }
  0x54   :  { %676 = vmatprep.subr.bf16.mxu0 %v2662_v3 }
  0x55   :  { %964 = vmatpush2.bf16.msra.mxu1 %v2652_v31  ;;  %v231_v31 = vunpack.c.h.s8.bf16 %v147_v23 }
  0x56   :  { %965 = vmatprep.subr.bf16.mxu1 %v2662_v3 }
  0x57   :  { %677 = vmatpush2.bf16.msra.mxu0 %v2653_v32  ;;  %v234_v32 = vunpack.c.l.s8.bf16 %v150_v28 }
  0x58   :  { %678 = vmatprep.subr.bf16.mxu0 %v2662_v3 }
  0x59   :  { %966 = vmatpush2.bf16.msra.mxu1 %v2654_v33  ;;  %v236_v33 = vunpack.c.l.s8.bf16 %v152_v29 }
  0x5a   :  { %967 = vmatprep.subr.bf16.mxu1 %v2662_v3 }
  0x5b   :  { %679 = vmatpush2.bf16.msra.mxu0 %v2655_v34  ;;  %v149_v34 = vld [vmem:[%s2775_s30 + $0xa0] sm:$0xff] }
  0x5c   :  { %680 = vmatprep.subr.bf16.mxu0 %v2662_v3 }
  0x5d   :  { %968 = vmatpush2.bf16.msra.mxu1 %v2656_v35  ;;  %v151_v35 = vld [vmem:[%s2775_s30 + $0xb0] sm:$0xff] }
  0x5e   :  { %969 = vmatprep.subr.bf16.mxu1 %v2662_v3  ;;  %v216_v3 = vunpack.c.h.s8.bf16 %v140_v57  ;;  %v235_v37 = vunpack.c.l.s8.bf16 %v151_v35 }
  0x5f   :  { %681 = vmatpush2.bf16.msra.mxu0 %v2657_v36  ;;  %v233_v36 = vunpack.c.l.s8.bf16 %v149_v34 }
  0x61   :  { %970 = vmatpush2.bf16.msra.mxu1 %v2658_v38  ;;  %v238_v38 = vunpack.c.h.s8.bf16 %v150_v28 }
  0x62   :  { %683 = vmatmul.mubr.bf16.vlgmr.msra.gmra.mxu0 %v193_v40  ;;  %v154_v40 = vld [vmem:[%s2775_s30 + $0xc8] sm:$0xff] }
  0x63   :  { %690 = vmatprep.mubr.bf16.mxu0 %v198_v41  ;;  %v156_v41 = vld [vmem:[%s2775_s30 + $0xd8] sm:$0xff]  ;;  %v242_v44 = vunpack.c.l.s8.bf16 %v154_v40  ;;  %v246_v50 = vunpack.c.h.s8.bf16 %v154_v40 }
  0x64   :  { %972 = vmatmul.mubr.bf16.vlgmr.msra.gmra.mxu1 %v195_v42  ;;  %v237_v42 = vunpack.c.h.s8.bf16 %v149_v34  ;;  %v244_v45 = vunpack.c.l.s8.bf16 %v156_v41  ;;  %v248_v51 = vunpack.c.h.s8.bf16 %v156_v41 }
  0x65   :  { %979 = vmatprep.mubr.bf16.mxu1 %v200_v43  ;;  %v239_v43 = vunpack.c.h.s8.bf16 %v151_v35 }
  0x6a   :  { %691 = vmatmul.mubr.bf16.gmra.mxu0 %v197_v46  ;;  %v153_v46 = vld [vmem:[%s2775_s30 + $0xc0] sm:$0xff] }
  0x6b   :  { %698 = vmatprep.mubr.bf16.mxu0 %v202_v48  ;;  %v241_v48 = vunpack.c.l.s8.bf16 %v153_v46 }
  0x6c   :  { %980 = vmatmul.mubr.bf16.gmra.mxu1 %v199_v47  ;;  %v155_v47 = vld [vmem:[%s2775_s30 + $0xd0] sm:$0xff] }
  0x6d   :  { %987 = vmatprep.mubr.bf16.mxu1 %v204_v49  ;;  %v243_v49 = vunpack.c.l.s8.bf16 %v155_v47 }
  0x72   :  { %699 = vmatmul.mubr.bf16.gmra.mxu0 %v201_v52  ;;  %v158_v52 = vld [vmem:[%s2775_s30 + $0xe8] sm:$0xff] }
  0x73   :  { %706 = vmatprep.mubr.bf16.mxu0 %v206_v54  ;;  %v245_v54 = vunpack.c.h.s8.bf16 %v153_v46  ;;  %v250_v56 = vunpack.c.l.s8.bf16 %v158_v52  ;;  %v254_v62 = vunpack.c.h.s8.bf16 %v158_v52 }
  0x74   :  { %988 = vmatmul.mubr.bf16.gmra.mxu1 %v203_v53  ;;  %v160_v53 = vld [vmem:[%s2775_s30 + $0xf8] sm:$0xff] }
  0x75   :  { %995 = vmatprep.mubr.bf16.mxu1 %v208_v55  ;;  %v247_v55 = vunpack.c.h.s8.bf16 %v155_v47  ;;  %v252_v57 = vunpack.c.l.s8.bf16 %v160_v53  ;;  %v256_v63 = vunpack.c.h.s8.bf16 %v160_v53 }
  0x7a   :  { %707 = vmatmul.mubr.bf16.gmra.mxu0 %v205_v58  ;;  %v157_v58 = vld [vmem:[%s2775_s30 + $0xe0] sm:$0xff] }
  0x7b   :  { %714 = vmatprep.mubr.bf16.mxu0 %v210_v60  ;;  %v249_v60 = vunpack.c.l.s8.bf16 %v157_v58 }
  0x7c   :  { %996 = vmatmul.mubr.bf16.gmra.mxu1 %v207_v59  ;;  %v159_v59 = vld [vmem:[%s2775_s30 + $0xf0] sm:$0xff] }
  0x7d   :  { %1003 = vmatprep.mubr.bf16.mxu1 %v212_v61  ;;  %v251_v61 = vunpack.c.l.s8.bf16 %v159_v59 }
  0x82   :  { %715 = vmatmul.mubr.bf16.gmra.mxu0 %v209_v0  ;;  %v162_v0 = vld [vmem:[%s2775_s30 + $0x108] sm:$0xff] }
  0x83   :  { %722 = vmatprep.mubr.bf16.mxu0 %v214_v2  ;;  %v253_v2 = vunpack.c.h.s8.bf16 %v157_v58  ;;  %v258_v4 = vunpack.c.l.s8.bf16 %v162_v0  ;;  %v262_v10 = vunpack.c.h.s8.bf16 %v162_v0 }
  0x84   :  { %1004 = vmatmul.mubr.bf16.gmra.mxu1 %v211_v1  ;;  %v164_v1 = vld [vmem:[%s2775_s30 + $0x118] sm:$0xff] }
  0x85   :  { %1011 = vmatprep.mubr.bf16.mxu1 %v216_v3  ;;  %v255_v3 = vunpack.c.h.s8.bf16 %v159_v59  ;;  %v260_v5 = vunpack.c.l.s8.bf16 %v164_v1  ;;  %v264_v11 = vunpack.c.h.s8.bf16 %v164_v1  ;;  %v182_v1 = vld [vmem:[%s2775_s30 + $0x1a8] sm:$0xff] }
  0x8a   :  { %723 = vmatmul.mubr.bf16.gmra.mxu0 %v213_v6  ;;  %v161_v6 = vld [vmem:[%s2775_s30 + $0x100] sm:$0xff] }
  0x8b   :  { %730 = vmatprep.mubr.bf16.mxu0 %v218_v8  ;;  %v257_v8 = vunpack.c.l.s8.bf16 %v161_v6 }
  0x8c   :  { %1012 = vmatmul.mubr.bf16.gmra.mxu1 %v215_v7  ;;  %v163_v7 = vld [vmem:[%s2775_s30 + $0x110] sm:$0xff] }
  0x8d   :  { %1019 = vmatprep.mubr.bf16.mxu1 %v220_v9  ;;  %v259_v9 = vunpack.c.l.s8.bf16 %v163_v7 }
  0x92   :  { %731 = vmatmul.mubr.bf16.gmra.mxu0 %v217_v12  ;;  %v166_v12 = vld [vmem:[%s2775_s30 + $0x128] sm:$0xff] }
  0x93   :  { %738 = vmatprep.mubr.bf16.mxu0 %v222_v14  ;;  %v261_v14 = vunpack.c.h.s8.bf16 %v161_v6  ;;  %v266_v16 = vunpack.c.l.s8.bf16 %v166_v12  ;;  %v270_v22 = vunpack.c.h.s8.bf16 %v166_v12 }
  0x94   :  { %1020 = vmatmul.mubr.bf16.gmra.mxu1 %v219_v13  ;;  %v168_v13 = vld [vmem:[%s2775_s30 + $0x138] sm:$0xff] }
  0x95   :  { %1027 = vmatprep.mubr.bf16.mxu1 %v224_v15  ;;  %v263_v15 = vunpack.c.h.s8.bf16 %v163_v7  ;;  %v268_v17 = vunpack.c.l.s8.bf16 %v168_v13  ;;  %v272_v23 = vunpack.c.h.s8.bf16 %v168_v13  ;;  %v395_v7 = vld [vmem:[#allocation2 + $0x1b0] sm:$0xff] }
  0x9a   :  { %739 = vmatmul.mubr.bf16.gmra.mxu0 %v221_v18  ;;  %v165_v18 = vld [vmem:[%s2775_s30 + $0x120] sm:$0xff] }
  0x9b   :  { %746 = vmatprep.mubr.bf16.mxu0 %v226_v20  ;;  %v265_v20 = vunpack.c.l.s8.bf16 %v165_v18 }
  0x9c   :  { %1028 = vmatmul.mubr.bf16.gmra.mxu1 %v223_v19  ;;  %v167_v19 = vld [vmem:[%s2775_s30 + $0x130] sm:$0xff] }
  0x9d   :  { %1035 = vmatprep.mubr.bf16.mxu1 %v228_v21  ;;  %v267_v21 = vunpack.c.l.s8.bf16 %v167_v19 }
  0xa2   :  { %747 = vmatmul.mubr.bf16.gmra.mxu0 %v225_v24  ;;  %v170_v24 = vld [vmem:[%s2775_s30 + $0x148] sm:$0xff] }
  0xa3   :  { %754 = vmatprep.mubr.bf16.mxu0 %v230_v26  ;;  %v269_v26 = vunpack.c.h.s8.bf16 %v165_v18  ;;  %v274_v28 = vunpack.c.l.s8.bf16 %v170_v24  ;;  %v278_v34 = vunpack.c.h.s8.bf16 %v170_v24 }
  0xa4   :  { %1036 = vmatmul.mubr.bf16.gmra.mxu1 %v227_v25  ;;  %v172_v25 = vld [vmem:[%s2775_s30 + $0x158] sm:$0xff] }
  0xa5   :  { %1043 = vmatprep.mubr.bf16.mxu1 %v232_v27  ;;  %v271_v27 = vunpack.c.h.s8.bf16 %v167_v19  ;;  %v276_v29 = vunpack.c.l.s8.bf16 %v172_v25  ;;  %v280_v35 = vunpack.c.h.s8.bf16 %v172_v25  ;;  %v181_v19 = vld [vmem:[%s2775_s30 + $0x1a0] sm:$0xff] }
  0xaa   :  { %755 = vmatmul.mubr.bf16.gmra.mxu0 %v229_v30  ;;  %v169_v30 = vld [vmem:[%s2775_s30 + $0x140] sm:$0xff] }
  0xab   :  { %762 = vmatprep.mubr.bf16.mxu0 %v234_v32  ;;  %v273_v32 = vunpack.c.l.s8.bf16 %v169_v30 }
  0xac   :  { %1044 = vmatmul.mubr.bf16.gmra.mxu1 %v231_v31  ;;  %v171_v31 = vld [vmem:[%s2775_s30 + $0x150] sm:$0xff] }
  0xad   :  { %1051 = vmatprep.mubr.bf16.mxu1 %v236_v33  ;;  %v275_v33 = vunpack.c.l.s8.bf16 %v171_v31 }
  0xb2   :  { %763 = vmatmul.mubr.bf16.gmra.mxu0 %v233_v36  ;;  %v174_v36 = vld [vmem:[%s2775_s30 + $0x168] sm:$0xff] }
  0xb3   :  { %770 = vmatprep.mubr.bf16.mxu0 %v238_v38  ;;  %v277_v38 = vunpack.c.h.s8.bf16 %v169_v30  ;;  %v282_v40 = vunpack.c.l.s8.bf16 %v174_v36  ;;  %v286_v46 = vunpack.c.h.s8.bf16 %v174_v36  ;;  %v302_v30 = vunpack.c.h.s8.bf16 %v182_v1 }
  0xb4   :  { %1052 = vmatmul.mubr.bf16.gmra.mxu1 %v235_v37  ;;  %v176_v37 = vld [vmem:[%s2775_s30 + $0x178] sm:$0xff] }
  0xb5   :  { %1059 = vmatprep.mubr.bf16.mxu1 %v240_v39  ;;  %v279_v39 = vunpack.c.h.s8.bf16 %v171_v31  ;;  %v284_v41 = vunpack.c.l.s8.bf16 %v176_v37  ;;  %v288_v47 = vunpack.c.h.s8.bf16 %v176_v37  ;;  %v398_v37 = vld [vmem:[#allocation2 + $0x50] sm:$0xff] }
  0xba   :  { %771 = vmatmul.mubr.bf16.gmra.mxu0 %v237_v42  ;;  %v173_v42 = vld [vmem:[%s2775_s30 + $0x160] sm:$0xff] }
  0xbb   :  { %778 = vmatprep.mubr.bf16.mxu0 %v242_v44  ;;  %v281_v44 = vunpack.c.l.s8.bf16 %v173_v42 }
  0xbc   :  { %1060 = vmatmul.mubr.bf16.gmra.mxu1 %v239_v43  ;;  %v175_v43 = vld [vmem:[%s2775_s30 + $0x170] sm:$0xff] }
  0xbd   :  { %1067 = vmatprep.mubr.bf16.mxu1 %v244_v45  ;;  %v283_v45 = vunpack.c.l.s8.bf16 %v175_v43 }
  0xc2   :  { %779 = vmatmul.mubr.bf16.gmra.mxu0 %v241_v48  ;;  %v178_v48 = vld [vmem:[%s2775_s30 + $0x188] sm:$0xff] }
  0xc3   :  { %786 = vmatprep.mubr.bf16.mxu0 %v246_v50  ;;  %v285_v50 = vunpack.c.h.s8.bf16 %v173_v42  ;;  %v290_v52 = vunpack.c.l.s8.bf16 %v178_v48  ;;  %v294_v58 = vunpack.c.h.s8.bf16 %v178_v48 }
  0xc4   :  { %1068 = vmatmul.mubr.bf16.gmra.mxu1 %v243_v49  ;;  %v180_v49 = vld [vmem:[%s2775_s30 + $0x198] sm:$0xff] }
  0xc5   :  { %1075 = vmatprep.mubr.bf16.mxu1 %v248_v51  ;;  %v287_v51 = vunpack.c.h.s8.bf16 %v175_v43  ;;  %v292_v53 = vunpack.c.l.s8.bf16 %v180_v49  ;;  %v296_v59 = vunpack.c.h.s8.bf16 %v180_v49  ;;  %v188_v43 = vld [vmem:[%s2775_s30 + $0x1d8] sm:$0xff] }
  0xca   :  { %787 = vmatmul.mubr.bf16.gmra.mxu0 %v245_v54  ;;  %v177_v54 = vld [vmem:[%s2775_s30 + $0x180] sm:$0xff] }
  0xcb   :  { %794 = vmatprep.mubr.bf16.mxu0 %v250_v56  ;;  %v289_v56 = vunpack.c.l.s8.bf16 %v177_v54  ;;  %v293_v6 = vunpack.c.h.s8.bf16 %v177_v54 }
  0xcc   :  { %1076 = vmatmul.mubr.bf16.gmra.mxu1 %v247_v55  ;;  %v179_v55 = vld [vmem:[%s2775_s30 + $0x190] sm:$0xff] }
  0xcd   :  { %1083 = vmatprep.mubr.bf16.mxu1 %v252_v57  ;;  %v291_v57 = vunpack.c.l.s8.bf16 %v179_v55 }
  0xd2   :  { %795 = vmatmul.mubr.bf16.gmra.mxu0 %v249_v60 }
  0xd3   :  { %802 = vmatprep.mubr.bf16.mxu0 %v254_v62 }
  0xd4   :  { %1084 = vmatmul.mubr.bf16.gmra.mxu1 %v251_v61  ;;  %v394_v61 = vld [vmem:[#allocation2 + $0xb0] sm:$0xff] }
  0xd5   :  { %1091 = vmatprep.mubr.bf16.mxu1 %v256_v63 }
  0xda   :  { %803 = vmatmul.mubr.bf16.gmra.mxu0 %v253_v2 }
  0xdb   :  { %810 = vmatprep.mubr.bf16.mxu0 %v258_v4 }
  0xdc   :  { %1092 = vmatmul.mubr.bf16.gmra.mxu1 %v255_v3  ;;  %v184_v3 = vld [vmem:[%s2775_s30 + $0x1b8] sm:$0xff] }
  0xdd   :  { %1099 = vmatprep.mubr.bf16.mxu1 %v260_v5  ;;  %v300_v13 = vunpack.c.l.s8.bf16 %v184_v3 }
  0xe2   :  { %811 = vmatmul.mubr.bf16.gmra.mxu0 %v257_v8 }
  0xe3   :  { %818 = vmatprep.mubr.bf16.mxu0 %v262_v10  ;;  %v298_v10 = vunpack.c.l.s8.bf16 %v182_v1 }
  0xe4   :  { %1100 = vmatmul.mubr.bf16.gmra.mxu1 %v259_v9  ;;  %v295_v9 = vunpack.c.h.s8.bf16 %v179_v55 }
  0xe5   :  { %1107 = vmatprep.mubr.bf16.mxu1 %v264_v11 }
  0xea   :  { %819 = vmatmul.mubr.bf16.gmra.mxu0 %v261_v14 }
  0xeb   :  { %826 = vmatprep.mubr.bf16.mxu0 %v266_v16 }
  0xec   :  { %1108 = vmatmul.mubr.bf16.gmra.mxu1 %v263_v15 }
  0xed   :  { %1115 = vmatprep.mubr.bf16.mxu1 %v268_v17  ;;  %v396_v17 = vld [vmem:[#allocation2 + $0xd8] sm:$0xff] }
  0xf2   :  { %827 = vmatmul.mubr.bf16.gmra.mxu0 %v265_v20 }
  0xf3   :  { %834 = vmatprep.mubr.bf16.mxu0 %v270_v22  ;;  %v183_v22 = vld [vmem:[%s2775_s30 + $0x1b0] sm:$0xff] }
  0xf4   :  { %1116 = vmatmul.mubr.bf16.gmra.mxu1 %v267_v21  ;;  %v303_v49 = vunpack.c.h.s8.bf16 %v183_v22 }
  0xf5   :  { %1123 = vmatprep.mubr.bf16.mxu1 %v272_v23 }
  0xfa   :  { %835 = vmatmul.mubr.bf16.gmra.mxu0 %v269_v26  ;;  %v297_v26 = vunpack.c.l.s8.bf16 %v181_v19 }
  0xfb   :  { %842 = vmatprep.mubr.bf16.mxu0 %v274_v28 }
  0xfc   :  { %1124 = vmatmul.mubr.bf16.gmra.mxu1 %v271_v27  ;;  %v397_v27 = vld [vmem:[#allocation2 + $0x18] sm:$0xff] }
  0xfd   :  { %1131 = vmatprep.mubr.bf16.mxu1 %v276_v29  ;;  %v299_v29 = vunpack.c.l.s8.bf16 %v183_v22 }
 0x102   :  { %843 = vmatmul.mubr.bf16.gmra.mxu0 %v273_v32 }
 0x103   :  { %850 = vmatprep.mubr.bf16.mxu0 %v278_v34 }
 0x104   :  { %1132 = vmatmul.mubr.bf16.gmra.mxu1 %v275_v33  ;;  %v304_v33 = vunpack.c.h.s8.bf16 %v184_v3  ;;  %v401_v3 = vld [vmem:[#allocation2 + $0x48] sm:$0xff] }
 0x105   :  { %1139 = vmatprep.mubr.bf16.mxu1 %v280_v35 }
 0x10a   :  { %851 = vmatmul.mubr.bf16.gmra.mxu0 %v277_v38 }
 0x10b   :  { %858 = vmatprep.mubr.bf16.mxu0 %v282_v40 }
 0x10c   :  { %1140 = vmatmul.mubr.bf16.gmra.mxu1 %v279_v39 }
 0x10d   :  { %1147 = vmatprep.mubr.bf16.mxu1 %v284_v41  ;;  %v186_v41 = vld [vmem:[%s2775_s30 + $0x1c8] sm:$0xff] }
 0x112   :  { %859 = vmatmul.mubr.bf16.gmra.mxu0 %v281_v44 }
 0x113   :  { %866 = vmatprep.mubr.bf16.mxu0 %v286_v46  ;;  %v301_v46 = vunpack.c.h.s8.bf16 %v181_v19  ;;  %v192_v19 = vld [vmem:[%s2775_s30 + $0x1f8] sm:$0xff] }
 0x114   :  { %1148 = vmatmul.mubr.bf16.gmra.mxu1 %v283_v45 }
 0x115   :  { %1155 = vmatprep.mubr.bf16.mxu1 %v288_v47  ;;  %v399_v47 = vld [vmem:[#allocation2 + $0x168] sm:$0xff] }
 0x11a   :  { %867 = vmatmul.mubr.bf16.gmra.mxu0 %v285_v50  ;;  %v306_v50 = vunpack.c.l.s8.bf16 %v186_v41 }
 0x11b   :  { %874 = vmatprep.mubr.bf16.mxu0 %v290_v52 }
 0x11c   :  { %1156 = vmatmul.mubr.bf16.gmra.mxu1 %v287_v51 }
 0x11d   :  { %1163 = vmatprep.mubr.bf16.mxu1 %v292_v53  ;;  %v308_v53 = vunpack.c.l.s8.bf16 %v188_v43 }
 0x122   :  { %v684_v60 = vpop.f32.mrf.mxu0  ;;  %875 = vmatmul.mubr.bf16.gmra.mxu0 %v289_v56 }
 0x123   :  { %882 = vmatprep.mubr.bf16.mxu0 %v294_v58 }
 0x124   :  { %v973_v62 = vpop.f32.mrf.mxu1  ;;  %1164 = vmatmul.mubr.bf16.gmra.mxu1 %v291_v57  ;;  %v686_v0 = vpop.f32.mrf.mxu0  ;;  %v400_v57 = vld [vmem:[#allocation2 + $0x130] sm:$0xff] }
 0x125   :  { %v974_v63 = vadd.f32 %v973_v62, %v684_v60  ;;  %1171 = vmatprep.mubr.bf16.mxu1 %v296_v59  ;;  %v185_v59 = vld [vmem:[%s2775_s30 + $0x1c0] sm:$0xff]  ;;  %v187_v62 = vld [vmem:[%s2775_s30 + $0x1d0] sm:$0xff] }
 0x126   :  { %v975_v2 = vpop.f32.mrf.mxu1  ;;  %v687_v5 = vpop.f32.mrf.mxu0  ;;  %v309_v22 = vunpack.c.h.s8.bf16 %v185_v59 }
 0x127   :  { %v1228_v4 = vadd.f32 %v974_v63, %v394_v61  ;;  %v305_v2 = vunpack.c.l.s8.bf16 %v185_v59 }
 0x128   :  { %v976_v8 = vpop.f32.mrf.mxu1  ;;  %v689_v12 = vpop.f32.mrf.mxu0 }
 0x129   :  { %1292 = vst [vmem:[#allocation2 + $0xb0] sm:$0xff] %v1228_v4  ;;  %v977_v11 = vadd.f32 %v976_v8, %v687_v5  ;;  %v307_v5 = vunpack.c.l.s8.bf16 %v187_v62 }
 0x12a   :  { %v978_v14 = vpop.f32.mrf.mxu1  ;;  %v692_v16 = vpop.f32.mrf.mxu0  ;;  %883 = vmatmul.mubr.bf16.gmra.mxu0 %v293_v6  ;;  %v310_v6 = vunpack.c.h.s8.bf16 %v186_v41 }
 0x12b   :  { %v1229_v15 = vadd.f32 %v977_v11, %v395_v7  ;;  %890 = vmatprep.mubr.bf16.mxu0 %v298_v10 }
 0x12c   :  { %v981_v18 = vpop.f32.mrf.mxu1  ;;  %1172 = vmatmul.mubr.bf16.gmra.mxu1 %v295_v9  ;;  %v694_v21 = vpop.f32.mrf.mxu0  ;;  %v312_v9 = vunpack.c.h.s8.bf16 %v188_v43  ;;  %v405_v43 = vld [vmem:[#allocation2 + $0x98] sm:$0xff] }
 0x12d   :  { %1293 = vst [vmem:[#allocation2 + $0x1b0] sm:$0xff] %v1229_v15  ;;  %v982_v20 = vadd.f32 %v981_v18, %v692_v16  ;;  %1179 = vmatprep.mubr.bf16.mxu1 %v300_v13  ;;  %v402_v13 = vld [vmem:[#allocation2 + $0x180] sm:$0xff] }
 0x12e   :  { %v983_v23 = vpop.f32.mrf.mxu1  ;;  %v695_v25 = vpop.f32.mrf.mxu0 }
 0x12f   :  { %v1230_v24 = vadd.f32 %v982_v20, %v396_v17  ;;  %v190_v17 = vld [vmem:[%s2775_s30 + $0x1e8] sm:$0xff]  ;;  %v403_v23 = vld [vmem:[#allocation2 + $0x110] sm:$0xff] }
 0x130   :  { %v984_v28 = vpop.f32.mrf.mxu1  ;;  %v697_v32 = vpop.f32.mrf.mxu0 }
 0x131   :  { %1294 = vst [vmem:[#allocation2 + $0xd8] sm:$0xff] %v1230_v24  ;;  %v985_v31 = vadd.f32 %v984_v28, %v695_v25  ;;  %v311_v25 = vunpack.c.h.s8.bf16 %v187_v62 }
 0x132   :  { %v986_v34 = vpop.f32.mrf.mxu1  ;;  %v700_v36 = vpop.f32.mrf.mxu0  ;;  %891 = vmatmul.mubr.bf16.gmra.mxu0 %v297_v26  ;;  %v314_v26 = vunpack.c.l.s8.bf16 %v190_v17 }
 0x133   :  { %v1231_v35 = vadd.f32 %v985_v31, %v397_v27  ;;  %898 = vmatprep.mubr.bf16.mxu0 %v302_v30 }
 0x134   :  { %v989_v38 = vpop.f32.mrf.mxu1  ;;  %1180 = vmatmul.mubr.bf16.gmra.mxu1 %v299_v29  ;;  %v702_v40 = vpop.f32.mrf.mxu0  ;;  %v316_v29 = vunpack.c.l.s8.bf16 %v192_v19 }
 0x135   :  { %1295 = vst [vmem:[#allocation2 + $0x18] sm:$0xff] %v1231_v35  ;;  %v990_v39 = vadd.f32 %v989_v38, %v700_v36  ;;  %1187 = vmatprep.mubr.bf16.mxu1 %v304_v33  ;;  %v404_v33 = vld [vmem:[#allocation2 + $0x118] sm:$0xff]  ;;  %v189_v35 = vld [vmem:[%s2775_s30 + $0x1e0] sm:$0xff]  ;;  %v191_v38 = vld [vmem:[%s2775_s30 + $0x1f0] sm:$0xff] }
 0x136   :  { %v991_v42 = vpop.f32.mrf.mxu1  ;;  %v703_v45 = vpop.f32.mrf.mxu0 }
 0x137   :  { %v1232_v44 = vadd.f32 %v990_v39, %v398_v37  ;;  %v313_v42 = vunpack.c.l.s8.bf16 %v189_v35 }
 0x138   :  { %v992_v48 = vpop.f32.mrf.mxu1  ;;  %v705_v52 = vpop.f32.mrf.mxu0 }
 0x139   :  { %1296 = vst [vmem:[#allocation2 + $0x50] sm:$0xff] %v1232_v44  ;;  %v993_v51 = vadd.f32 %v992_v48, %v703_v45  ;;  %v315_v45 = vunpack.c.l.s8.bf16 %v191_v38 }
 0x13a   :  { %v994_v54 = vpop.f32.mrf.mxu1  ;;  %v708_v56 = vpop.f32.mrf.mxu0  ;;  %899 = vmatmul.mubr.bf16.gmra.mxu0 %v301_v46  ;;  %v318_v46 = vunpack.c.h.s8.bf16 %v190_v17 }
 0x13b   :  { %v1233_v55 = vadd.f32 %v993_v51, %v399_v47  ;;  %906 = vmatprep.mubr.bf16.mxu0 %v306_v50 }
 0x13c   :  { %v997_v58 = vpop.f32.mrf.mxu1  ;;  %1188 = vmatmul.mubr.bf16.gmra.mxu1 %v303_v49  ;;  %v710_v61 = vpop.f32.mrf.mxu0  ;;  %v320_v49 = vunpack.c.h.s8.bf16 %v192_v19  ;;  %v410_v19 = vld [vmem:[#allocation2 + $0xe0] sm:$0xff] }
 0x13d   :  { %1297 = vst [vmem:[#allocation2 + $0x168] sm:$0xff] %v1233_v55  ;;  %v998_v60 = vadd.f32 %v997_v58, %v708_v56  ;;  %1195 = vmatprep.mubr.bf16.mxu1 %v308_v53  ;;  %v406_v53 = vld [vmem:[#allocation2 + $0x120] sm:$0xff]  ;;  %v407_v61 = vld [vmem:[#allocation2 + $0x150] sm:$0xff] }
 0x13e   :  { %v999_v63 = vpop.f32.mrf.mxu1  ;;  %v711_v1 = vpop.f32.mrf.mxu0 }
 0x13f   :  { %v1234_v0 = vadd.f32 %v998_v60, %v400_v57  ;;  %v317_v60 = vunpack.c.h.s8.bf16 %v189_v35  ;;  %v319_v63 = vunpack.c.h.s8.bf16 %v191_v38 }
 0x140   :  { %v1000_v4 = vpop.f32.mrf.mxu1  ;;  %v713_v8 = vpop.f32.mrf.mxu0 }
 0x141   :  { %1298 = vst [vmem:[#allocation2 + $0x130] sm:$0xff] %v1234_v0  ;;  %v1001_v7 = vadd.f32 %v1000_v4, %v711_v1 }
 0x142   :  { %v1002_v10 = vpop.f32.mrf.mxu1  ;;  %v716_v12 = vpop.f32.mrf.mxu0  ;;  %907 = vmatmul.mubr.bf16.gmra.mxu0 %v305_v2 }
 0x143   :  { %v1235_v11 = vadd.f32 %v1001_v7, %v401_v3  ;;  %914 = vmatprep.mubr.bf16.mxu0 %v310_v6 }
 0x144   :  { %v1005_v14 = vpop.f32.mrf.mxu1  ;;  %1196 = vmatmul.mubr.bf16.gmra.mxu1 %v307_v5  ;;  %v718_v16 = vpop.f32.mrf.mxu0  ;;  %v408_v5 = vld [vmem:[#allocation2 + $0x108] sm:$0xff] }
 0x145   :  { %1299 = vst [vmem:[#allocation2 + $0x48] sm:$0xff] %v1235_v11  ;;  %v1006_v15 = vadd.f32 %v1005_v14, %v716_v12  ;;  %1203 = vmatprep.mubr.bf16.mxu1 %v312_v9  ;;  %v409_v12 = vld [vmem:[#allocation2 + $0x60] sm:$0xff] }
 0x146   :  { %v1007_v18 = vpop.f32.mrf.mxu1  ;;  %v719_v21 = vpop.f32.mrf.mxu0 }
 0x147   :  { %v1236_v20 = vadd.f32 %v1006_v15, %v402_v13 }
 0x148   :  { %v1008_v24 = vpop.f32.mrf.mxu1  ;;  %v721_v28 = vpop.f32.mrf.mxu0 }
 0x149   :  { %1300 = vst [vmem:[#allocation2 + $0x180] sm:$0xff] %v1236_v20  ;;  %v1009_v27 = vadd.f32 %v1008_v24, %v719_v21 }
 0x14a   :  { %v1010_v30 = vpop.f32.mrf.mxu1  ;;  %v724_v32 = vpop.f32.mrf.mxu0  ;;  %915 = vmatmul.mubr.bf16.gmra.mxu0 %v309_v22 }
 0x14b   :  { %v1237_v31 = vadd.f32 %v1009_v27, %v403_v23  ;;  %922 = vmatprep.mubr.bf16.mxu0 %v314_v26  ;;  %v411_v26 = vld [vmem:[#allocation2 + $0x188] sm:$0xff] }
 0x14c   :  { %v1013_v34 = vpop.f32.mrf.mxu1  ;;  %1204 = vmatmul.mubr.bf16.gmra.mxu1 %v311_v25  ;;  %v726_v37 = vpop.f32.mrf.mxu0 }
 0x14d   :  { %1301 = vst [vmem:[#allocation2 + $0x110] sm:$0xff] %v1237_v31  ;;  %v1014_v36 = vadd.f32 %v1013_v34, %v724_v32  ;;  %1211 = vmatprep.mubr.bf16.mxu1 %v316_v29 }
 0x14e   :  { %v1015_v39 = vpop.f32.mrf.mxu1  ;;  %v727_v41 = vpop.f32.mrf.mxu0 }
 0x14f   :  { %v1238_v40 = vadd.f32 %v1014_v36, %v404_v33  ;;  %v412_v33 = vld [vmem:[#allocation2 + $0x138] sm:$0xff] }
 0x150   :  { %v1016_v44 = vpop.f32.mrf.mxu1  ;;  %v729_v48 = vpop.f32.mrf.mxu0 }
 0x151   :  { %1302 = vst [vmem:[#allocation2 + $0x118] sm:$0xff] %v1238_v40  ;;  %v1017_v47 = vadd.f32 %v1016_v44, %v727_v41  ;;  %v413_v40 = vld [vmem:[#allocation2 + $0x140] sm:$0xff] }
 0x152   :  { %v1018_v50 = vpop.f32.mrf.mxu1  ;;  %v732_v52 = vpop.f32.mrf.mxu0  ;;  %923 = vmatmul.mubr.bf16.gmra.mxu0 %v313_v42 }
 0x153   :  { %v1239_v51 = vadd.f32 %v1017_v47, %v405_v43  ;;  %930 = vmatprep.mubr.bf16.mxu0 %v318_v46  ;;  %v414_v47 = vld [vmem:[#allocation2 + $0x80] sm:$0xff] }
 0x154   :  { %v1021_v54 = vpop.f32.mrf.mxu1  ;;  %1212 = vmatmul.mubr.bf16.gmra.mxu1 %v315_v45  ;;  %v734_v56 = vpop.f32.mrf.mxu0 }
 0x155   :  { %1303 = vst [vmem:[#allocation2 + $0x98] sm:$0xff] %v1239_v51  ;;  %v1022_v55 = vadd.f32 %v1021_v54, %v732_v52  ;;  %1219 = vmatprep.mubr.bf16.mxu1 %v320_v49  ;;  %v415_v54 = vld [vmem:[#allocation2 + $0x1a8] sm:$0xff] }
 0x156   :  { %v1023_v57 = vpop.f32.mrf.mxu1  ;;  %v735_v59 = vpop.f32.mrf.mxu0 }
 0x157   :  { %v1240_v58 = vadd.f32 %v1022_v55, %v406_v53 }
 0x158   :  { %v1024_v62 = vpop.f32.mrf.mxu1  ;;  %v737_v1 = vpop.f32.mrf.mxu0 }
 0x159   :  { %1304 = vst [vmem:[#allocation2 + $0x120] sm:$0xff] %v1240_v58  ;;  %v1025_v0 = vadd.f32 %v1024_v62, %v735_v59 }
 0x15a   :  { %v1026_v2 = vpop.f32.mrf.mxu1  ;;  %v740_v4 = vpop.f32.mrf.mxu0  ;;  %931 = vmatmul.mubr.bf16.gmra.mxu0 %v317_v60 }
 0x15b   :  { %v1241_v3 = vadd.f32 %v1025_v0, %v407_v61  ;;  %v416_v61 = vld [vmem:[#allocation2 + $0x1b8] sm:$0xff] }
 0x15c   :  { %v1029_v6 = vpop.f32.mrf.mxu1  ;;  %1220 = vmatmul.mubr.bf16.gmra.mxu1 %v319_v63  ;;  %v742_v8 = vpop.f32.mrf.mxu0 }
 0x15d   :  { %1305 = vst [vmem:[#allocation2 + $0x150] sm:$0xff] %v1241_v3  ;;  %v1030_v7 = vadd.f32 %v1029_v6, %v740_v4  ;;  %v417_v4 = vld [vmem:[#allocation2 + $0x28] sm:$0xff] }
 0x15e   :  { %v1031_v9 = vpop.f32.mrf.mxu1  ;;  %v743_v11 = vpop.f32.mrf.mxu0 }
 0x15f   :  { %v1242_v10 = vadd.f32 %v1030_v7, %v408_v5 }
 0x160   :  { %v1032_v13 = vpop.f32.mrf.mxu1  ;;  %v745_v15 = vpop.f32.mrf.mxu0 }
 0x161   :  { %1306 = vst [vmem:[#allocation2 + $0x108] sm:$0xff] %v1242_v10  ;;  %v1033_v14 = vadd.f32 %v1032_v13, %v743_v11  ;;  %v418_v11 = vld [vmem:[#allocation2 + $0x1e8] sm:$0xff] }
 0x162   :  { %v1034_v16 = vpop.f32.mrf.mxu1  ;;  %v748_v18 = vpop.f32.mrf.mxu0 }
 0x163   :  { %v1243_v17 = vadd.f32 %v1033_v14, %v409_v12 }
 0x164   :  { %v1037_v20 = vpop.f32.mrf.mxu1  ;;  %v750_v22 = vpop.f32.mrf.mxu0 }
 0x165   :  { %1307 = vst [vmem:[#allocation2 + $0x60] sm:$0xff] %v1243_v17  ;;  %v1038_v21 = vadd.f32 %v1037_v20, %v748_v18  ;;  %v419_v18 = vld [vmem:[#allocation2 + $0xf8] sm:$0xff] }
 0x166   :  { %v1039_v23 = vpop.f32.mrf.mxu1  ;;  %v751_v25 = vpop.f32.mrf.mxu0 }
 0x167   :  { %v1244_v24 = vadd.f32 %v1038_v21, %v410_v19 }
 0x168   :  { %v1040_v27 = vpop.f32.mrf.mxu1  ;;  %v753_v29 = vpop.f32.mrf.mxu0 }
 0x169   :  { %1308 = vst [vmem:[#allocation2 + $0xe0] sm:$0xff] %v1244_v24  ;;  %v1041_v28 = vadd.f32 %v1040_v27, %v751_v25  ;;  %v420_v25 = vld [vmem:[#allocation2 + $0x160] sm:$0xff] }
 0x16a   :  { %v1042_v30 = vpop.f32.mrf.mxu1  ;;  %v756_v32 = vpop.f32.mrf.mxu0 }
 0x16b   :  { %v1245_v31 = vadd.f32 %v1041_v28, %v411_v26 }
 0x16c   :  { %v1045_v34 = vpop.f32.mrf.mxu1  ;;  %v758_v36 = vpop.f32.mrf.mxu0 }
 0x16d   :  { %1309 = vst [vmem:[#allocation2 + $0x188] sm:$0xff] %v1245_v31  ;;  %v1046_v35 = vadd.f32 %v1045_v34, %v756_v32  ;;  %v421_v32 = vld [vmem:[#allocation2 + $0x30] sm:$0xff] }
 0x16e   :  { %v1047_v37 = vpop.f32.mrf.mxu1  ;;  %v759_v39 = vpop.f32.mrf.mxu0 }
 0x16f   :  { %v1246_v38 = vadd.f32 %v1046_v35, %v412_v33 }
 0x170   :  { %v1048_v41 = vpop.f32.mrf.mxu1  ;;  %v761_v43 = vpop.f32.mrf.mxu0 }
 0x171   :  { %1310 = vst [vmem:[#allocation2 + $0x138] sm:$0xff] %v1246_v38  ;;  %v1049_v42 = vadd.f32 %v1048_v41, %v759_v39  ;;  %v422_v39 = vld [vmem:[#allocation2 + $0x1e0] sm:$0xff] }
 0x172   :  { %v1050_v44 = vpop.f32.mrf.mxu1  ;;  %v764_v46 = vpop.f32.mrf.mxu0 }
 0x173   :  { %v1247_v45 = vadd.f32 %v1049_v42, %v413_v40 }
 0x174   :  { %v1053_v48 = vpop.f32.mrf.mxu1  ;;  %v766_v50 = vpop.f32.mrf.mxu0 }
 0x175   :  { %1311 = vst [vmem:[#allocation2 + $0x140] sm:$0xff] %v1247_v45  ;;  %v1054_v49 = vadd.f32 %v1053_v48, %v764_v46  ;;  %v423_v46 = vld [vmem:[#allocation2] sm:$0xff] }
 0x176   :  { %v1055_v51 = vpop.f32.mrf.mxu1  ;;  %v767_v53 = vpop.f32.mrf.mxu0 }
 0x177   :  { %v1248_v52 = vadd.f32 %v1054_v49, %v414_v47 }
 0x178   :  { %v1056_v55 = vpop.f32.mrf.mxu1  ;;  %v769_v57 = vpop.f32.mrf.mxu0 }
 0x179   :  { %1312 = vst [vmem:[#allocation2 + $0x80] sm:$0xff] %v1248_v52  ;;  %v1057_v56 = vadd.f32 %v1056_v55, %v767_v53  ;;  %v424_v53 = vld [vmem:[#allocation2 + $0xf0] sm:$0xff] }
 0x17a   :  { %v1058_v58 = vpop.f32.mrf.mxu1  ;;  %v772_v60 = vpop.f32.mrf.mxu0 }
 0x17b   :  { %v1249_v59 = vadd.f32 %v1057_v56, %v415_v54 }
 0x17c   :  { %v1061_v62 = vpop.f32.mrf.mxu1  ;;  %v774_v0 = vpop.f32.mrf.mxu0 }
 0x17d   :  { %1313 = vst [vmem:[#allocation2 + $0x1a8] sm:$0xff] %v1249_v59  ;;  %v1062_v63 = vadd.f32 %v1061_v62, %v772_v60  ;;  %v425_v60 = vld [vmem:[#allocation2 + $0x8] sm:$0xff] }
 0x17e   :  { %v1063_v1 = vpop.f32.mrf.mxu1  ;;  %v775_v3 = vpop.f32.mrf.mxu0 }
 0x17f   :  { %v1250_v2 = vadd.f32 %v1062_v63, %v416_v61 }
 0x180   :  { %v1064_v5 = vpop.f32.mrf.mxu1  ;;  %v777_v7 = vpop.f32.mrf.mxu0 }
 0x181   :  { %1314 = vst [vmem:[#allocation2 + $0x1b8] sm:$0xff] %v1250_v2  ;;  %v1065_v6 = vadd.f32 %v1064_v5, %v775_v3  ;;  %v426_v3 = vld [vmem:[#allocation2 + $0x148] sm:$0xff] }
 0x182   :  { %v1066_v8 = vpop.f32.mrf.mxu1  ;;  %v780_v10 = vpop.f32.mrf.mxu0 }
 0x183   :  { %v1251_v9 = vadd.f32 %v1065_v6, %v417_v4 }
 0x184   :  { %v1069_v12 = vpop.f32.mrf.mxu1  ;;  %v782_v14 = vpop.f32.mrf.mxu0 }
 0x185   :  { %1315 = vst [vmem:[#allocation2 + $0x28] sm:$0xff] %v1251_v9  ;;  %v1070_v13 = vadd.f32 %v1069_v12, %v780_v10  ;;  %v427_v10 = vld [vmem:[#allocation2 + $0x1d0] sm:$0xff] }
 0x186   :  { %v1071_v15 = vpop.f32.mrf.mxu1  ;;  %v783_v17 = vpop.f32.mrf.mxu0 }
 0x187   :  { %v1252_v16 = vadd.f32 %v1070_v13, %v418_v11 }
 0x188   :  { %v1072_v19 = vpop.f32.mrf.mxu1  ;;  %v785_v21 = vpop.f32.mrf.mxu0 }
 0x189   :  { %1316 = vst [vmem:[#allocation2 + $0x1e8] sm:$0xff] %v1252_v16  ;;  %v1073_v20 = vadd.f32 %v1072_v19, %v783_v17  ;;  %v428_v17 = vld [vmem:[#allocation2 + $0x100] sm:$0xff] }
 0x18a   :  { %v1074_v22 = vpop.f32.mrf.mxu1  ;;  %v788_v24 = vpop.f32.mrf.mxu0 }
 0x18b   :  { %v1253_v23 = vadd.f32 %v1073_v20, %v419_v18 }
 0x18c   :  { %v1077_v26 = vpop.f32.mrf.mxu1  ;;  %v790_v28 = vpop.f32.mrf.mxu0 }
 0x18d   :  { %1317 = vst [vmem:[#allocation2 + $0xf8] sm:$0xff] %v1253_v23  ;;  %v1078_v27 = vadd.f32 %v1077_v26, %v788_v24  ;;  %v429_v24 = vld [vmem:[#allocation2 + $0xc8] sm:$0xff] }
 0x18e   :  { %v1079_v29 = vpop.f32.mrf.mxu1  ;;  %v791_v31 = vpop.f32.mrf.mxu0 }
 0x18f   :  { %v1254_v30 = vadd.f32 %v1078_v27, %v420_v25 }
 0x190   :  { %v1080_v33 = vpop.f32.mrf.mxu1  ;;  %v793_v35 = vpop.f32.mrf.mxu0 }
 0x191   :  { %1318 = vst [vmem:[#allocation2 + $0x160] sm:$0xff] %v1254_v30  ;;  %v1081_v34 = vadd.f32 %v1080_v33, %v791_v31  ;;  %v430_v31 = vld [vmem:[#allocation2 + $0x40] sm:$0xff] }
 0x192   :  { %v1082_v36 = vpop.f32.mrf.mxu1  ;;  %v796_v38 = vpop.f32.mrf.mxu0 }
 0x193   :  { %v1255_v37 = vadd.f32 %v1081_v34, %v421_v32 }
 0x194   :  { %v1085_v40 = vpop.f32.mrf.mxu1  ;;  %v798_v42 = vpop.f32.mrf.mxu0 }
 0x195   :  { %1319 = vst [vmem:[#allocation2 + $0x30] sm:$0xff] %v1255_v37  ;;  %v1086_v41 = vadd.f32 %v1085_v40, %v796_v38  ;;  %v431_v38 = vld [vmem:[#allocation2 + $0x1f8] sm:$0xff] }
 0x196   :  { %v1087_v43 = vpop.f32.mrf.mxu1  ;;  %v799_v45 = vpop.f32.mrf.mxu0 }
 0x197   :  { %v1256_v44 = vadd.f32 %v1086_v41, %v422_v39 }
 0x198   :  { %v1088_v47 = vpop.f32.mrf.mxu1  ;;  %v801_v49 = vpop.f32.mrf.mxu0 }
 0x199   :  { %1320 = vst [vmem:[#allocation2 + $0x1e0] sm:$0xff] %v1256_v44  ;;  %v1089_v48 = vadd.f32 %v1088_v47, %v799_v45  ;;  %v432_v45 = vld [vmem:[#allocation2 + $0x20] sm:$0xff] }
 0x19a   :  { %v1090_v50 = vpop.f32.mrf.mxu1  ;;  %v804_v52 = vpop.f32.mrf.mxu0 }
 0x19b   :  { %v1257_v51 = vadd.f32 %v1089_v48, %v423_v46 }
 0x19c   :  { %v1093_v54 = vpop.f32.mrf.mxu1  ;;  %v806_v56 = vpop.f32.mrf.mxu0 }
 0x19d   :  { %1321 = vst [vmem:[#allocation2] sm:$0xff] %v1257_v51  ;;  %v1094_v55 = vadd.f32 %v1093_v54, %v804_v52  ;;  %v433_v52 = vld [vmem:[#allocation2 + $0x128] sm:$0xff] }
 0x19e   :  { %v1095_v57 = vpop.f32.mrf.mxu1  ;;  %v807_v59 = vpop.f32.mrf.mxu0 }
 0x19f   :  { %v1258_v58 = vadd.f32 %v1094_v55, %v424_v53 }
 0x1a0   :  { %v1096_v61 = vpop.f32.mrf.mxu1  ;;  %v809_v63 = vpop.f32.mrf.mxu0 }
 0x1a1   :  { %1322 = vst [vmem:[#allocation2 + $0xf0] sm:$0xff] %v1258_v58  ;;  %v1097_v62 = vadd.f32 %v1096_v61, %v807_v59  ;;  %v434_v59 = vld [vmem:[#allocation2 + $0x1a0] sm:$0xff] }
 0x1a2   :  { %v1098_v0 = vpop.f32.mrf.mxu1  ;;  %v812_v2 = vpop.f32.mrf.mxu0 }
 0x1a3   :  { %v1259_v1 = vadd.f32 %v1097_v62, %v425_v60 }
 0x1a4   :  { %v1101_v4 = vpop.f32.mrf.mxu1  ;;  %v814_v6 = vpop.f32.mrf.mxu0 }
 0x1a5   :  { %1323 = vst [vmem:[#allocation2 + $0x8] sm:$0xff] %v1259_v1  ;;  %v1102_v5 = vadd.f32 %v1101_v4, %v812_v2  ;;  %v435_v2 = vld [vmem:[#allocation2 + $0x1f0] sm:$0xff] }
 0x1a6   :  { %v1103_v7 = vpop.f32.mrf.mxu1  ;;  %v815_v9 = vpop.f32.mrf.mxu0 }
 0x1a7   :  { %v1260_v8 = vadd.f32 %v1102_v5, %v426_v3 }
 0x1a8   :  { %v1104_v11 = vpop.f32.mrf.mxu1  ;;  %v817_v13 = vpop.f32.mrf.mxu0 }
 0x1a9   :  { %1324 = vst [vmem:[#allocation2 + $0x148] sm:$0xff] %v1260_v8  ;;  %v1105_v12 = vadd.f32 %v1104_v11, %v815_v9  ;;  %v436_v9 = vld [vmem:[#allocation2 + $0xe8] sm:$0xff] }
 0x1aa   :  { %v1106_v14 = vpop.f32.mrf.mxu1  ;;  %v820_v16 = vpop.f32.mrf.mxu0 }
 0x1ab   :  { %v1261_v15 = vadd.f32 %v1105_v12, %v427_v10 }
 0x1ac   :  { %v1109_v18 = vpop.f32.mrf.mxu1  ;;  %v822_v20 = vpop.f32.mrf.mxu0 }
 0x1ad   :  { %1325 = vst [vmem:[#allocation2 + $0x1d0] sm:$0xff] %v1261_v15  ;;  %v1110_v19 = vadd.f32 %v1109_v18, %v820_v16  ;;  %v437_v16 = vld [vmem:[#allocation2 + $0x78] sm:$0xff] }
 0x1ae   :  { %v1111_v21 = vpop.f32.mrf.mxu1  ;;  %v823_v23 = vpop.f32.mrf.mxu0 }
 0x1af   :  { %v1262_v22 = vadd.f32 %v1110_v19, %v428_v17 }
 0x1b0   :  { %v1112_v25 = vpop.f32.mrf.mxu1  ;;  %v825_v27 = vpop.f32.mrf.mxu0 }
 0x1b1   :  { %1326 = vst [vmem:[#allocation2 + $0x100] sm:$0xff] %v1262_v22  ;;  %v1113_v26 = vadd.f32 %v1112_v25, %v823_v23  ;;  %v438_v23 = vld [vmem:[#allocation2 + $0x70] sm:$0xff] }
 0x1b2   :  { %v1114_v28 = vpop.f32.mrf.mxu1  ;;  %v828_v30 = vpop.f32.mrf.mxu0 }
 0x1b3   :  { %v1263_v29 = vadd.f32 %v1113_v26, %v429_v24 }
 0x1b4   :  { %v1117_v32 = vpop.f32.mrf.mxu1  ;;  %v830_v34 = vpop.f32.mrf.mxu0 }
 0x1b5   :  { %1327 = vst [vmem:[#allocation2 + $0xc8] sm:$0xff] %v1263_v29  ;;  %v1118_v33 = vadd.f32 %v1117_v32, %v828_v30  ;;  %v439_v30 = vld [vmem:[#allocation2 + $0x90] sm:$0xff] }
 0x1b6   :  { %v1119_v35 = vpop.f32.mrf.mxu1  ;;  %v831_v37 = vpop.f32.mrf.mxu0 }
 0x1b7   :  { %v1264_v36 = vadd.f32 %v1118_v33, %v430_v31 }
 0x1b8   :  { %v1120_v39 = vpop.f32.mrf.mxu1  ;;  %v833_v41 = vpop.f32.mrf.mxu0 }
 0x1b9   :  { %1328 = vst [vmem:[#allocation2 + $0x40] sm:$0xff] %v1264_v36  ;;  %v1121_v40 = vadd.f32 %v1120_v39, %v831_v37  ;;  %v440_v37 = vld [vmem:[#allocation2 + $0x1d8] sm:$0xff] }
 0x1ba   :  { %v1122_v42 = vpop.f32.mrf.mxu1  ;;  %v836_v44 = vpop.f32.mrf.mxu0 }
 0x1bb   :  { %v1265_v43 = vadd.f32 %v1121_v40, %v431_v38 }
 0x1bc   :  { %v1125_v46 = vpop.f32.mrf.mxu1  ;;  %v838_v48 = vpop.f32.mrf.mxu0 }
 0x1bd   :  { %1329 = vst [vmem:[#allocation2 + $0x1f8] sm:$0xff] %v1265_v43  ;;  %v1126_v47 = vadd.f32 %v1125_v46, %v836_v44  ;;  %v441_v44 = vld [vmem:[#allocation2 + $0xd0] sm:$0xff] }
 0x1be   :  { %v1127_v49 = vpop.f32.mrf.mxu1  ;;  %v839_v51 = vpop.f32.mrf.mxu0 }
 0x1bf   :  { %v1266_v50 = vadd.f32 %v1126_v47, %v432_v45 }
 0x1c0   :  { %v1128_v53 = vpop.f32.mrf.mxu1  ;;  %v841_v55 = vpop.f32.mrf.mxu0 }
 0x1c1   :  { %1330 = vst [vmem:[#allocation2 + $0x20] sm:$0xff] %v1266_v50  ;;  %v1129_v54 = vadd.f32 %v1128_v53, %v839_v51  ;;  %v442_v51 = vld [vmem:[#allocation2 + $0xb8] sm:$0xff] }
 0x1c2   :  { %v1130_v56 = vpop.f32.mrf.mxu1  ;;  %v844_v58 = vpop.f32.mrf.mxu0 }
 0x1c3   :  { %v1267_v57 = vadd.f32 %v1129_v54, %v433_v52 }
 0x1c4   :  { %v1133_v60 = vpop.f32.mrf.mxu1  ;;  %v846_v62 = vpop.f32.mrf.mxu0 }
 0x1c5   :  { %1331 = vst [vmem:[#allocation2 + $0x128] sm:$0xff] %v1267_v57  ;;  %v1134_v61 = vadd.f32 %v1133_v60, %v844_v58  ;;  %v443_v58 = vld [vmem:[#allocation2 + $0x88] sm:$0xff] }
 0x1c6   :  { %v1135_v63 = vpop.f32.mrf.mxu1  ;;  %v847_v1 = vpop.f32.mrf.mxu0 }
 0x1c7   :  { %v1268_v0 = vadd.f32 %v1134_v61, %v434_v59 }
 0x1c8   :  { %v1136_v3 = vpop.f32.mrf.mxu1  ;;  %v849_v5 = vpop.f32.mrf.mxu0 }
 0x1c9   :  { %1332 = vst [vmem:[#allocation2 + $0x1a0] sm:$0xff] %v1268_v0  ;;  %v1137_v4 = vadd.f32 %v1136_v3, %v847_v1  ;;  %v444_v1 = vld [vmem:[#allocation2 + $0xa8] sm:$0xff] }
 0x1ca   :  { %v1138_v6 = vpop.f32.mrf.mxu1  ;;  %v852_v8 = vpop.f32.mrf.mxu0 }
 0x1cb   :  { %v1269_v7 = vadd.f32 %v1137_v4, %v435_v2 }
 0x1cc   :  { %v1141_v10 = vpop.f32.mrf.mxu1  ;;  %v854_v12 = vpop.f32.mrf.mxu0 }
 0x1cd   :  { %1333 = vst [vmem:[#allocation2 + $0x1f0] sm:$0xff] %v1269_v7  ;;  %v1142_v11 = vadd.f32 %v1141_v10, %v852_v8  ;;  %v445_v8 = vld [vmem:[#allocation2 + $0x1c8] sm:$0xff] }
 0x1ce   :  { %v1143_v13 = vpop.f32.mrf.mxu1  ;;  %v855_v15 = vpop.f32.mrf.mxu0 }
 0x1cf   :  { %v1270_v14 = vadd.f32 %v1142_v11, %v436_v9 }
 0x1d0   :  { %v1144_v17 = vpop.f32.mrf.mxu1  ;;  %v857_v19 = vpop.f32.mrf.mxu0 }
 0x1d1   :  { %1334 = vst [vmem:[#allocation2 + $0xe8] sm:$0xff] %v1270_v14  ;;  %v1145_v18 = vadd.f32 %v1144_v17, %v855_v15  ;;  %v446_v15 = vld [vmem:[#allocation2 + $0x170] sm:$0xff] }
 0x1d2   :  { %v1146_v20 = vpop.f32.mrf.mxu1  ;;  %v860_v22 = vpop.f32.mrf.mxu0 }
 0x1d3   :  { %v1271_v21 = vadd.f32 %v1145_v18, %v437_v16 }
 0x1d4   :  { %v1149_v24 = vpop.f32.mrf.mxu1  ;;  %v862_v26 = vpop.f32.mrf.mxu0 }
 0x1d5   :  { %1335 = vst [vmem:[#allocation2 + $0x78] sm:$0xff] %v1271_v21  ;;  %v1150_v25 = vadd.f32 %v1149_v24, %v860_v22  ;;  %v447_v22 = vld [vmem:[#allocation2 + $0x178] sm:$0xff] }
 0x1d6   :  { %v1151_v27 = vpop.f32.mrf.mxu1  ;;  %v863_v29 = vpop.f32.mrf.mxu0 }
 0x1d7   :  { %v1272_v28 = vadd.f32 %v1150_v25, %v438_v23 }
 0x1d8   :  { %v1152_v31 = vpop.f32.mrf.mxu1  ;;  %v865_v33 = vpop.f32.mrf.mxu0 }
 0x1d9   :  { %1336 = vst [vmem:[#allocation2 + $0x70] sm:$0xff] %v1272_v28  ;;  %v1153_v32 = vadd.f32 %v1152_v31, %v863_v29  ;;  %v448_v29 = vld [vmem:[#allocation2 + $0x68] sm:$0xff] }
 0x1da   :  { %v1154_v34 = vpop.f32.mrf.mxu1  ;;  %v868_v36 = vpop.f32.mrf.mxu0 }
 0x1db   :  { %v1273_v35 = vadd.f32 %v1153_v32, %v439_v30 }
 0x1dc   :  { %v1157_v38 = vpop.f32.mrf.mxu1  ;;  %v870_v40 = vpop.f32.mrf.mxu0 }
 0x1dd   :  { %1337 = vst [vmem:[#allocation2 + $0x90] sm:$0xff] %v1273_v35  ;;  %v1158_v39 = vadd.f32 %v1157_v38, %v868_v36  ;;  %v449_v36 = vld [vmem:[#allocation2 + $0x190] sm:$0xff] }
 0x1de   :  { %v1159_v41 = vpop.f32.mrf.mxu1  ;;  %v871_v43 = vpop.f32.mrf.mxu0 }
 0x1df   :  { %v1274_v42 = vadd.f32 %v1158_v39, %v440_v37 }
 0x1e0   :  { %v1160_v45 = vpop.f32.mrf.mxu1  ;;  %v873_v47 = vpop.f32.mrf.mxu0 }
 0x1e1   :  { %1338 = vst [vmem:[#allocation2 + $0x1d8] sm:$0xff] %v1274_v42  ;;  %v1161_v46 = vadd.f32 %v1160_v45, %v871_v43  ;;  %v450_v43 = vld [vmem:[#allocation2 + $0x198] sm:$0xff] }
 0x1e2   :  { %v1162_v48 = vpop.f32.mrf.mxu1  ;;  %v876_v50 = vpop.f32.mrf.mxu0 }
 0x1e3   :  { %v1275_v49 = vadd.f32 %v1161_v46, %v441_v44 }
 0x1e4   :  { %v1165_v52 = vpop.f32.mrf.mxu1  ;;  %v878_v54 = vpop.f32.mrf.mxu0 }
 0x1e5   :  { %1339 = vst [vmem:[#allocation2 + $0xd0] sm:$0xff] %v1275_v49  ;;  %v1166_v53 = vadd.f32 %v1165_v52, %v876_v50  ;;  %v451_v50 = vld [vmem:[#allocation2 + $0x38] sm:$0xff] }
 0x1e6   :  { %v1167_v55 = vpop.f32.mrf.mxu1  ;;  %v879_v57 = vpop.f32.mrf.mxu0 }
 0x1e7   :  { %v1276_v56 = vadd.f32 %v1166_v53, %v442_v51 }
 0x1e8   :  { %v1168_v59 = vpop.f32.mrf.mxu1  ;;  %v881_v61 = vpop.f32.mrf.mxu0 }
 0x1e9   :  { %1340 = vst [vmem:[#allocation2 + $0xb8] sm:$0xff] %v1276_v56  ;;  %v1169_v60 = vadd.f32 %v1168_v59, %v879_v57  ;;  %v452_v57 = vld [vmem:[#allocation2 + $0xc0] sm:$0xff] }
 0x1ea   :  { %v1170_v62 = vpop.f32.mrf.mxu1  ;;  %v884_v0 = vpop.f32.mrf.mxu0 }
 0x1eb   :  { %v1277_v63 = vadd.f32 %v1169_v60, %v443_v58 }
 0x1ec   :  { %v1173_v2 = vpop.f32.mrf.mxu1  ;;  %v886_v4 = vpop.f32.mrf.mxu0 }
 0x1ed   :  { %1341 = vst [vmem:[#allocation2 + $0x88] sm:$0xff] %v1277_v63  ;;  %v1174_v3 = vadd.f32 %v1173_v2, %v884_v0  ;;  %v453_v0 = vld [vmem:[#allocation2 + $0x1c0] sm:$0xff] }
 0x1ee   :  { %v1175_v5 = vpop.f32.mrf.mxu1  ;;  %v887_v7 = vpop.f32.mrf.mxu0 }
 0x1ef   :  { %v1278_v6 = vadd.f32 %v1174_v3, %v444_v1 }
 0x1f0   :  { %v1176_v9 = vpop.f32.mrf.mxu1  ;;  %v889_v11 = vpop.f32.mrf.mxu0 }
 0x1f1   :  { %1342 = vst [vmem:[#allocation2 + $0xa8] sm:$0xff] %v1278_v6  ;;  %v1177_v10 = vadd.f32 %v1176_v9, %v887_v7  ;;  %v454_v7 = vld [vmem:[#allocation2 + $0x158] sm:$0xff] }
 0x1f2   :  { %v1178_v12 = vpop.f32.mrf.mxu1  ;;  %v892_v14 = vpop.f32.mrf.mxu0 }
 0x1f3   :  { %v1279_v13 = vadd.f32 %v1177_v10, %v445_v8 }
 0x1f4   :  { %v1181_v16 = vpop.f32.mrf.mxu1  ;;  %v894_v18 = vpop.f32.mrf.mxu0 }
 0x1f5   :  { %1343 = vst [vmem:[#allocation2 + $0x1c8] sm:$0xff] %v1279_v13  ;;  %v1182_v17 = vadd.f32 %v1181_v16, %v892_v14  ;;  %v455_v14 = vld [vmem:[#allocation2 + $0x10] sm:$0xff] }
 0x1f6   :  { %v1183_v19 = vpop.f32.mrf.mxu1  ;;  %v895_v21 = vpop.f32.mrf.mxu0 }
 0x1f7   :  { %v1280_v20 = vadd.f32 %v1182_v17, %v446_v15 }
 0x1f8   :  { %v1184_v23 = vpop.f32.mrf.mxu1  ;;  %v897_v25 = vpop.f32.mrf.mxu0 }
 0x1f9   :  { %1344 = vst [vmem:[#allocation2 + $0x170] sm:$0xff] %v1280_v20  ;;  %v1185_v24 = vadd.f32 %v1184_v23, %v895_v21  ;;  %v456_v21 = vld [vmem:[#allocation2 + $0x58] sm:$0xff] }
 0x1fa   :  { %v1186_v26 = vpop.f32.mrf.mxu1  ;;  %v900_v28 = vpop.f32.mrf.mxu0 }
 0x1fb   :  { %v1281_v27 = vadd.f32 %v1185_v24, %v447_v22 }
 0x1fc   :  { %v1189_v30 = vpop.f32.mrf.mxu1  ;;  %v902_v32 = vpop.f32.mrf.mxu0 }
 0x1fd   :  { %1345 = vst [vmem:[#allocation2 + $0x178] sm:$0xff] %v1281_v27  ;;  %v1190_v31 = vadd.f32 %v1189_v30, %v900_v28  ;;  %v457_v28 = vld [vmem:[#allocation2 + $0xa0] sm:$0xff] }
 0x1fe   :  { %v1191_v33 = vpop.f32.mrf.mxu1  ;;  %v903_v35 = vpop.f32.mrf.mxu0 }
 0x1ff   :  { %v1282_v34 = vadd.f32 %v1190_v31, %v448_v29 }
 0x200   :  { %v1192_v37 = vpop.f32.mrf.mxu1  ;;  %v905_v39 = vpop.f32.mrf.mxu0 }
 0x201   :  { %1346 = vst [vmem:[#allocation2 + $0x68] sm:$0xff] %v1282_v34  ;;  %v1193_v38 = vadd.f32 %v1192_v37, %v903_v35 }
 0x202   :  { %v1194_v40 = vpop.f32.mrf.mxu1  ;;  %v908_v42 = vpop.f32.mrf.mxu0 }
 0x203   :  { %v1283_v41 = vadd.f32 %v1193_v38, %v449_v36 }
 0x204   :  { %v1197_v44 = vpop.f32.mrf.mxu1  ;;  %v910_v46 = vpop.f32.mrf.mxu0 }
 0x205   :  { %1347 = vst [vmem:[#allocation2 + $0x190] sm:$0xff] %v1283_v41  ;;  %v1198_v45 = vadd.f32 %v1197_v44, %v908_v42 }
 0x206   :  { %v1199_v47 = vpop.f32.mrf.mxu1  ;;  %v911_v49 = vpop.f32.mrf.mxu0 }
 0x207   :  { %v1284_v48 = vadd.f32 %v1198_v45, %v450_v43 }
 0x208   :  { %v1200_v51 = vpop.f32.mrf.mxu1  ;;  %v913_v53 = vpop.f32.mrf.mxu0 }
 0x209   :  { %1348 = vst [vmem:[#allocation2 + $0x198] sm:$0xff] %v1284_v48  ;;  %v1201_v52 = vadd.f32 %v1200_v51, %v911_v49 }
 0x20a   :  { %v1202_v54 = vpop.f32.mrf.mxu1  ;;  %v916_v56 = vpop.f32.mrf.mxu0 }
 0x20b   :  { %v1285_v55 = vadd.f32 %v1201_v52, %v451_v50 }
 0x20c   :  { %v1205_v58 = vpop.f32.mrf.mxu1  ;;  %v918_v60 = vpop.f32.mrf.mxu0 }
 0x20d   :  { %1349 = vst [vmem:[#allocation2 + $0x38] sm:$0xff] %v1285_v55  ;;  %v1206_v59 = vadd.f32 %v1205_v58, %v916_v56 }
 0x20e   :  { %v1207_v61 = vpop.f32.mrf.mxu1  ;;  %v919_v63 = vpop.f32.mrf.mxu0 }
 0x20f   :  { %v1286_v62 = vadd.f32 %v1206_v59, %v452_v57 }
 0x210   :  { %v1208_v1 = vpop.f32.mrf.mxu1  ;;  %v921_v3 = vpop.f32.mrf.mxu0 }
 0x211   :  { %1350 = vst [vmem:[#allocation2 + $0xc0] sm:$0xff] %v1286_v62  ;;  %v1209_v2 = vadd.f32 %v1208_v1, %v919_v63 }
 0x212   :  { %v1210_v4 = vpop.f32.mrf.mxu1  ;;  %v924_v6 = vpop.f32.mrf.mxu0 }
 0x213   :  { %v1287_v5 = vadd.f32 %v1209_v2, %v453_v0 }
 0x214   :  { %v1213_v8 = vpop.f32.mrf.mxu1  ;;  %v926_v10 = vpop.f32.mrf.mxu0 }
 0x215   :  { %1351 = vst [vmem:[#allocation2 + $0x1c0] sm:$0xff] %v1287_v5  ;;  %v1214_v9 = vadd.f32 %v1213_v8, %v924_v6 }
 0x216   :  { %v1215_v11 = vpop.f32.mrf.mxu1  ;;  %v927_v13 = vpop.f32.mrf.mxu0 }
 0x217   :  { %v1288_v12 = vadd.f32 %v1214_v9, %v454_v7 }
 0x218   :  { %v1216_v15 = vpop.f32.mrf.mxu1  ;;  %v929_v17 = vpop.f32.mrf.mxu0 }
 0x219   :  { %1352 = vst [vmem:[#allocation2 + $0x158] sm:$0xff] %v1288_v12  ;;  %v1217_v16 = vadd.f32 %v1216_v15, %v927_v13 }
 0x21a   :  { %v1218_v18 = vpop.f32.mrf.mxu1  ;;  %v932_v20 = vpop.f32.mrf.mxu0 }
 0x21b   :  { %v1289_v19 = vadd.f32 %v1217_v16, %v455_v14 }
 0x21c   :  { %v1221_v22 = vpop.f32.mrf.mxu1  ;;  %v934_v24 = vpop.f32.mrf.mxu0 }
 0x21d   :  { %1353 = vst [vmem:[#allocation2 + $0x10] sm:$0xff] %v1289_v19  ;;  %v1222_v23 = vadd.f32 %v1221_v22, %v932_v20 }
 0x21e   :  { %v1223_v25 = vpop.f32.mrf.mxu1  ;;  %v935_v27 = vpop.f32.mrf.mxu0 }
 0x21f   :  { %v1290_v26 = vadd.f32 %v1222_v23, %v456_v21 }
 0x220   :  { %v1224_v29 = vpop.f32.mrf.mxu1  ;;  %v937_v31 = vpop.f32.mrf.mxu0 }
 0x221   :  { %1354 = vst [vmem:[#allocation2 + $0x58] sm:$0xff] %v1290_v26  ;;  %v1225_v30 = vadd.f32 %v1224_v29, %v935_v27 }
 0x222   :  { %v1226_v32 = vpop.f32.mrf.mxu1 }
 0x223   :  { %v1291_v33 = vadd.f32 %v1225_v30, %v457_v28 }
 0x225   :  { %1355 = vst [vmem:[#allocation2 + $0xa0] sm:$0xff] %v1291_v33 }
 0x226 PF:  { %v1361_v34 = vld [vmem:[%s3212_s4 + $0x10] sm:$0xff]  ;;  %v1359_v35 = vld [vmem:[%s3212_s4] sm:$0xff]  ;;  %v2663_v36 = vmov 0   ;;  %v1362_v37 = vld [vmem:[%s3212_s4 + $0x18] sm:$0xff] }
 0x227   :  { %2660 = vset.pattern.permute.xlu1 %v2663_v36  ;;  %2659 = vset.pattern.permute.xlu0 %v2663_v36  ;;  %v1360_v38 = vld [vmem:[%s3212_s4 + $0x8] sm:$0xff]  ;;  %v1363_v40 = vld [vmem:[%s3212_s4 + $0x20] sm:$0xff]  ;;  %v1366_v41 = vld [vmem:[%s3212_s4 + $0x38] sm:$0xff] }
 0x228   :  { %1499 = vperm.xlu1 %2660, %v1361_v34   ;;  %1489 = vperm.xlu0 %2659, %v1359_v35   ;;  %v1364_v39 = vld [vmem:[%s3212_s4 + $0x28] sm:$0xff]  ;;  %v1365_v42 = vld [vmem:[%s3212_s4 + $0x30] sm:$0xff]  ;;  %v1367_v44 = vld [vmem:[%s3212_s4 + $0x40] sm:$0xff] }
 0x229   :  { %v1368_v43 = vld [vmem:[%s3212_s4 + $0x48] sm:$0xff]  ;;  %v1370_v45 = vld [vmem:[%s3212_s4 + $0x58] sm:$0xff]  ;;  %v1369_v46 = vld [vmem:[%s3212_s4 + $0x50] sm:$0xff] }
 0x22a   :  { %v1372_v47 = vld [vmem:[%s3212_s4 + $0x68] sm:$0xff]  ;;  %v1371_v48 = vld [vmem:[%s3212_s4 + $0x60] sm:$0xff]  ;;  %v1374_v49 = vld [vmem:[%s3212_s4 + $0x78] sm:$0xff] }
 0x22b   :  { %v1373_v50 = vld [vmem:[%s3212_s4 + $0x70] sm:$0xff]  ;;  %v1376_v51 = vld [vmem:[%s3212_s4 + $0x88] sm:$0xff]  ;;  %v1375_v52 = vld [vmem:[%s3212_s4 + $0x80] sm:$0xff] }
 0x22c   :  { %1504 = vperm.xlu1 %2660, %v1362_v37   ;;  %1494 = vperm.xlu0 %2659, %v1360_v38   ;;  %v1378_v53 = vld [vmem:[%s3212_s4 + $0x98] sm:$0xff]  ;;  %v1377_v54 = vld [vmem:[%s3212_s4 + $0x90] sm:$0xff]  ;;  %v1380_v55 = vld [vmem:[%s3212_s4 + $0xa8] sm:$0xff] }
 0x22d   :  { %v1379_v56 = vld [vmem:[%s3212_s4 + $0xa0] sm:$0xff]  ;;  %v1382_v57 = vld [vmem:[%s3212_s4 + $0xb8] sm:$0xff]  ;;  %v1381_v58 = vld [vmem:[%s3212_s4 + $0xb0] sm:$0xff] }
 0x22e   :  { %v1384_v59 = vld [vmem:[%s3212_s4 + $0xc8] sm:$0xff]  ;;  %v1383_v60 = vld [vmem:[%s3212_s4 + $0xc0] sm:$0xff]  ;;  %v1386_v61 = vld [vmem:[%s3212_s4 + $0xd8] sm:$0xff] }
 0x22f   :  { %v1385_v62 = vld [vmem:[%s3212_s4 + $0xd0] sm:$0xff]  ;;  %v1388_v63 = vld [vmem:[%s3212_s4 + $0xe8] sm:$0xff]  ;;  %v1387_v0 = vld [vmem:[%s3212_s4 + $0xe0] sm:$0xff] }
 0x230   :  { %1514 = vperm.xlu1 %2660, %v1364_v39   ;;  %1509 = vperm.xlu0 %2659, %v1363_v40   ;;  %v1390_v1 = vld [vmem:[%s3212_s4 + $0xf8] sm:$0xff]  ;;  %v1389_v2 = vld [vmem:[%s3212_s4 + $0xf0] sm:$0xff]  ;;  %v1392_v3 = vld [vmem:[%s3212_s4 + $0x108] sm:$0xff] }
 0x231   :  { %v1391_v4 = vld [vmem:[%s3212_s4 + $0x100] sm:$0xff]  ;;  %v1394_v5 = vld [vmem:[%s3212_s4 + $0x118] sm:$0xff]  ;;  %v1393_v6 = vld [vmem:[%s3212_s4 + $0x110] sm:$0xff] }
 0x232   :  { %v1396_v7 = vld [vmem:[%s3212_s4 + $0x128] sm:$0xff]  ;;  %v1395_v8 = vld [vmem:[%s3212_s4 + $0x120] sm:$0xff]  ;;  %v1398_v9 = vld [vmem:[%s3212_s4 + $0x138] sm:$0xff] }
 0x233   :  { %v1397_v10 = vld [vmem:[%s3212_s4 + $0x130] sm:$0xff]  ;;  %v1400_v11 = vld [vmem:[%s3212_s4 + $0x148] sm:$0xff]  ;;  %v1399_v12 = vld [vmem:[%s3212_s4 + $0x140] sm:$0xff] }
 0x234   :  { %1524 = vperm.xlu1 %2660, %v1366_v41   ;;  %1519 = vperm.xlu0 %2659, %v1365_v42   ;;  %v1402_v13 = vld [vmem:[%s3212_s4 + $0x158] sm:$0xff]  ;;  %v1401_v14 = vld [vmem:[%s3212_s4 + $0x150] sm:$0xff]  ;;  %v1404_v15 = vld [vmem:[%s3212_s4 + $0x168] sm:$0xff] }
 0x235   :  { %v1403_v16 = vld [vmem:[%s3212_s4 + $0x160] sm:$0xff]  ;;  %v1406_v17 = vld [vmem:[%s3212_s4 + $0x178] sm:$0xff]  ;;  %v1405_v18 = vld [vmem:[%s3212_s4 + $0x170] sm:$0xff] }
 0x236   :  { %v1408_v19 = vld [vmem:[%s3212_s4 + $0x188] sm:$0xff]  ;;  %v1407_v20 = vld [vmem:[%s3212_s4 + $0x180] sm:$0xff]  ;;  %v1410_v21 = vld [vmem:[%s3212_s4 + $0x198] sm:$0xff] }
 0x237   :  { %v1409_v22 = vld [vmem:[%s3212_s4 + $0x190] sm:$0xff]  ;;  %v1412_v23 = vld [vmem:[%s3212_s4 + $0x1a8] sm:$0xff]  ;;  %v1411_v24 = vld [vmem:[%s3212_s4 + $0x1a0] sm:$0xff] }
 0x238   :  { %1534 = vperm.xlu1 %2660, %v1368_v43   ;;  %1529 = vperm.xlu0 %2659, %v1367_v44   ;;  %v1414_v25 = vld [vmem:[%s3212_s4 + $0x1b8] sm:$0xff]  ;;  %v1413_v26 = vld [vmem:[%s3212_s4 + $0x1b0] sm:$0xff]  ;;  %v1416_v27 = vld [vmem:[%s3212_s4 + $0x1c8] sm:$0xff] }
 0x239   :  { %v1415_v28 = vld [vmem:[%s3212_s4 + $0x1c0] sm:$0xff]  ;;  %v1418_v29 = vld [vmem:[%s3212_s4 + $0x1d8] sm:$0xff]  ;;  %v1417_v30 = vld [vmem:[%s3212_s4 + $0x1d0] sm:$0xff] }
 0x23a   :  { %v1420_v31 = vld [vmem:[%s3212_s4 + $0x1e8] sm:$0xff]  ;;  %v1419_v32 = vld [vmem:[%s3212_s4 + $0x1e0] sm:$0xff]  ;;  %v1422_v33 = vld [vmem:[%s3212_s4 + $0x1f8] sm:$0xff] }
 0x23b   :  { %v1421_v34 = vld [vmem:[%s3212_s4 + $0x1f0] sm:$0xff]  ;;  %v1425_v35 = vld [vmem:[#allocation2 + $0xd8] sm:$0xff] }
 0x23c   :  { %1544 = vperm.xlu1 %2660, %v1370_v45   ;;  %1539 = vperm.xlu0 %2659, %v1369_v46   ;;  %v1423_v37 = vld [vmem:[#allocation2 + $0xb0] sm:$0xff]  ;;  %v1426_v39 = vld [vmem:[#allocation2 + $0x18] sm:$0xff] }
 0x23d   :  { %v1424_v40 = vld [vmem:[#allocation2 + $0x1b0] sm:$0xff] }
 0x240   :  { %1554 = vperm.xlu1 %2660, %v1372_v47   ;;  %1549 = vperm.xlu0 %2659, %v1371_v48   ;;  %v1428_v47 = vld [vmem:[#allocation2 + $0x168] sm:$0xff]  ;;  %v1427_v48 = vld [vmem:[#allocation2 + $0x50] sm:$0xff] }
 0x244   :  { %1564 = vperm.xlu1 %2660, %v1374_v49   ;;  %1559 = vperm.xlu0 %2659, %v1373_v50  }
 0x248   :  { %1574 = vperm.xlu1 %2660, %v1376_v51   ;;  %1569 = vperm.xlu0 %2659, %v1375_v52  }
 0x24c   :  { %1584 = vperm.xlu1 %2660, %v1378_v53   ;;  %1579 = vperm.xlu0 %2659, %v1377_v54  }
 0x250   :  { %1594 = vperm.xlu1 %2660, %v1380_v55   ;;  %1589 = vperm.xlu0 %2659, %v1379_v56  }
 0x254   :  { %1604 = vperm.xlu1 %2660, %v1382_v57   ;;  %1599 = vperm.xlu0 %2659, %v1381_v58  }
 0x258   :  { %1614 = vperm.xlu1 %2660, %v1384_v59   ;;  %1609 = vperm.xlu0 %2659, %v1383_v60   ;;  %v1430_v59 = vld [vmem:[#allocation2 + $0x48] sm:$0xff]  ;;  %v1429_v60 = vld [vmem:[#allocation2 + $0x130] sm:$0xff] }
 0x25c   :  { %1624 = vperm.xlu1 %2660, %v1386_v61   ;;  %1619 = vperm.xlu0 %2659, %v1385_v62  }
 0x260   :  { %1634 = vperm.xlu1 %2660, %v1388_v63   ;;  %1629 = vperm.xlu0 %2659, %v1387_v0  }
 0x264   :  { %1644 = vperm.xlu1 %2660, %v1390_v1   ;;  %1639 = vperm.xlu0 %2659, %v1389_v2  }
 0x268   :  { %1654 = vperm.xlu1 %2660, %v1392_v3   ;;  %1649 = vperm.xlu0 %2659, %v1391_v4   ;;  %v1432_v4 = vld [vmem:[#allocation2 + $0x110] sm:$0xff] }
 0x26c   :  { %1664 = vperm.xlu1 %2660, %v1394_v5   ;;  %1659 = vperm.xlu0 %2659, %v1393_v6   ;;  %v1431_v5 = vld [vmem:[#allocation2 + $0x180] sm:$0xff] }
 0x270   :  { %1674 = vperm.xlu1 %2660, %v1396_v7   ;;  %1669 = vperm.xlu0 %2659, %v1395_v8  }
 0x274   :  { %1684 = vperm.xlu1 %2660, %v1398_v9   ;;  %1679 = vperm.xlu0 %2659, %v1397_v10  }
 0x278   :  { %1694 = vperm.xlu1 %2660, %v1400_v11   ;;  %1689 = vperm.xlu0 %2659, %v1399_v12  }
 0x27c   :  { %1704 = vperm.xlu1 %2660, %v1402_v13   ;;  %1699 = vperm.xlu0 %2659, %v1401_v14   ;;  %v1434_v13 = vld [vmem:[#allocation2 + $0x98] sm:$0xff] }
 0x27d   :  { %v1433_v14 = vld [vmem:[#allocation2 + $0x118] sm:$0xff] }
 0x280   :  { %1714 = vperm.xlu1 %2660, %v1404_v15   ;;  %1709 = vperm.xlu0 %2659, %v1403_v16  }
 0x284   :  { %1724 = vperm.xlu1 %2660, %v1406_v17   ;;  %1719 = vperm.xlu0 %2659, %v1405_v18  }
 0x288   :  { %1734 = vperm.xlu1 %2660, %v1408_v19   ;;  %1729 = vperm.xlu0 %2659, %v1407_v20  }
 0x28c   :  { %1744 = vperm.xlu1 %2660, %v1410_v21   ;;  %1739 = vperm.xlu0 %2659, %v1409_v22   ;;  %v1436_v22 = vld [vmem:[#allocation2 + $0x150] sm:$0xff] }
 0x290   :  { %1754 = vperm.xlu1 %2660, %v1412_v23   ;;  %1749 = vperm.xlu0 %2659, %v1411_v24   ;;  %v1435_v23 = vld [vmem:[#allocation2 + $0x120] sm:$0xff] }
 0x294   :  { %1764 = vperm.xlu1 %2660, %v1414_v25   ;;  %1759 = vperm.xlu0 %2659, %v1413_v26  }
 0x298   :  { %1774 = vperm.xlu1 %2660, %v1416_v27   ;;  %1769 = vperm.xlu0 %2659, %v1415_v28  }
 0x29c   :  { %1784 = vperm.xlu1 %2660, %v1418_v29   ;;  %1779 = vperm.xlu0 %2659, %v1417_v30  }
 0x2a0   :  { %1794 = vperm.xlu1 %2660, %v1420_v31   ;;  %1789 = vperm.xlu0 %2659, %v1419_v32   ;;  %v1438_v31 = vld [vmem:[#allocation2 + $0x60] sm:$0xff]  ;;  %v1437_v32 = vld [vmem:[#allocation2 + $0x108] sm:$0xff] }
 0x2a3   :  { %v1500_v36 = vpop.permute.xlu1 %1499  ;;  %v1490_v38 = vpop.permute.xlu0 %1489 }
 0x2a4   :  { %1804 = vperm.xlu1 %2660, %v1422_v33   ;;  %1799 = vperm.xlu0 %2659, %v1421_v34   ;;  %v1809_v41 = vmul.f32 %v1500_v36, %v1425_v35  ;;  %v1807_v42 = vmul.f32 %v1490_v38, %v1423_v37 }
 0x2a6   :  { %v1873_v49 = vmax.f32 %v1809_v41, 0.0  ;;  %v1871_v50 = vmax.f32 %v1807_v42, 0.0  ;;  %v1439_v41 = vld [vmem:[#allocation2 + $0xe0] sm:$0xff] }
 0x2a7   :  { %v1505_v43 = vpop.permute.xlu1 %1504  ;;  %v1495_v44 = vpop.permute.xlu0 %1494 }
 0x2a8   :  { %v1810_v45 = vmul.f32 %v1505_v43, %v1426_v39  ;;  %v1808_v46 = vmul.f32 %v1495_v44, %v1424_v40  ;;  %v1440_v40 = vld [vmem:[#allocation2 + $0x188] sm:$0xff] }
 0x2aa   :  { %v1874_v51 = vmax.f32 %v1810_v45, 0.0  ;;  %v1872_v52 = vmax.f32 %v1808_v46, 0.0 }
 0x2ab   :  { %v1515_v53 = vpop.permute.xlu1 %1514  ;;  %v1510_v54 = vpop.permute.xlu0 %1509 }
 0x2ac   :  { %v2441_v55 = vpack.c.bf16 %v1874_v51, %v1873_v49  ;;  %v2436_v56 = vpack.c.bf16 %v1872_v52, %v1871_v50  ;;  %v1812_v57 = vmul.f32 %v1515_v53, %v1428_v47  ;;  %v1811_v58 = vmul.f32 %v1510_v54, %v1427_v48  ;;  %v1442_v49 = vld [vmem:[#allocation2 + $0x140] sm:$0xff]  ;;  %v1441_v50 = vld [vmem:[#allocation2 + $0x138] sm:$0xff] }
 0x2ae   :  { %2593 = vst [vmem:[%s3213_s5 + $0x8] sm:$0xff] %v2441_v55   ;;  %2437 = vst [vmem:[%s3213_s5] sm:$0xff] %v2436_v56   ;;  %v1876_v61 = vmax.f32 %v1812_v57, 0.0  ;;  %v1875_v62 = vmax.f32 %v1811_v58, 0.0  ;;  %v1444_v58 = vld [vmem:[#allocation2 + $0x1a8] sm:$0xff] }
 0x2af   :  { %v1525_v63 = vpop.permute.xlu1 %1524  ;;  %v1520_v0 = vpop.permute.xlu0 %1519 }
 0x2b0   :  { %v2446_v1 = vpack.c.bf16 %v1876_v61, %v1875_v62  ;;  %v1814_v2 = vmul.f32 %v1525_v63, %v1430_v59  ;;  %v1813_v3 = vmul.f32 %v1520_v0, %v1429_v60  ;;  %v1443_v59 = vld [vmem:[#allocation2 + $0x80] sm:$0xff] }
 0x2b2   :  { %2594 = vst [vmem:[%s3213_s5 + $0x10] sm:$0xff] %v2446_v1   ;;  %v1878_v6 = vmax.f32 %v1814_v2, 0.0  ;;  %v1877_v7 = vmax.f32 %v1813_v3, 0.0  ;;  %v1446_v3 = vld [vmem:[#allocation2 + $0x28] sm:$0xff] }
 0x2b3   :  { %v1535_v8 = vpop.permute.xlu1 %1534  ;;  %v1530_v9 = vpop.permute.xlu0 %1529 }
 0x2b4   :  { %v2451_v10 = vpack.c.bf16 %v1878_v6, %v1877_v7  ;;  %v1816_v11 = vmul.f32 %v1535_v8, %v1432_v4  ;;  %v1815_v12 = vmul.f32 %v1530_v9, %v1431_v5  ;;  %v1445_v4 = vld [vmem:[#allocation2 + $0x1b8] sm:$0xff] }
 0x2b6   :  { %2595 = vst [vmem:[%s3213_s5 + $0x18] sm:$0xff] %v2451_v10   ;;  %v1880_v15 = vmax.f32 %v1816_v11, 0.0  ;;  %v1879_v16 = vmax.f32 %v1815_v12, 0.0  ;;  %v1448_v12 = vld [vmem:[#allocation2 + $0xf8] sm:$0xff] }
 0x2b7   :  { %v1545_v17 = vpop.permute.xlu1 %1544  ;;  %v1540_v18 = vpop.permute.xlu0 %1539 }
 0x2b8   :  { %v2456_v19 = vpack.c.bf16 %v1880_v15, %v1879_v16  ;;  %v1818_v20 = vmul.f32 %v1545_v17, %v1434_v13  ;;  %v1817_v21 = vmul.f32 %v1540_v18, %v1433_v14  ;;  %v1447_v13 = vld [vmem:[#allocation2 + $0x1e8] sm:$0xff] }
 0x2ba   :  { %2596 = vst [vmem:[%s3213_s5 + $0x20] sm:$0xff] %v2456_v19   ;;  %v1882_v24 = vmax.f32 %v1818_v20, 0.0  ;;  %v1881_v25 = vmax.f32 %v1817_v21, 0.0  ;;  %v1450_v21 = vld [vmem:[#allocation2 + $0x30] sm:$0xff] }
 0x2bb   :  { %v1555_v26 = vpop.permute.xlu1 %1554  ;;  %v1550_v27 = vpop.permute.xlu0 %1549 }
 0x2bc   :  { %v2461_v28 = vpack.c.bf16 %v1882_v24, %v1881_v25  ;;  %v1820_v29 = vmul.f32 %v1555_v26, %v1436_v22  ;;  %v1819_v30 = vmul.f32 %v1550_v27, %v1435_v23  ;;  %v1449_v22 = vld [vmem:[#allocation2 + $0x160] sm:$0xff] }
 0x2be   :  { %2597 = vst [vmem:[%s3213_s5 + $0x28] sm:$0xff] %v2461_v28   ;;  %v1884_v33 = vmax.f32 %v1820_v29, 0.0  ;;  %v1883_v34 = vmax.f32 %v1819_v30, 0.0  ;;  %v1452_v30 = vld [vmem:[#allocation2] sm:$0xff] }
 0x2bf   :  { %v1565_v35 = vpop.permute.xlu1 %1564  ;;  %v1560_v36 = vpop.permute.xlu0 %1559 }
 0x2c0   :  { %v2466_v37 = vpack.c.bf16 %v1884_v33, %v1883_v34  ;;  %v1822_v38 = vmul.f32 %v1565_v35, %v1438_v31  ;;  %v1821_v39 = vmul.f32 %v1560_v36, %v1437_v32  ;;  %v1451_v31 = vld [vmem:[#allocation2 + $0x1e0] sm:$0xff] }
 0x2c2   :  { %2598 = vst [vmem:[%s3213_s5 + $0x30] sm:$0xff] %v2466_v37   ;;  %v1886_v42 = vmax.f32 %v1822_v38, 0.0  ;;  %v1885_v43 = vmax.f32 %v1821_v39, 0.0  ;;  %v1454_v39 = vld [vmem:[#allocation2 + $0x8] sm:$0xff] }
 0x2c3   :  { %v1575_v44 = vpop.permute.xlu1 %1574  ;;  %v1570_v45 = vpop.permute.xlu0 %1569 }
 0x2c4   :  { %v2471_v46 = vpack.c.bf16 %v1886_v42, %v1885_v43  ;;  %v1824_v47 = vmul.f32 %v1575_v44, %v1440_v40  ;;  %v1823_v48 = vmul.f32 %v1570_v45, %v1439_v41  ;;  %v1453_v40 = vld [vmem:[#allocation2 + $0xf0] sm:$0xff] }
 0x2c6   :  { %2599 = vst [vmem:[%s3213_s5 + $0x38] sm:$0xff] %v2471_v46   ;;  %v1888_v51 = vmax.f32 %v1824_v47, 0.0  ;;  %v1887_v52 = vmax.f32 %v1823_v48, 0.0  ;;  %v1456_v48 = vld [vmem:[#allocation2 + $0x1d0] sm:$0xff] }
 0x2c7   :  { %v1585_v53 = vpop.permute.xlu1 %1584  ;;  %v1580_v54 = vpop.permute.xlu0 %1579 }
 0x2c8   :  { %v2476_v55 = vpack.c.bf16 %v1888_v51, %v1887_v52  ;;  %v1826_v56 = vmul.f32 %v1585_v53, %v1442_v49  ;;  %v1825_v57 = vmul.f32 %v1580_v54, %v1441_v50  ;;  %v1455_v49 = vld [vmem:[#allocation2 + $0x148] sm:$0xff] }
 0x2ca   :  { %2600 = vst [vmem:[%s3213_s5 + $0x40] sm:$0xff] %v2476_v55   ;;  %v1890_v60 = vmax.f32 %v1826_v56, 0.0  ;;  %v1889_v61 = vmax.f32 %v1825_v57, 0.0  ;;  %v1458_v57 = vld [vmem:[#allocation2 + $0xc8] sm:$0xff] }
 0x2cb   :  { %v1595_v62 = vpop.permute.xlu1 %1594  ;;  %v1590_v63 = vpop.permute.xlu0 %1589 }
 0x2cc   :  { %v2481_v0 = vpack.c.bf16 %v1890_v60, %v1889_v61  ;;  %v1828_v1 = vmul.f32 %v1595_v62, %v1444_v58  ;;  %v1827_v2 = vmul.f32 %v1590_v63, %v1443_v59  ;;  %v1457_v58 = vld [vmem:[#allocation2 + $0x100] sm:$0xff] }
 0x2ce   :  { %2601 = vst [vmem:[%s3213_s5 + $0x48] sm:$0xff] %v2481_v0   ;;  %v1892_v5 = vmax.f32 %v1828_v1, 0.0  ;;  %v1891_v6 = vmax.f32 %v1827_v2, 0.0  ;;  %v1460_v2 = vld [vmem:[#allocation2 + $0x1f8] sm:$0xff] }
 0x2cf   :  { %v1605_v7 = vpop.permute.xlu1 %1604  ;;  %v1600_v8 = vpop.permute.xlu0 %1599 }
 0x2d0   :  { %v2486_v9 = vpack.c.bf16 %v1892_v5, %v1891_v6  ;;  %v1830_v10 = vmul.f32 %v1605_v7, %v1446_v3  ;;  %v1829_v11 = vmul.f32 %v1600_v8, %v1445_v4  ;;  %v1459_v3 = vld [vmem:[#allocation2 + $0x40] sm:$0xff] }
 0x2d2   :  { %2602 = vst [vmem:[%s3213_s5 + $0x50] sm:$0xff] %v2486_v9   ;;  %v1894_v14 = vmax.f32 %v1830_v10, 0.0  ;;  %v1893_v15 = vmax.f32 %v1829_v11, 0.0  ;;  %v1462_v11 = vld [vmem:[#allocation2 + $0x128] sm:$0xff] }
 0x2d3   :  { %v1615_v16 = vpop.permute.xlu1 %1614  ;;  %v1610_v17 = vpop.permute.xlu0 %1609 }
 0x2d4   :  { %v2491_v18 = vpack.c.bf16 %v1894_v14, %v1893_v15  ;;  %v1832_v19 = vmul.f32 %v1615_v16, %v1448_v12  ;;  %v1831_v20 = vmul.f32 %v1610_v17, %v1447_v13  ;;  %v1461_v12 = vld [vmem:[#allocation2 + $0x20] sm:$0xff] }
 0x2d6   :  { %2603 = vst [vmem:[%s3213_s5 + $0x58] sm:$0xff] %v2491_v18   ;;  %v1896_v23 = vmax.f32 %v1832_v19, 0.0  ;;  %v1895_v24 = vmax.f32 %v1831_v20, 0.0  ;;  %v1464_v20 = vld [vmem:[#allocation2 + $0x1f0] sm:$0xff] }
 0x2d7   :  { %v1625_v25 = vpop.permute.xlu1 %1624  ;;  %v1620_v26 = vpop.permute.xlu0 %1619 }
 0x2d8   :  { %v2496_v27 = vpack.c.bf16 %v1896_v23, %v1895_v24  ;;  %v1834_v28 = vmul.f32 %v1625_v25, %v1450_v21  ;;  %v1833_v29 = vmul.f32 %v1620_v26, %v1449_v22  ;;  %v1463_v21 = vld [vmem:[#allocation2 + $0x1a0] sm:$0xff] }
 0x2da   :  { %2604 = vst [vmem:[%s3213_s5 + $0x60] sm:$0xff] %v2496_v27   ;;  %v1898_v32 = vmax.f32 %v1834_v28, 0.0  ;;  %v1897_v33 = vmax.f32 %v1833_v29, 0.0  ;;  %v1466_v29 = vld [vmem:[#allocation2 + $0x78] sm:$0xff] }
 0x2db   :  { %v1635_v34 = vpop.permute.xlu1 %1634  ;;  %v1630_v35 = vpop.permute.xlu0 %1629 }
 0x2dc   :  { %v2501_v36 = vpack.c.bf16 %v1898_v32, %v1897_v33  ;;  %v1836_v37 = vmul.f32 %v1635_v34, %v1452_v30  ;;  %v1835_v38 = vmul.f32 %v1630_v35, %v1451_v31  ;;  %v1465_v30 = vld [vmem:[#allocation2 + $0xe8] sm:$0xff] }
 0x2de   :  { %2605 = vst [vmem:[%s3213_s5 + $0x68] sm:$0xff] %v2501_v36   ;;  %v1900_v41 = vmax.f32 %v1836_v37, 0.0  ;;  %v1899_v42 = vmax.f32 %v1835_v38, 0.0  ;;  %v1468_v38 = vld [vmem:[#allocation2 + $0x90] sm:$0xff] }
 0x2df   :  { %v1645_v43 = vpop.permute.xlu1 %1644  ;;  %v1640_v44 = vpop.permute.xlu0 %1639 }
 0x2e0   :  { %v2506_v45 = vpack.c.bf16 %v1900_v41, %v1899_v42  ;;  %v1838_v46 = vmul.f32 %v1645_v43, %v1454_v39  ;;  %v1837_v47 = vmul.f32 %v1640_v44, %v1453_v40  ;;  %v1467_v39 = vld [vmem:[#allocation2 + $0x70] sm:$0xff] }
 0x2e2   :  { %2606 = vst [vmem:[%s3213_s5 + $0x70] sm:$0xff] %v2506_v45   ;;  %v1902_v50 = vmax.f32 %v1838_v46, 0.0  ;;  %v1901_v51 = vmax.f32 %v1837_v47, 0.0  ;;  %v1470_v47 = vld [vmem:[#allocation2 + $0xd0] sm:$0xff] }
 0x2e3   :  { %v1655_v52 = vpop.permute.xlu1 %1654  ;;  %v1650_v53 = vpop.permute.xlu0 %1649 }
 0x2e4   :  { %v2511_v54 = vpack.c.bf16 %v1902_v50, %v1901_v51  ;;  %v1840_v55 = vmul.f32 %v1655_v52, %v1456_v48  ;;  %v1839_v56 = vmul.f32 %v1650_v53, %v1455_v49  ;;  %v1469_v48 = vld [vmem:[#allocation2 + $0x1d8] sm:$0xff] }
 0x2e6   :  { %2607 = vst [vmem:[%s3213_s5 + $0x78] sm:$0xff] %v2511_v54   ;;  %v1904_v59 = vmax.f32 %v1840_v55, 0.0  ;;  %v1903_v60 = vmax.f32 %v1839_v56, 0.0  ;;  %v1472_v56 = vld [vmem:[#allocation2 + $0x88] sm:$0xff] }
 0x2e7   :  { %v1665_v61 = vpop.permute.xlu1 %1664  ;;  %v1660_v62 = vpop.permute.xlu0 %1659 }
 0x2e8   :  { %v2516_v63 = vpack.c.bf16 %v1904_v59, %v1903_v60  ;;  %v1842_v0 = vmul.f32 %v1665_v61, %v1458_v57  ;;  %v1841_v1 = vmul.f32 %v1660_v62, %v1457_v58  ;;  %v1471_v57 = vld [vmem:[#allocation2 + $0xb8] sm:$0xff] }
 0x2ea   :  { %2608 = vst [vmem:[%s3213_s5 + $0x80] sm:$0xff] %v2516_v63   ;;  %v1906_v4 = vmax.f32 %v1842_v0, 0.0  ;;  %v1905_v5 = vmax.f32 %v1841_v1, 0.0  ;;  %v1474_v1 = vld [vmem:[#allocation2 + $0x1c8] sm:$0xff] }
 0x2eb   :  { %v1675_v6 = vpop.permute.xlu1 %1674  ;;  %v1670_v7 = vpop.permute.xlu0 %1669 }
 0x2ec   :  { %v2521_v8 = vpack.c.bf16 %v1906_v4, %v1905_v5  ;;  %v1844_v9 = vmul.f32 %v1675_v6, %v1460_v2  ;;  %v1843_v10 = vmul.f32 %v1670_v7, %v1459_v3  ;;  %v1473_v2 = vld [vmem:[#allocation2 + $0xa8] sm:$0xff] }
 0x2ee   :  { %2609 = vst [vmem:[%s3213_s5 + $0x88] sm:$0xff] %v2521_v8   ;;  %v1908_v13 = vmax.f32 %v1844_v9, 0.0  ;;  %v1907_v14 = vmax.f32 %v1843_v10, 0.0  ;;  %v1476_v10 = vld [vmem:[#allocation2 + $0x178] sm:$0xff] }
 0x2ef   :  { %v1685_v15 = vpop.permute.xlu1 %1684  ;;  %v1680_v16 = vpop.permute.xlu0 %1679 }
 0x2f0   :  { %v2526_v17 = vpack.c.bf16 %v1908_v13, %v1907_v14  ;;  %v1846_v18 = vmul.f32 %v1685_v15, %v1462_v11  ;;  %v1845_v19 = vmul.f32 %v1680_v16, %v1461_v12  ;;  %v1475_v11 = vld [vmem:[#allocation2 + $0x170] sm:$0xff] }
 0x2f2   :  { %2610 = vst [vmem:[%s3213_s5 + $0x90] sm:$0xff] %v2526_v17   ;;  %v1910_v22 = vmax.f32 %v1846_v18, 0.0  ;;  %v1909_v23 = vmax.f32 %v1845_v19, 0.0  ;;  %v1478_v19 = vld [vmem:[#allocation2 + $0x190] sm:$0xff] }
 0x2f3   :  { %v1695_v24 = vpop.permute.xlu1 %1694  ;;  %v1690_v25 = vpop.permute.xlu0 %1689 }
 0x2f4   :  { %v2531_v26 = vpack.c.bf16 %v1910_v22, %v1909_v23  ;;  %v1848_v27 = vmul.f32 %v1695_v24, %v1464_v20  ;;  %v1847_v28 = vmul.f32 %v1690_v25, %v1463_v21  ;;  %v1477_v20 = vld [vmem:[#allocation2 + $0x68] sm:$0xff] }
 0x2f6   :  { %2611 = vst [vmem:[%s3213_s5 + $0x98] sm:$0xff] %v2531_v26   ;;  %v1912_v31 = vmax.f32 %v1848_v27, 0.0  ;;  %v1911_v32 = vmax.f32 %v1847_v28, 0.0  ;;  %v1480_v28 = vld [vmem:[#allocation2 + $0x38] sm:$0xff] }
 0x2f7   :  { %v1705_v33 = vpop.permute.xlu1 %1704  ;;  %v1700_v34 = vpop.permute.xlu0 %1699 }
 0x2f8   :  { %v2536_v35 = vpack.c.bf16 %v1912_v31, %v1911_v32  ;;  %v1850_v36 = vmul.f32 %v1705_v33, %v1466_v29  ;;  %v1849_v37 = vmul.f32 %v1700_v34, %v1465_v30  ;;  %v1479_v29 = vld [vmem:[#allocation2 + $0x198] sm:$0xff] }
 0x2fa   :  { %2612 = vst [vmem:[%s3213_s5 + $0xa0] sm:$0xff] %v2536_v35   ;;  %v1914_v40 = vmax.f32 %v1850_v36, 0.0  ;;  %v1913_v41 = vmax.f32 %v1849_v37, 0.0  ;;  %v1482_v37 = vld [vmem:[#allocation2 + $0x1c0] sm:$0xff] }
 0x2fb   :  { %v1715_v42 = vpop.permute.xlu1 %1714  ;;  %v1710_v43 = vpop.permute.xlu0 %1709 }
 0x2fc   :  { %v2541_v44 = vpack.c.bf16 %v1914_v40, %v1913_v41  ;;  %v1852_v45 = vmul.f32 %v1715_v42, %v1468_v38  ;;  %v1851_v46 = vmul.f32 %v1710_v43, %v1467_v39  ;;  %v1481_v38 = vld [vmem:[#allocation2 + $0xc0] sm:$0xff] }
 0x2fe   :  { %2613 = vst [vmem:[%s3213_s5 + $0xa8] sm:$0xff] %v2541_v44   ;;  %v1916_v49 = vmax.f32 %v1852_v45, 0.0  ;;  %v1915_v50 = vmax.f32 %v1851_v46, 0.0  ;;  %v1484_v46 = vld [vmem:[#allocation2 + $0x10] sm:$0xff] }
 0x2ff   :  { %v1725_v51 = vpop.permute.xlu1 %1724  ;;  %v1720_v52 = vpop.permute.xlu0 %1719 }
 0x300   :  { %v2546_v53 = vpack.c.bf16 %v1916_v49, %v1915_v50  ;;  %v1854_v54 = vmul.f32 %v1725_v51, %v1470_v47  ;;  %v1853_v55 = vmul.f32 %v1720_v52, %v1469_v48  ;;  %v1483_v47 = vld [vmem:[#allocation2 + $0x158] sm:$0xff] }
 0x302   :  { %2614 = vst [vmem:[%s3213_s5 + $0xb0] sm:$0xff] %v2546_v53   ;;  %v1918_v58 = vmax.f32 %v1854_v54, 0.0  ;;  %v1917_v59 = vmax.f32 %v1853_v55, 0.0  ;;  %v1486_v55 = vld [vmem:[#allocation2 + $0xa0] sm:$0xff] }
 0x303   :  { %v1735_v60 = vpop.permute.xlu1 %1734  ;;  %v1730_v61 = vpop.permute.xlu0 %1729 }
 0x304   :  { %v2551_v62 = vpack.c.bf16 %v1918_v58, %v1917_v59  ;;  %v1856_v63 = vmul.f32 %v1735_v60, %v1472_v56  ;;  %v1855_v0 = vmul.f32 %v1730_v61, %v1471_v57  ;;  %v1485_v56 = vld [vmem:[#allocation2 + $0x58] sm:$0xff] }
 0x306   :  { %2615 = vst [vmem:[%s3213_s5 + $0xb8] sm:$0xff] %v2551_v62   ;;  %v1920_v3 = vmax.f32 %v1856_v63, 0.0  ;;  %v1919_v4 = vmax.f32 %v1855_v0, 0.0 }
 0x307   :  { %v1745_v5 = vpop.permute.xlu1 %1744  ;;  %v1740_v6 = vpop.permute.xlu0 %1739 }
 0x308   :  { %v2556_v7 = vpack.c.bf16 %v1920_v3, %v1919_v4  ;;  %v1858_v8 = vmul.f32 %v1745_v5, %v1474_v1  ;;  %v1857_v9 = vmul.f32 %v1740_v6, %v1473_v2 }
 0x30a   :  { %2616 = vst [vmem:[%s3213_s5 + $0xc0] sm:$0xff] %v2556_v7   ;;  %v1922_v12 = vmax.f32 %v1858_v8, 0.0  ;;  %v1921_v13 = vmax.f32 %v1857_v9, 0.0 }
 0x30b   :  { %v1755_v14 = vpop.permute.xlu1 %1754  ;;  %v1750_v15 = vpop.permute.xlu0 %1749 }
 0x30c   :  { %v2561_v16 = vpack.c.bf16 %v1922_v12, %v1921_v13  ;;  %v1860_v17 = vmul.f32 %v1755_v14, %v1476_v10  ;;  %v1859_v18 = vmul.f32 %v1750_v15, %v1475_v11 }
 0x30e   :  { %2617 = vst [vmem:[%s3213_s5 + $0xc8] sm:$0xff] %v2561_v16   ;;  %v1924_v21 = vmax.f32 %v1860_v17, 0.0  ;;  %v1923_v22 = vmax.f32 %v1859_v18, 0.0 }
 0x30f   :  { %v1765_v23 = vpop.permute.xlu1 %1764  ;;  %v1760_v24 = vpop.permute.xlu0 %1759 }
 0x310   :  { %v2566_v25 = vpack.c.bf16 %v1924_v21, %v1923_v22  ;;  %v1862_v26 = vmul.f32 %v1765_v23, %v1478_v19  ;;  %v1861_v27 = vmul.f32 %v1760_v24, %v1477_v20 }
 0x312   :  { %2618 = vst [vmem:[%s3213_s5 + $0xd0] sm:$0xff] %v2566_v25   ;;  %v1926_v30 = vmax.f32 %v1862_v26, 0.0  ;;  %v1925_v31 = vmax.f32 %v1861_v27, 0.0 }
 0x313   :  { %v1775_v32 = vpop.permute.xlu1 %1774  ;;  %v1770_v33 = vpop.permute.xlu0 %1769 }
 0x314   :  { %v2571_v34 = vpack.c.bf16 %v1926_v30, %v1925_v31  ;;  %v1864_v35 = vmul.f32 %v1775_v32, %v1480_v28  ;;  %v1863_v36 = vmul.f32 %v1770_v33, %v1479_v29 }
 0x316   :  { %2619 = vst [vmem:[%s3213_s5 + $0xd8] sm:$0xff] %v2571_v34   ;;  %v1928_v39 = vmax.f32 %v1864_v35, 0.0  ;;  %v1927_v40 = vmax.f32 %v1863_v36, 0.0 }
 0x317   :  { %v1785_v41 = vpop.permute.xlu1 %1784  ;;  %v1780_v42 = vpop.permute.xlu0 %1779 }
 0x318   :  { %v2576_v43 = vpack.c.bf16 %v1928_v39, %v1927_v40  ;;  %v1866_v44 = vmul.f32 %v1785_v41, %v1482_v37  ;;  %v1865_v45 = vmul.f32 %v1780_v42, %v1481_v38 }
 0x31a   :  { %2620 = vst [vmem:[%s3213_s5 + $0xe0] sm:$0xff] %v2576_v43   ;;  %v1930_v48 = vmax.f32 %v1866_v44, 0.0  ;;  %v1929_v49 = vmax.f32 %v1865_v45, 0.0 }
 0x31b   :  { %v1795_v50 = vpop.permute.xlu1 %1794  ;;  %v1790_v51 = vpop.permute.xlu0 %1789 }
 0x31c   :  { %v2581_v52 = vpack.c.bf16 %v1930_v48, %v1929_v49  ;;  %v1868_v53 = vmul.f32 %v1795_v50, %v1484_v46  ;;  %v1867_v54 = vmul.f32 %v1790_v51, %v1483_v47 }
 0x31e   :  { %2621 = vst [vmem:[%s3213_s5 + $0xe8] sm:$0xff] %v2581_v52   ;;  %v1932_v57 = vmax.f32 %v1868_v53, 0.0  ;;  %v1931_v58 = vmax.f32 %v1867_v54, 0.0 }
 0x31f   :  { %v1805_v59 = vpop.permute.xlu1 %1804  ;;  %v1800_v60 = vpop.permute.xlu0 %1799 }
 0x320   :  { %v2586_v61 = vpack.c.bf16 %v1932_v57, %v1931_v58  ;;  %v1870_v62 = vmul.f32 %v1805_v59, %v1486_v55  ;;  %v1869_v63 = vmul.f32 %v1800_v60, %v1485_v56 }
 0x322   :  { %2622 = vst [vmem:[%s3213_s5 + $0xf0] sm:$0xff] %v2586_v61   ;;  %v1934_v0 = vmax.f32 %v1870_v62, 0.0  ;;  %v1933_v1 = vmax.f32 %v1869_v63, 0.0 }
 0x324   :  { %v2591_v2 = vpack.c.bf16 %v1934_v0, %v1933_v1 }
 0x326   :  { %2623 = vst [vmem:[%s3213_s5 + $0xf8] sm:$0xff] %v2591_v2  }

</bundles_post_ra>
